<compile_context>
chip_gen: v5e
topology: v5e:2x2
jax: 0.10.0
libtpu: 0.0.40
codegen_flags: <defaults>
</compile_context>

<pallas_src>
import functools

import jax
import jax.numpy as jnp
import numpy as np
from jax.experimental import pallas as pl
from jax.experimental.pallas import tpu as pltpu


# ----------------------------------------------------------------------------
# Constant 0/1 operand matrices (built once per spatial size, on host).
# ----------------------------------------------------------------------------
def _reflect(i, n):
    if i < 0:
        return -i
    if i >= n:
        return 2 * n - 2 - i
    return i


@functools.lru_cache(maxsize=None)
def _shift_mats(h, w):
    """(9, h*w, h*w): tap k=dy*3+dx -> out[:, p] = image[:, reflect-shifted(p)]."""
    n = h * w
    r = np.zeros((9, n, n), np.float32)
    for dy in range(3):
        for dx in range(3):
            k = dy * 3 + dx
            for y in range(h):
                for x in range(w):
                    src = _reflect(y + dy - 1, h) * w + _reflect(x + dx - 1, w)
                    r[k, src, y * w + x] = 1.0
    return r


@functools.lru_cache(maxsize=None)
def _pool_mats(h, w):
    """(4, h*w, (h//2)*(w//2)): the 4 candidates of each 2x2 max-pool window."""
    hh, wh = h // 2, w // 2
    m = np.zeros((4, h * w, hh * wh), np.float32)
    for r in range(2):
        for c in range(2):
            for i in range(hh):
                for j in range(wh):
                    m[r * 2 + c, (2 * i + r) * w + (2 * j + c), i * wh + j] = 1.0
    return m


@functools.lru_cache(maxsize=None)
def _upsample_scatter_mats(hh, wh):
    """(16, hh*wh, 4*hh*wh): (output phase ph, input shift s) scatter matrices for the
    sub-pixel decomposition of ConvTranspose2d(3, stride=2, padding=1, output_padding=1)."""
    n_in, wout = hh * wh, 2 * wh
    zg = np.zeros((16, n_in, 4 * n_in), np.float32)
    for py in range(2):
        for px in range(2):
            ph = py * 2 + px
            for di in range(2):
                for dj in range(2):
                    s = di * 2 + dj
                    for m in range(hh):
                        for n in range(wh):
                            if m + di < hh and n + dj < wh:
                                src = (m + di) * wh + (n + dj)
                                dst = (2 * m + py) * wout + (2 * n + px)
                                zg[ph * 4 + s, src, dst] = 1.0
    return zg


# ----------------------------------------------------------------------------
# Host-side weight repacking (PyTorch layouts -> kernel operand layouts).
# ----------------------------------------------------------------------------
def _conv_weight_rows(w):
    """Conv2d weight (Cout, Cin, 3, 3) -> (9*Cout, Cin), row (k*Cout+co) = w[co, :, dy, dx]."""
    cout, cin = w.shape[0], w.shape[1]
    return jnp.transpose(w, (2, 3, 0, 1)).reshape(9 * cout, cin)


def _convtranspose_subpixel_rows(wt):
    """ConvTranspose2d weight (Cin, Cout, 3, 3) -> (16*Cout, Cin) sub-pixel form.

    Block (ph*4 + s) with ph = output phase (py, px), s = input shift (di, dj):
        rows co, cols ci = wt[ci, co, py - 2*di + 1, px - 2*dj + 1]   (0 if tap invalid).
    """
    wt = np.asarray(wt)
    cin, cout = wt.shape[0], wt.shape[1]
    out = np.zeros((16 * cout, cin), np.float32)
    for py in range(2):
        for px in range(2):
            for di in range(2):
                for dj in range(2):
                    ky, kx = py - 2 * di + 1, px - 2 * dj + 1
                    if 0 <= ky <= 2 and 0 <= kx <= 2:
                        blk = (py * 2 + px) * 4 + di * 2 + dj
                        out[blk * cout:(blk + 1) * cout, :] = wt[:, :, ky, kx].T
    return jnp.asarray(out)


# ----------------------------------------------------------------------------
# The fused MidBlock kernel (one grid step == one batch element).
# ----------------------------------------------------------------------------
def _midblock_kernel(x_ref, w1_ref, r1_ref, psel_ref, w2_ref, r2_ref,
                     wup_ref, zg_ref, pvec_ref, o_ref, *, cout):
    f32 = jnp.float32
    eps = 1e-5
    x = x_ref[0]                      # (Cin, H*W)   lane-dense activations
    pv = pvec_ref[...]                # (Cout, 9) packed per-channel params
    n_out = o_ref.shape[2]

    def conv_gn_prelu(inp, w_rows_ref, shift_ref, col0):
        # 3x3 conv ('same', reflect) + GroupNorm(1) + PReLU, all in (Cout, N) layout.
        y = jnp.dot(w_rows_ref[...], inp, preferred_element_type=f32)      # (9*Cout, N)
        acc = jnp.zeros((cout, inp.shape[1]), f32)
        for k in range(9):                         # shift matmuls: K = N (lane dense)
            acc += jnp.dot(y[k * cout:(k + 1) * cout, :], shift_ref[k],
                           preferred_element_type=f32)
        acc += pv[:, col0:col0 + 1]                                        # conv bias
        mu = jnp.mean(acc)                         # GroupNorm(1): stats over (C, H, W)
        var = jnp.mean(jnp.square(acc - mu))
        acc = (acc - mu) * jax.lax.rsqrt(var + eps)
        acc = acc * pv[:, col0 + 1:col0 + 2] + pv[:, col0 + 2:col0 + 3]
        alpha = pv[:, col0 + 3:col0 + 4]                                   # PReLU
        return jnp.where(acc > 0, acc, alpha * acc)

    # --- down: ConvBlock(Cin->Cout) + MaxPool2d(2)   (Dropout2d = identity in eval) ---
    h1 = conv_gn_prelu(x, w1_ref, r1_ref, 0)                               # (Cout, H*W)
    pooled = jnp.maximum(
        jnp.maximum(jnp.dot(h1, psel_ref[0], preferred_element_type=f32),
                    jnp.dot(h1, psel_ref[1], preferred_element_type=f32)),
        jnp.maximum(jnp.dot(h1, psel_ref[2], preferred_element_type=f32),
                    jnp.dot(h1, psel_ref[3], preferred_element_type=f32)))  # (Cout, H*W/4)

    # --- conv: ConvBlock(Cout->Cout) ---
    h2 = conv_gn_prelu(pooled, w2_ref, r2_ref, 4)                          # (Cout, H*W/4)

    # --- up: ConvTranspose2d(3, stride=2, pad=1, out_pad=1), 4-phase sub-pixel form ---
    yu = jnp.dot(wup_ref[...], h2, preferred_element_type=f32)             # (16*Cout, H*W/4)
    up = jnp.zeros((cout, n_out), f32)
    for k in range(16):
        up += jnp.dot(yu[k * cout:(k + 1) * cout, :], zg_ref[k],
                      preferred_element_type=f32)
    up += pv[:, 8:9]

    o_ref[0] = up                                                          # lane-dense store


# ----------------------------------------------------------------------------
# Wrapper
# ----------------------------------------------------------------------------
def midblock_forward(x_nchw, kp):
    """x_nchw: (B, Cin, H, W) float32.  kp: dict from prepare_kernel_params."""
    B, Cin, H, W = x_nchw.shape
    cout = kp["pvec"].shape[0]
    n1, n2 = H * W, (H // 2) * (W // 2)

    x = x_nchw.reshape(B, Cin, n1).astype(jnp.float32)       # free: minor-dim merge
    r1 = jnp.asarray(_shift_mats(H, W))
    psel = jnp.asarray(_pool_mats(H, W))
    r2 = jnp.asarray(_shift_mats(H // 2, W // 2))
    zg = jnp.asarray(_upsample_scatter_mats(H // 2, W // 2))

    out = pl.pallas_call(
        functools.partial(_midblock_kernel, cout=cout),
        out_shape=jax.ShapeDtypeStruct((B, cout, n1), jnp.float32),
        grid=(B,),
        in_specs=[
            pl.BlockSpec((1, Cin, n1), lambda b: (b, 0, 0)),        # x (per-batch block)
            pl.BlockSpec((9 * cout, Cin), lambda b: (0, 0)),        # conv1 weights (rows)
            pl.BlockSpec((9, n1, n1), lambda b: (0, 0, 0)),         # conv1 reflect-shift mats
            pl.BlockSpec((4, n1, n2), lambda b: (0, 0, 0)),         # max-pool selectors
            pl.BlockSpec((9 * cout, cout), lambda b: (0, 0)),       # conv2 weights (rows)
            pl.BlockSpec((9, n2, n2), lambda b: (0, 0, 0)),         # conv2 reflect-shift mats
            pl.BlockSpec((16 * cout, cout), lambda b: (0, 0)),      # up sub-pixel weights
            pl.BlockSpec((16, n2, n1), lambda b: (0, 0, 0)),        # up phase-scatter mats
            pl.BlockSpec((cout, 9), lambda b: (0, 0)),              # packed per-channel params
        ],
        out_specs=pl.BlockSpec((1, cout, n1), lambda b: (b, 0, 0)),
        compiler_params=pltpu.CompilerParams(
            dimension_semantics=("parallel",),     # v7x: shard batch over the 2 TensorCores
            vmem_limit_bytes=32 * 1024 * 1024),
    )(x, kp["w1"], r1, psel, kp["w2"], r2, kp["wup"], zg, kp["pvec"])

    return out.reshape(B, cout, H, W)                         # free: minor-dim split


# ----------------------------------------------------------------------------
# Parameters (PyTorch-style) and their kernel repacking.
# ----------------------------------------------------------------------------
def init_torch_params(key, cin, cout):
    ks = jax.random.split(key, 6)
    return {
        "w1": 0.1 * jax.random.normal(ks[0], (cout, cin, 3, 3), jnp.float32),
        "b1": 0.05 * jax.random.normal(ks[1], (cout,), jnp.float32),
        "g1": jnp.ones((cout,), jnp.float32),
        "be1": jnp.zeros((cout,), jnp.float32),
        "a1": jnp.full((cout,), 0.25, jnp.float32),                  # PReLU default init
        "w2": 0.1 * jax.random.normal(ks[2], (cout, cout, 3, 3), jnp.float32),
        "b2": 0.05 * jax.random.normal(ks[3], (cout,), jnp.float32),
        "g2": jnp.ones((cout,), jnp.float32),
        "be2": jnp.zeros((cout,), jnp.float32),
        "a2": jnp.full((cout,), 0.25, jnp.float32),
        "wt": 0.1 * jax.random.normal(ks[4], (cout, cout, 3, 3), jnp.float32),  # (Cin,Cout,kh,kw)
        "bt": 0.05 * jax.random.normal(ks[5], (cout,), jnp.float32),
    }


def prepare_kernel_params(tp):
    pvec = jnp.stack([tp["b1"], tp["g1"], tp["be1"], tp["a1"],
                      tp["b2"], tp["g2"], tp["be2"], tp["a2"], tp["bt"]], axis=1)
    return {
        "w1": _conv_weight_rows(tp["w1"]),
        "w2": _conv_weight_rows(tp["w2"]),
        "wup": _convtranspose_subpixel_rows(tp["wt"]),
        "pvec": pvec.astype(jnp.float32),
    }


# ----------------------------------------------------------------------------
# Pure-JAX reference (same math as the PyTorch module) for self-validation.
# ----------------------------------------------------------------------------
def reference_forward(x, tp):
    def conv_block(h, w, b, g, be, a):
        hp = jnp.pad(h, ((0, 0), (0, 0), (1, 1), (1, 1)), mode="reflect")
        y = jax.lax.conv_general_dilated(
            hp, w, (1, 1), "VALID",
            dimension_numbers=("NCHW", "OIHW", "NCHW"),
            precision=jax.lax.Precision.HIGHEST) + b[None, :, None, None]
        mu = jnp.mean(y, axis=(1, 2, 3), keepdims=True)
        var = jnp.mean(jnp.square(y - mu), axis=(1, 2, 3), keepdims=True)
        y = (y - mu) * jax.lax.rsqrt(var + 1e-5)
        y = y * g[None, :, None, None] + be[None, :, None, None]
        return jnp.where(y > 0, y, a[None, :, None, None] * y)

    h = conv_block(x, tp["w1"], tp["b1"], tp["g1"], tp["be1"], tp["a1"])
    B, C, H, W = h.shape
    h = h.reshape(B, C, H // 2, 2, W // 2, 2).max(axis=(3, 5))
    h = conv_block(h, tp["w2"], tp["b2"], tp["g2"], tp["be2"], tp["a2"])
    w_eff = jnp.transpose(jnp.flip(tp["wt"], (2, 3)), (1, 0, 2, 3))
    up = jax.lax.conv_general_dilated(
        h, w_eff, (1, 1), ((1, 2), (1, 2)), lhs_dilation=(2, 2),
        dimension_numbers=("NCHW", "OIHW", "NCHW"),
        precision=jax.lax.Precision.HIGHEST) + tp["bt"][None, :, None, None]
    return up


if __name__ == "__main__":
    key = jax.random.PRNGKey(0)
    B, Cin, Cout, H, W = 2, 4, 8, 16, 16
    kx, kparam = jax.random.split(key)
    x = jax.random.normal(kx, (B, Cin, H, W), jnp.float32)

    tp = init_torch_params(kparam, Cin, Cout)
    kp = prepare_kernel_params(tp)

    out = midblock_forward(x, kp)
    out = jax.block_until_ready(out)
    assert out.shape == (B, Cout, H, W), out.shape
    assert bool(jnp.all(jnp.isfinite(out)))

    ref = reference_forward(x, tp)
    max_err = float(jnp.max(jnp.abs(out - ref)))
    mean_err = float(jnp.mean(jnp.abs(out - ref)))
    assert max_err < 1.5e-1 and mean_err < 3e-2, (max_err, mean_err)

    print("KERNEL_OK")
</pallas_src>

<mosaic_0001>
module attributes {stable_mosaic.version = 11 : i64} {
  func.func @_midblock_kernel(%arg0: i32, %arg1: memref<1x4x256xf32, #tpu.memory_space<vmem>>, %arg2: memref<72x4xf32, #tpu.memory_space<vmem>>, %arg3: memref<9x256x256xf32, #tpu.memory_space<vmem>>, %arg4: memref<4x256x64xf32, #tpu.memory_space<vmem>>, %arg5: memref<72x8xf32, #tpu.memory_space<vmem>>, %arg6: memref<9x64x64xf32, #tpu.memory_space<vmem>>, %arg7: memref<128x8xf32, #tpu.memory_space<vmem>>, %arg8: memref<16x64x256xf32, #tpu.memory_space<vmem>>, %arg9: memref<8x9xf32, #tpu.memory_space<vmem>>, %arg10: memref<1x8x256xf32, #tpu.memory_space<vmem>>) attributes {dimension_semantics = [#tpu.dimension_semantics<parallel>], iteration_bounds = array<i64: 2>, scalar_prefetch = 0 : i64, scratch_operands = 0 : i64, tpu.core_type = #tpu.core_type<tc>, window_params = [{transform_indices = @transform_0, window_bounds = array<i64: 1, 4, 256>}, {pipeline_mode = #tpu.pipeline_mode<synchronous>, transform_indices = @transform_1, window_bounds = array<i64: 72, 4>}, {pipeline_mode = #tpu.pipeline_mode<synchronous>, transform_indices = @transform_2, window_bounds = array<i64: 9, 256, 256>}, {pipeline_mode = #tpu.pipeline_mode<synchronous>, transform_indices = @transform_3, window_bounds = array<i64: 4, 256, 64>}, {pipeline_mode = #tpu.pipeline_mode<synchronous>, transform_indices = @transform_4, window_bounds = array<i64: 72, 8>}, {pipeline_mode = #tpu.pipeline_mode<synchronous>, transform_indices = @transform_5, window_bounds = array<i64: 9, 64, 64>}, {pipeline_mode = #tpu.pipeline_mode<synchronous>, transform_indices = @transform_6, window_bounds = array<i64: 128, 8>}, {pipeline_mode = #tpu.pipeline_mode<synchronous>, transform_indices = @transform_7, window_bounds = array<i64: 16, 64, 256>}, {pipeline_mode = #tpu.pipeline_mode<synchronous>, transform_indices = @transform_8, window_bounds = array<i64: 8, 9>}, {transform_indices = @transform_9, window_bounds = array<i64: 1, 8, 256>}]} {
    %c0 = arith.constant 0 : index
    %c0_0 = arith.constant 0 : index
    %c0_1 = arith.constant 0 : index
    %0 = vector.load %arg1[%c0, %c0_0, %c0_1] : memref<1x4x256xf32, #tpu.memory_space<vmem>>, vector<1x4x256xf32>
    %1 = vector.shape_cast %0 : vector<1x4x256xf32> to vector<4x256xf32>
    %c0_2 = arith.constant 0 : index
    %c0_3 = arith.constant 0 : index
    %2 = vector.load %arg9[%c0_2, %c0_3] : memref<8x9xf32, #tpu.memory_space<vmem>>, vector<8x9xf32>
    %c0_4 = arith.constant 0 : index
    %c0_5 = arith.constant 0 : index
    %3 = vector.load %arg2[%c0_4, %c0_5] : memref<72x4xf32, #tpu.memory_space<vmem>>, vector<72x4xf32>
    %cst = arith.constant dense<0.000000e+00> : vector<72x256xf32>
    %4 = tpu.matmul %3, %1, %cst {dimension_numbers = #tpu.dot_dimension_numbers<[1], [0], [0], [1], [0, 0, 1, 1], [], []>} : vector<72x4xf32>, vector<4x256xf32>, vector<72x256xf32> -> vector<72x256xf32>
    %cst_6 = arith.constant 0.000000e+00 : f32
    %5 = vector.broadcast %cst_6 : f32 to vector<8x256xf32>
    %6 = vector.extract_strided_slice %4 {offsets = [0, 0], sizes = [8, 256], strides = [1, 1]} : vector<72x256xf32> to vector<8x256xf32>
    %c0_7 = arith.constant 0 : index
    %c0_8 = arith.constant 0 : index
    %c0_9 = arith.constant 0 : index
    %7 = vector.load %arg3[%c0_7, %c0_8, %c0_9] : memref<9x256x256xf32, #tpu.memory_space<vmem>>, vector<1x256x256xf32>
    %8 = vector.shape_cast %7 : vector<1x256x256xf32> to vector<256x256xf32>
    %cst_10 = arith.constant dense<0.000000e+00> : vector<8x256xf32>
    %9 = tpu.matmul %6, %8, %cst_10 {dimension_numbers = #tpu.dot_dimension_numbers<[1], [0], [0], [1], [0, 0, 1, 1], [], []>} : vector<8x256xf32>, vector<256x256xf32>, vector<8x256xf32> -> vector<8x256xf32>
    %10 = arith.addf %5, %9 : vector<8x256xf32>
    %11 = vector.extract_strided_slice %4 {offsets = [8, 0], sizes = [8, 256], strides = [1, 1]} : vector<72x256xf32> to vector<8x256xf32>
    %c1 = arith.constant 1 : index
    %c0_11 = arith.constant 0 : index
    %c0_12 = arith.constant 0 : index
    %12 = vector.load %arg3[%c1, %c0_11, %c0_12] : memref<9x256x256xf32, #tpu.memory_space<vmem>>, vector<1x256x256xf32>
    %13 = vector.shape_cast %12 : vector<1x256x256xf32> to vector<256x256xf32>
    %cst_13 = arith.constant dense<0.000000e+00> : vector<8x256xf32>
    %14 = tpu.matmul %11, %13, %cst_13 {dimension_numbers = #tpu.dot_dimension_numbers<[1], [0], [0], [1], [0, 0, 1, 1], [], []>} : vector<8x256xf32>, vector<256x256xf32>, vector<8x256xf32> -> vector<8x256xf32>
    %15 = arith.addf %10, %14 : vector<8x256xf32>
    %16 = vector.extract_strided_slice %4 {offsets = [16, 0], sizes = [8, 256], strides = [1, 1]} : vector<72x256xf32> to vector<8x256xf32>
    %c2 = arith.constant 2 : index
    %c0_14 = arith.constant 0 : index
    %c0_15 = arith.constant 0 : index
    %17 = vector.load %arg3[%c2, %c0_14, %c0_15] : memref<9x256x256xf32, #tpu.memory_space<vmem>>, vector<1x256x256xf32>
    %18 = vector.shape_cast %17 : vector<1x256x256xf32> to vector<256x256xf32>
    %cst_16 = arith.constant dense<0.000000e+00> : vector<8x256xf32>
    %19 = tpu.matmul %16, %18, %cst_16 {dimension_numbers = #tpu.dot_dimension_numbers<[1], [0], [0], [1], [0, 0, 1, 1], [], []>} : vector<8x256xf32>, vector<256x256xf32>, vector<8x256xf32> -> vector<8x256xf32>
    %20 = arith.addf %15, %19 : vector<8x256xf32>
    %21 = vector.extract_strided_slice %4 {offsets = [24, 0], sizes = [8, 256], strides = [1, 1]} : vector<72x256xf32> to vector<8x256xf32>
    %c3 = arith.constant 3 : index
    %c0_17 = arith.constant 0 : index
    %c0_18 = arith.constant 0 : index
    %22 = vector.load %arg3[%c3, %c0_17, %c0_18] : memref<9x256x256xf32, #tpu.memory_space<vmem>>, vector<1x256x256xf32>
    %23 = vector.shape_cast %22 : vector<1x256x256xf32> to vector<256x256xf32>
    %cst_19 = arith.constant dense<0.000000e+00> : vector<8x256xf32>
    %24 = tpu.matmul %21, %23, %cst_19 {dimension_numbers = #tpu.dot_dimension_numbers<[1], [0], [0], [1], [0, 0, 1, 1], [], []>} : vector<8x256xf32>, vector<256x256xf32>, vector<8x256xf32> -> vector<8x256xf32>
    %25 = arith.addf %20, %24 : vector<8x256xf32>
    %26 = vector.extract_strided_slice %4 {offsets = [32, 0], sizes = [8, 256], strides = [1, 1]} : vector<72x256xf32> to vector<8x256xf32>
    %c4 = arith.constant 4 : index
    %c0_20 = arith.constant 0 : index
    %c0_21 = arith.constant 0 : index
    %27 = vector.load %arg3[%c4, %c0_20, %c0_21] : memref<9x256x256xf32, #tpu.memory_space<vmem>>, vector<1x256x256xf32>
    %28 = vector.shape_cast %27 : vector<1x256x256xf32> to vector<256x256xf32>
    %cst_22 = arith.constant dense<0.000000e+00> : vector<8x256xf32>
    %29 = tpu.matmul %26, %28, %cst_22 {dimension_numbers = #tpu.dot_dimension_numbers<[1], [0], [0], [1], [0, 0, 1, 1], [], []>} : vector<8x256xf32>, vector<256x256xf32>, vector<8x256xf32> -> vector<8x256xf32>
    %30 = arith.addf %25, %29 : vector<8x256xf32>
    %31 = vector.extract_strided_slice %4 {offsets = [40, 0], sizes = [8, 256], strides = [1, 1]} : vector<72x256xf32> to vector<8x256xf32>
    %c5 = arith.constant 5 : index
    %c0_23 = arith.constant 0 : index
    %c0_24 = arith.constant 0 : index
    %32 = vector.load %arg3[%c5, %c0_23, %c0_24] : memref<9x256x256xf32, #tpu.memory_space<vmem>>, vector<1x256x256xf32>
    %33 = vector.shape_cast %32 : vector<1x256x256xf32> to vector<256x256xf32>
    %cst_25 = arith.constant dense<0.000000e+00> : vector<8x256xf32>
    %34 = tpu.matmul %31, %33, %cst_25 {dimension_numbers = #tpu.dot_dimension_numbers<[1], [0], [0], [1], [0, 0, 1, 1], [], []>} : vector<8x256xf32>, vector<256x256xf32>, vector<8x256xf32> -> vector<8x256xf32>
    %35 = arith.addf %30, %34 : vector<8x256xf32>
    %36 = vector.extract_strided_slice %4 {offsets = [48, 0], sizes = [8, 256], strides = [1, 1]} : vector<72x256xf32> to vector<8x256xf32>
    %c6 = arith.constant 6 : index
    %c0_26 = arith.constant 0 : index
    %c0_27 = arith.constant 0 : index
    %37 = vector.load %arg3[%c6, %c0_26, %c0_27] : memref<9x256x256xf32, #tpu.memory_space<vmem>>, vector<1x256x256xf32>
    %38 = vector.shape_cast %37 : vector<1x256x256xf32> to vector<256x256xf32>
    %cst_28 = arith.constant dense<0.000000e+00> : vector<8x256xf32>
    %39 = tpu.matmul %36, %38, %cst_28 {dimension_numbers = #tpu.dot_dimension_numbers<[1], [0], [0], [1], [0, 0, 1, 1], [], []>} : vector<8x256xf32>, vector<256x256xf32>, vector<8x256xf32> -> vector<8x256xf32>
    %40 = arith.addf %35, %39 : vector<8x256xf32>
    %41 = vector.extract_strided_slice %4 {offsets = [56, 0], sizes = [8, 256], strides = [1, 1]} : vector<72x256xf32> to vector<8x256xf32>
    %c7 = arith.constant 7 : index
    %c0_29 = arith.constant 0 : index
    %c0_30 = arith.constant 0 : index
    %42 = vector.load %arg3[%c7, %c0_29, %c0_30] : memref<9x256x256xf32, #tpu.memory_space<vmem>>, vector<1x256x256xf32>
    %43 = vector.shape_cast %42 : vector<1x256x256xf32> to vector<256x256xf32>
    %cst_31 = arith.constant dense<0.000000e+00> : vector<8x256xf32>
    %44 = tpu.matmul %41, %43, %cst_31 {dimension_numbers = #tpu.dot_dimension_numbers<[1], [0], [0], [1], [0, 0, 1, 1], [], []>} : vector<8x256xf32>, vector<256x256xf32>, vector<8x256xf32> -> vector<8x256xf32>
    %45 = arith.addf %40, %44 : vector<8x256xf32>
    %46 = vector.extract_strided_slice %4 {offsets = [64, 0], sizes = [8, 256], strides = [1, 1]} : vector<72x256xf32> to vector<8x256xf32>
    %c8 = arith.constant 8 : index
    %c0_32 = arith.constant 0 : index
    %c0_33 = arith.constant 0 : index
    %47 = vector.load %arg3[%c8, %c0_32, %c0_33] : memref<9x256x256xf32, #tpu.memory_space<vmem>>, vector<1x256x256xf32>
    %48 = vector.shape_cast %47 : vector<1x256x256xf32> to vector<256x256xf32>
    %cst_34 = arith.constant dense<0.000000e+00> : vector<8x256xf32>
    %49 = tpu.matmul %46, %48, %cst_34 {dimension_numbers = #tpu.dot_dimension_numbers<[1], [0], [0], [1], [0, 0, 1, 1], [], []>} : vector<8x256xf32>, vector<256x256xf32>, vector<8x256xf32> -> vector<8x256xf32>
    %50 = arith.addf %45, %49 : vector<8x256xf32>
    %51 = vector.extract_strided_slice %2 {offsets = [0, 0], sizes = [8, 1], strides = [1, 1]} : vector<8x9xf32> to vector<8x1xf32>
    %52 = vector.broadcast %51 : vector<8x1xf32> to vector<8x256xf32>
    %53 = arith.addf %50, %52 : vector<8x256xf32>
    %54 = vector.shape_cast %53 : vector<8x256xf32> to vector<1x8x256xf32>
    %cst_35 = arith.constant dense<0.000000e+00> : vector<1xf32>
    %55 = vector.multi_reduction <add>, %54, %cst_35 [1, 2] : vector<1x8x256xf32> to vector<1xf32>
    %56 = vector.shape_cast %55 : vector<1xf32> to vector<1x1x1xf32>
    %57 = vector.extract %56[0, 0, 0] : f32 from vector<1x1x1xf32>
    %cst_36 = arith.constant 2.048000e+03 : f32
    %58 = arith.divf %57, %cst_36 : f32
    %59 = vector.broadcast %58 : f32 to vector<8x256xf32>
    %60 = arith.subf %53, %59 : vector<8x256xf32>
    %61 = arith.mulf %60, %60 : vector<8x256xf32>
    %62 = vector.shape_cast %61 : vector<8x256xf32> to vector<1x8x256xf32>
    %cst_37 = arith.constant dense<0.000000e+00> : vector<1xf32>
    %63 = vector.multi_reduction <add>, %62, %cst_37 [1, 2] : vector<1x8x256xf32> to vector<1xf32>
    %64 = vector.shape_cast %63 : vector<1xf32> to vector<1x1x1xf32>
    %65 = vector.extract %64[0, 0, 0] : f32 from vector<1x1x1xf32>
    %cst_38 = arith.constant 2.048000e+03 : f32
    %66 = arith.divf %65, %cst_38 : f32
    %67 = vector.broadcast %58 : f32 to vector<8x256xf32>
    %68 = arith.subf %53, %67 : vector<8x256xf32>
    %cst_39 = arith.constant 9.99999974E-6 : f32
    %69 = arith.addf %66, %cst_39 : f32
    %70 = math.rsqrt %69 : f32
    %71 = vector.broadcast %70 : f32 to vector<8x256xf32>
    %72 = arith.mulf %68, %71 : vector<8x256xf32>
    %73 = vector.extract_strided_slice %2 {offsets = [0, 1], sizes = [8, 1], strides = [1, 1]} : vector<8x9xf32> to vector<8x1xf32>
    %74 = vector.broadcast %73 : vector<8x1xf32> to vector<8x256xf32>
    %75 = arith.mulf %72, %74 : vector<8x256xf32>
    %76 = vector.extract_strided_slice %2 {offsets = [0, 2], sizes = [8, 1], strides = [1, 1]} : vector<8x9xf32> to vector<8x1xf32>
    %77 = vector.broadcast %76 : vector<8x1xf32> to vector<8x256xf32>
    %78 = arith.addf %75, %77 : vector<8x256xf32>
    %79 = vector.extract_strided_slice %2 {offsets = [0, 3], sizes = [8, 1], strides = [1, 1]} : vector<8x9xf32> to vector<8x1xf32>
    %cst_40 = arith.constant 0.000000e+00 : f32
    %80 = vector.broadcast %cst_40 : f32 to vector<8x256xf32>
    %81 = arith.cmpf ogt, %78, %80 : vector<8x256xf32>
    %82 = vector.broadcast %79 : vector<8x1xf32> to vector<8x256xf32>
    %83 = arith.mulf %82, %78 : vector<8x256xf32>
    %84 = arith.select %81, %78, %83 : vector<8x256xi1>, vector<8x256xf32>
    %c0_41 = arith.constant 0 : index
    %c0_42 = arith.constant 0 : index
    %c0_43 = arith.constant 0 : index
    %85 = vector.load %arg4[%c0_41, %c0_42, %c0_43] : memref<4x256x64xf32, #tpu.memory_space<vmem>>, vector<1x256x64xf32>
    %86 = vector.shape_cast %85 : vector<1x256x64xf32> to vector<256x64xf32>
    %cst_44 = arith.constant dense<0.000000e+00> : vector<8x64xf32>
    %87 = tpu.matmul %84, %86, %cst_44 {dimension_numbers = #tpu.dot_dimension_numbers<[1], [0], [0], [1], [0, 0, 1, 1], [], []>} : vector<8x256xf32>, vector<256x64xf32>, vector<8x64xf32> -> vector<8x64xf32>
    %c1_45 = arith.constant 1 : index
    %c0_46 = arith.constant 0 : index
    %c0_47 = arith.constant 0 : index
    %88 = vector.load %arg4[%c1_45, %c0_46, %c0_47] : memref<4x256x64xf32, #tpu.memory_space<vmem>>, vector<1x256x64xf32>
    %89 = vector.shape_cast %88 : vector<1x256x64xf32> to vector<256x64xf32>
    %cst_48 = arith.constant dense<0.000000e+00> : vector<8x64xf32>
    %90 = tpu.matmul %84, %89, %cst_48 {dimension_numbers = #tpu.dot_dimension_numbers<[1], [0], [0], [1], [0, 0, 1, 1], [], []>} : vector<8x256xf32>, vector<256x64xf32>, vector<8x64xf32> -> vector<8x64xf32>
    %91 = arith.maximumf %87, %90 : vector<8x64xf32>
    %c2_49 = arith.constant 2 : index
    %c0_50 = arith.constant 0 : index
    %c0_51 = arith.constant 0 : index
    %92 = vector.load %arg4[%c2_49, %c0_50, %c0_51] : memref<4x256x64xf32, #tpu.memory_space<vmem>>, vector<1x256x64xf32>
    %93 = vector.shape_cast %92 : vector<1x256x64xf32> to vector<256x64xf32>
    %cst_52 = arith.constant dense<0.000000e+00> : vector<8x64xf32>
    %94 = tpu.matmul %84, %93, %cst_52 {dimension_numbers = #tpu.dot_dimension_numbers<[1], [0], [0], [1], [0, 0, 1, 1], [], []>} : vector<8x256xf32>, vector<256x64xf32>, vector<8x64xf32> -> vector<8x64xf32>
    %c3_53 = arith.constant 3 : index
    %c0_54 = arith.constant 0 : index
    %c0_55 = arith.constant 0 : index
    %95 = vector.load %arg4[%c3_53, %c0_54, %c0_55] : memref<4x256x64xf32, #tpu.memory_space<vmem>>, vector<1x256x64xf32>
    %96 = vector.shape_cast %95 : vector<1x256x64xf32> to vector<256x64xf32>
    %cst_56 = arith.constant dense<0.000000e+00> : vector<8x64xf32>
    %97 = tpu.matmul %84, %96, %cst_56 {dimension_numbers = #tpu.dot_dimension_numbers<[1], [0], [0], [1], [0, 0, 1, 1], [], []>} : vector<8x256xf32>, vector<256x64xf32>, vector<8x64xf32> -> vector<8x64xf32>
    %98 = arith.maximumf %94, %97 : vector<8x64xf32>
    %99 = arith.maximumf %91, %98 : vector<8x64xf32>
    %c0_57 = arith.constant 0 : index
    %c0_58 = arith.constant 0 : index
    %100 = vector.load %arg5[%c0_57, %c0_58] : memref<72x8xf32, #tpu.memory_space<vmem>>, vector<72x8xf32>
    %cst_59 = arith.constant dense<0.000000e+00> : vector<72x64xf32>
    %101 = tpu.matmul %100, %99, %cst_59 {dimension_numbers = #tpu.dot_dimension_numbers<[1], [0], [0], [1], [0, 0, 1, 1], [], []>} : vector<72x8xf32>, vector<8x64xf32>, vector<72x64xf32> -> vector<72x64xf32>
    %cst_60 = arith.constant 0.000000e+00 : f32
    %102 = vector.broadcast %cst_60 : f32 to vector<8x64xf32>
    %103 = vector.extract_strided_slice %101 {offsets = [0, 0], sizes = [8, 64], strides = [1, 1]} : vector<72x64xf32> to vector<8x64xf32>
    %c0_61 = arith.constant 0 : index
    %c0_62 = arith.constant 0 : index
    %c0_63 = arith.constant 0 : index
    %104 = vector.load %arg6[%c0_61, %c0_62, %c0_63] : memref<9x64x64xf32, #tpu.memory_space<vmem>>, vector<1x64x64xf32>
    %105 = vector.shape_cast %104 : vector<1x64x64xf32> to vector<64x64xf32>
    %cst_64 = arith.constant dense<0.000000e+00> : vector<8x64xf32>
    %106 = tpu.matmul %103, %105, %cst_64 {dimension_numbers = #tpu.dot_dimension_numbers<[1], [0], [0], [1], [0, 0, 1, 1], [], []>} : vector<8x64xf32>, vector<64x64xf32>, vector<8x64xf32> -> vector<8x64xf32>
    %107 = arith.addf %102, %106 : vector<8x64xf32>
    %108 = vector.extract_strided_slice %101 {offsets = [8, 0], sizes = [8, 64], strides = [1, 1]} : vector<72x64xf32> to vector<8x64xf32>
    %c1_65 = arith.constant 1 : index
    %c0_66 = arith.constant 0 : index
    %c0_67 = arith.constant 0 : index
    %109 = vector.load %arg6[%c1_65, %c0_66, %c0_67] : memref<9x64x64xf32, #tpu.memory_space<vmem>>, vector<1x64x64xf32>
    %110 = vector.shape_cast %109 : vector<1x64x64xf32> to vector<64x64xf32>
    %cst_68 = arith.constant dense<0.000000e+00> : vector<8x64xf32>
    %111 = tpu.matmul %108, %110, %cst_68 {dimension_numbers = #tpu.dot_dimension_numbers<[1], [0], [0], [1], [0, 0, 1, 1], [], []>} : vector<8x64xf32>, vector<64x64xf32>, vector<8x64xf32> -> vector<8x64xf32>
    %112 = arith.addf %107, %111 : vector<8x64xf32>
    %113 = vector.extract_strided_slice %101 {offsets = [16, 0], sizes = [8, 64], strides = [1, 1]} : vector<72x64xf32> to vector<8x64xf32>
    %c2_69 = arith.constant 2 : index
    %c0_70 = arith.constant 0 : index
    %c0_71 = arith.constant 0 : index
    %114 = vector.load %arg6[%c2_69, %c0_70, %c0_71] : memref<9x64x64xf32, #tpu.memory_space<vmem>>, vector<1x64x64xf32>
    %115 = vector.shape_cast %114 : vector<1x64x64xf32> to vector<64x64xf32>
    %cst_72 = arith.constant dense<0.000000e+00> : vector<8x64xf32>
    %116 = tpu.matmul %113, %115, %cst_72 {dimension_numbers = #tpu.dot_dimension_numbers<[1], [0], [0], [1], [0, 0, 1, 1], [], []>} : vector<8x64xf32>, vector<64x64xf32>, vector<8x64xf32> -> vector<8x64xf32>
    %117 = arith.addf %112, %116 : vector<8x64xf32>
    %118 = vector.extract_strided_slice %101 {offsets = [24, 0], sizes = [8, 64], strides = [1, 1]} : vector<72x64xf32> to vector<8x64xf32>
    %c3_73 = arith.constant 3 : index
    %c0_74 = arith.constant 0 : index
    %c0_75 = arith.constant 0 : index
    %119 = vector.load %arg6[%c3_73, %c0_74, %c0_75] : memref<9x64x64xf32, #tpu.memory_space<vmem>>, vector<1x64x64xf32>
    %120 = vector.shape_cast %119 : vector<1x64x64xf32> to vector<64x64xf32>
    %cst_76 = arith.constant dense<0.000000e+00> : vector<8x64xf32>
    %121 = tpu.matmul %118, %120, %cst_76 {dimension_numbers = #tpu.dot_dimension_numbers<[1], [0], [0], [1], [0, 0, 1, 1], [], []>} : vector<8x64xf32>, vector<64x64xf32>, vector<8x64xf32> -> vector<8x64xf32>
    %122 = arith.addf %117, %121 : vector<8x64xf32>
    %123 = vector.extract_strided_slice %101 {offsets = [32, 0], sizes = [8, 64], strides = [1, 1]} : vector<72x64xf32> to vector<8x64xf32>
    %c4_77 = arith.constant 4 : index
    %c0_78 = arith.constant 0 : index
    %c0_79 = arith.constant 0 : index
    %124 = vector.load %arg6[%c4_77, %c0_78, %c0_79] : memref<9x64x64xf32, #tpu.memory_space<vmem>>, vector<1x64x64xf32>
    %125 = vector.shape_cast %124 : vector<1x64x64xf32> to vector<64x64xf32>
    %cst_80 = arith.constant dense<0.000000e+00> : vector<8x64xf32>
    %126 = tpu.matmul %123, %125, %cst_80 {dimension_numbers = #tpu.dot_dimension_numbers<[1], [0], [0], [1], [0, 0, 1, 1], [], []>} : vector<8x64xf32>, vector<64x64xf32>, vector<8x64xf32> -> vector<8x64xf32>
    %127 = arith.addf %122, %126 : vector<8x64xf32>
    %128 = vector.extract_strided_slice %101 {offsets = [40, 0], sizes = [8, 64], strides = [1, 1]} : vector<72x64xf32> to vector<8x64xf32>
    %c5_81 = arith.constant 5 : index
    %c0_82 = arith.constant 0 : index
    %c0_83 = arith.constant 0 : index
    %129 = vector.load %arg6[%c5_81, %c0_82, %c0_83] : memref<9x64x64xf32, #tpu.memory_space<vmem>>, vector<1x64x64xf32>
    %130 = vector.shape_cast %129 : vector<1x64x64xf32> to vector<64x64xf32>
    %cst_84 = arith.constant dense<0.000000e+00> : vector<8x64xf32>
    %131 = tpu.matmul %128, %130, %cst_84 {dimension_numbers = #tpu.dot_dimension_numbers<[1], [0], [0], [1], [0, 0, 1, 1], [], []>} : vector<8x64xf32>, vector<64x64xf32>, vector<8x64xf32> -> vector<8x64xf32>
    %132 = arith.addf %127, %131 : vector<8x64xf32>
    %133 = vector.extract_strided_slice %101 {offsets = [48, 0], sizes = [8, 64], strides = [1, 1]} : vector<72x64xf32> to vector<8x64xf32>
    %c6_85 = arith.constant 6 : index
    %c0_86 = arith.constant 0 : index
    %c0_87 = arith.constant 0 : index
    %134 = vector.load %arg6[%c6_85, %c0_86, %c0_87] : memref<9x64x64xf32, #tpu.memory_space<vmem>>, vector<1x64x64xf32>
    %135 = vector.shape_cast %134 : vector<1x64x64xf32> to vector<64x64xf32>
    %cst_88 = arith.constant dense<0.000000e+00> : vector<8x64xf32>
    %136 = tpu.matmul %133, %135, %cst_88 {dimension_numbers = #tpu.dot_dimension_numbers<[1], [0], [0], [1], [0, 0, 1, 1], [], []>} : vector<8x64xf32>, vector<64x64xf32>, vector<8x64xf32> -> vector<8x64xf32>
    %137 = arith.addf %132, %136 : vector<8x64xf32>
    %138 = vector.extract_strided_slice %101 {offsets = [56, 0], sizes = [8, 64], strides = [1, 1]} : vector<72x64xf32> to vector<8x64xf32>
    %c7_89 = arith.constant 7 : index
    %c0_90 = arith.constant 0 : index
    %c0_91 = arith.constant 0 : index
    %139 = vector.load %arg6[%c7_89, %c0_90, %c0_91] : memref<9x64x64xf32, #tpu.memory_space<vmem>>, vector<1x64x64xf32>
    %140 = vector.shape_cast %139 : vector<1x64x64xf32> to vector<64x64xf32>
    %cst_92 = arith.constant dense<0.000000e+00> : vector<8x64xf32>
    %141 = tpu.matmul %138, %140, %cst_92 {dimension_numbers = #tpu.dot_dimension_numbers<[1], [0], [0], [1], [0, 0, 1, 1], [], []>} : vector<8x64xf32>, vector<64x64xf32>, vector<8x64xf32> -> vector<8x64xf32>
    %142 = arith.addf %137, %141 : vector<8x64xf32>
    %143 = vector.extract_strided_slice %101 {offsets = [64, 0], sizes = [8, 64], strides = [1, 1]} : vector<72x64xf32> to vector<8x64xf32>
    %c8_93 = arith.constant 8 : index
    %c0_94 = arith.constant 0 : index
    %c0_95 = arith.constant 0 : index
    %144 = vector.load %arg6[%c8_93, %c0_94, %c0_95] : memref<9x64x64xf32, #tpu.memory_space<vmem>>, vector<1x64x64xf32>
    %145 = vector.shape_cast %144 : vector<1x64x64xf32> to vector<64x64xf32>
    %cst_96 = arith.constant dense<0.000000e+00> : vector<8x64xf32>
    %146 = tpu.matmul %143, %145, %cst_96 {dimension_numbers = #tpu.dot_dimension_numbers<[1], [0], [0], [1], [0, 0, 1, 1], [], []>} : vector<8x64xf32>, vector<64x64xf32>, vector<8x64xf32> -> vector<8x64xf32>
    %147 = arith.addf %142, %146 : vector<8x64xf32>
    %148 = vector.extract_strided_slice %2 {offsets = [0, 4], sizes = [8, 1], strides = [1, 1]} : vector<8x9xf32> to vector<8x1xf32>
    %149 = vector.broadcast %148 : vector<8x1xf32> to vector<8x64xf32>
    %150 = arith.addf %147, %149 : vector<8x64xf32>
    %151 = vector.shape_cast %150 : vector<8x64xf32> to vector<1x8x64xf32>
    %cst_97 = arith.constant dense<0.000000e+00> : vector<1xf32>
    %152 = vector.multi_reduction <add>, %151, %cst_97 [1, 2] : vector<1x8x64xf32> to vector<1xf32>
    %153 = vector.shape_cast %152 : vector<1xf32> to vector<1x1x1xf32>
    %154 = vector.extract %153[0, 0, 0] : f32 from vector<1x1x1xf32>
    %cst_98 = arith.constant 5.120000e+02 : f32
    %155 = arith.divf %154, %cst_98 : f32
    %156 = vector.broadcast %155 : f32 to vector<8x64xf32>
    %157 = arith.subf %150, %156 : vector<8x64xf32>
    %158 = arith.mulf %157, %157 : vector<8x64xf32>
    %159 = vector.shape_cast %158 : vector<8x64xf32> to vector<1x8x64xf32>
    %cst_99 = arith.constant dense<0.000000e+00> : vector<1xf32>
    %160 = vector.multi_reduction <add>, %159, %cst_99 [1, 2] : vector<1x8x64xf32> to vector<1xf32>
    %161 = vector.shape_cast %160 : vector<1xf32> to vector<1x1x1xf32>
    %162 = vector.extract %161[0, 0, 0] : f32 from vector<1x1x1xf32>
    %cst_100 = arith.constant 5.120000e+02 : f32
    %163 = arith.divf %162, %cst_100 : f32
    %164 = vector.broadcast %155 : f32 to vector<8x64xf32>
    %165 = arith.subf %150, %164 : vector<8x64xf32>
    %cst_101 = arith.constant 9.99999974E-6 : f32
    %166 = arith.addf %163, %cst_101 : f32
    %167 = math.rsqrt %166 : f32
    %168 = vector.broadcast %167 : f32 to vector<8x64xf32>
    %169 = arith.mulf %165, %168 : vector<8x64xf32>
    %170 = vector.extract_strided_slice %2 {offsets = [0, 5], sizes = [8, 1], strides = [1, 1]} : vector<8x9xf32> to vector<8x1xf32>
    %171 = vector.broadcast %170 : vector<8x1xf32> to vector<8x64xf32>
    %172 = arith.mulf %169, %171 : vector<8x64xf32>
    %173 = vector.extract_strided_slice %2 {offsets = [0, 6], sizes = [8, 1], strides = [1, 1]} : vector<8x9xf32> to vector<8x1xf32>
    %174 = vector.broadcast %173 : vector<8x1xf32> to vector<8x64xf32>
    %175 = arith.addf %172, %174 : vector<8x64xf32>
    %176 = vector.extract_strided_slice %2 {offsets = [0, 7], sizes = [8, 1], strides = [1, 1]} : vector<8x9xf32> to vector<8x1xf32>
    %cst_102 = arith.constant 0.000000e+00 : f32
    %177 = vector.broadcast %cst_102 : f32 to vector<8x64xf32>
    %178 = arith.cmpf ogt, %175, %177 : vector<8x64xf32>
    %179 = vector.broadcast %176 : vector<8x1xf32> to vector<8x64xf32>
    %180 = arith.mulf %179, %175 : vector<8x64xf32>
    %181 = arith.select %178, %175, %180 : vector<8x64xi1>, vector<8x64xf32>
    %c0_103 = arith.constant 0 : index
    %c0_104 = arith.constant 0 : index
    %182 = vector.load %arg7[%c0_103, %c0_104] : memref<128x8xf32, #tpu.memory_space<vmem>>, vector<128x8xf32>
    %cst_105 = arith.constant dense<0.000000e+00> : vector<128x64xf32>
    %183 = tpu.matmul %182, %181, %cst_105 {dimension_numbers = #tpu.dot_dimension_numbers<[1], [0], [0], [1], [0, 0, 1, 1], [], []>} : vector<128x8xf32>, vector<8x64xf32>, vector<128x64xf32> -> vector<128x64xf32>
    %cst_106 = arith.constant 0.000000e+00 : f32
    %184 = vector.broadcast %cst_106 : f32 to vector<8x256xf32>
    %185 = vector.extract_strided_slice %183 {offsets = [0, 0], sizes = [8, 64], strides = [1, 1]} : vector<128x64xf32> to vector<8x64xf32>
    %c0_107 = arith.constant 0 : index
    %c0_108 = arith.constant 0 : index
    %c0_109 = arith.constant 0 : index
    %186 = vector.load %arg8[%c0_107, %c0_108, %c0_109] : memref<16x64x256xf32, #tpu.memory_space<vmem>>, vector<1x64x256xf32>
    %187 = vector.shape_cast %186 : vector<1x64x256xf32> to vector<64x256xf32>
    %cst_110 = arith.constant dense<0.000000e+00> : vector<8x256xf32>
    %188 = tpu.matmul %185, %187, %cst_110 {dimension_numbers = #tpu.dot_dimension_numbers<[1], [0], [0], [1], [0, 0, 1, 1], [], []>} : vector<8x64xf32>, vector<64x256xf32>, vector<8x256xf32> -> vector<8x256xf32>
    %189 = arith.addf %184, %188 : vector<8x256xf32>
    %190 = vector.extract_strided_slice %183 {offsets = [8, 0], sizes = [8, 64], strides = [1, 1]} : vector<128x64xf32> to vector<8x64xf32>
    %c1_111 = arith.constant 1 : index
    %c0_112 = arith.constant 0 : index
    %c0_113 = arith.constant 0 : index
    %191 = vector.load %arg8[%c1_111, %c0_112, %c0_113] : memref<16x64x256xf32, #tpu.memory_space<vmem>>, vector<1x64x256xf32>
    %192 = vector.shape_cast %191 : vector<1x64x256xf32> to vector<64x256xf32>
    %cst_114 = arith.constant dense<0.000000e+00> : vector<8x256xf32>
    %193 = tpu.matmul %190, %192, %cst_114 {dimension_numbers = #tpu.dot_dimension_numbers<[1], [0], [0], [1], [0, 0, 1, 1], [], []>} : vector<8x64xf32>, vector<64x256xf32>, vector<8x256xf32> -> vector<8x256xf32>
    %194 = arith.addf %189, %193 : vector<8x256xf32>
    %195 = vector.extract_strided_slice %183 {offsets = [16, 0], sizes = [8, 64], strides = [1, 1]} : vector<128x64xf32> to vector<8x64xf32>
    %c2_115 = arith.constant 2 : index
    %c0_116 = arith.constant 0 : index
    %c0_117 = arith.constant 0 : index
    %196 = vector.load %arg8[%c2_115, %c0_116, %c0_117] : memref<16x64x256xf32, #tpu.memory_space<vmem>>, vector<1x64x256xf32>
    %197 = vector.shape_cast %196 : vector<1x64x256xf32> to vector<64x256xf32>
    %cst_118 = arith.constant dense<0.000000e+00> : vector<8x256xf32>
    %198 = tpu.matmul %195, %197, %cst_118 {dimension_numbers = #tpu.dot_dimension_numbers<[1], [0], [0], [1], [0, 0, 1, 1], [], []>} : vector<8x64xf32>, vector<64x256xf32>, vector<8x256xf32> -> vector<8x256xf32>
    %199 = arith.addf %194, %198 : vector<8x256xf32>
    %200 = vector.extract_strided_slice %183 {offsets = [24, 0], sizes = [8, 64], strides = [1, 1]} : vector<128x64xf32> to vector<8x64xf32>
    %c3_119 = arith.constant 3 : index
    %c0_120 = arith.constant 0 : index
    %c0_121 = arith.constant 0 : index
    %201 = vector.load %arg8[%c3_119, %c0_120, %c0_121] : memref<16x64x256xf32, #tpu.memory_space<vmem>>, vector<1x64x256xf32>
    %202 = vector.shape_cast %201 : vector<1x64x256xf32> to vector<64x256xf32>
    %cst_122 = arith.constant dense<0.000000e+00> : vector<8x256xf32>
    %203 = tpu.matmul %200, %202, %cst_122 {dimension_numbers = #tpu.dot_dimension_numbers<[1], [0], [0], [1], [0, 0, 1, 1], [], []>} : vector<8x64xf32>, vector<64x256xf32>, vector<8x256xf32> -> vector<8x256xf32>
    %204 = arith.addf %199, %203 : vector<8x256xf32>
    %205 = vector.extract_strided_slice %183 {offsets = [32, 0], sizes = [8, 64], strides = [1, 1]} : vector<128x64xf32> to vector<8x64xf32>
    %c4_123 = arith.constant 4 : index
    %c0_124 = arith.constant 0 : index
    %c0_125 = arith.constant 0 : index
    %206 = vector.load %arg8[%c4_123, %c0_124, %c0_125] : memref<16x64x256xf32, #tpu.memory_space<vmem>>, vector<1x64x256xf32>
    %207 = vector.shape_cast %206 : vector<1x64x256xf32> to vector<64x256xf32>
    %cst_126 = arith.constant dense<0.000000e+00> : vector<8x256xf32>
    %208 = tpu.matmul %205, %207, %cst_126 {dimension_numbers = #tpu.dot_dimension_numbers<[1], [0], [0], [1], [0, 0, 1, 1], [], []>} : vector<8x64xf32>, vector<64x256xf32>, vector<8x256xf32> -> vector<8x256xf32>
    %209 = arith.addf %204, %208 : vector<8x256xf32>
    %210 = vector.extract_strided_slice %183 {offsets = [40, 0], sizes = [8, 64], strides = [1, 1]} : vector<128x64xf32> to vector<8x64xf32>
    %c5_127 = arith.constant 5 : index
    %c0_128 = arith.constant 0 : index
    %c0_129 = arith.constant 0 : index
    %211 = vector.load %arg8[%c5_127, %c0_128, %c0_129] : memref<16x64x256xf32, #tpu.memory_space<vmem>>, vector<1x64x256xf32>
    %212 = vector.shape_cast %211 : vector<1x64x256xf32> to vector<64x256xf32>
    %cst_130 = arith.constant dense<0.000000e+00> : vector<8x256xf32>
    %213 = tpu.matmul %210, %212, %cst_130 {dimension_numbers = #tpu.dot_dimension_numbers<[1], [0], [0], [1], [0, 0, 1, 1], [], []>} : vector<8x64xf32>, vector<64x256xf32>, vector<8x256xf32> -> vector<8x256xf32>
    %214 = arith.addf %209, %213 : vector<8x256xf32>
    %215 = vector.extract_strided_slice %183 {offsets = [48, 0], sizes = [8, 64], strides = [1, 1]} : vector<128x64xf32> to vector<8x64xf32>
    %c6_131 = arith.constant 6 : index
    %c0_132 = arith.constant 0 : index
    %c0_133 = arith.constant 0 : index
    %216 = vector.load %arg8[%c6_131, %c0_132, %c0_133] : memref<16x64x256xf32, #tpu.memory_space<vmem>>, vector<1x64x256xf32>
    %217 = vector.shape_cast %216 : vector<1x64x256xf32> to vector<64x256xf32>
    %cst_134 = arith.constant dense<0.000000e+00> : vector<8x256xf32>
    %218 = tpu.matmul %215, %217, %cst_134 {dimension_numbers = #tpu.dot_dimension_numbers<[1], [0], [0], [1], [0, 0, 1, 1], [], []>} : vector<8x64xf32>, vector<64x256xf32>, vector<8x256xf32> -> vector<8x256xf32>
    %219 = arith.addf %214, %218 : vector<8x256xf32>
    %220 = vector.extract_strided_slice %183 {offsets = [56, 0], sizes = [8, 64], strides = [1, 1]} : vector<128x64xf32> to vector<8x64xf32>
    %c7_135 = arith.constant 7 : index
    %c0_136 = arith.constant 0 : index
    %c0_137 = arith.constant 0 : index
    %221 = vector.load %arg8[%c7_135, %c0_136, %c0_137] : memref<16x64x256xf32, #tpu.memory_space<vmem>>, vector<1x64x256xf32>
    %222 = vector.shape_cast %221 : vector<1x64x256xf32> to vector<64x256xf32>
    %cst_138 = arith.constant dense<0.000000e+00> : vector<8x256xf32>
    %223 = tpu.matmul %220, %222, %cst_138 {dimension_numbers = #tpu.dot_dimension_numbers<[1], [0], [0], [1], [0, 0, 1, 1], [], []>} : vector<8x64xf32>, vector<64x256xf32>, vector<8x256xf32> -> vector<8x256xf32>
    %224 = arith.addf %219, %223 : vector<8x256xf32>
    %225 = vector.extract_strided_slice %183 {offsets = [64, 0], sizes = [8, 64], strides = [1, 1]} : vector<128x64xf32> to vector<8x64xf32>
    %c8_139 = arith.constant 8 : index
    %c0_140 = arith.constant 0 : index
    %c0_141 = arith.constant 0 : index
    %226 = vector.load %arg8[%c8_139, %c0_140, %c0_141] : memref<16x64x256xf32, #tpu.memory_space<vmem>>, vector<1x64x256xf32>
    %227 = vector.shape_cast %226 : vector<1x64x256xf32> to vector<64x256xf32>
    %cst_142 = arith.constant dense<0.000000e+00> : vector<8x256xf32>
    %228 = tpu.matmul %225, %227, %cst_142 {dimension_numbers = #tpu.dot_dimension_numbers<[1], [0], [0], [1], [0, 0, 1, 1], [], []>} : vector<8x64xf32>, vector<64x256xf32>, vector<8x256xf32> -> vector<8x256xf32>
    %229 = arith.addf %224, %228 : vector<8x256xf32>
    %230 = vector.extract_strided_slice %183 {offsets = [72, 0], sizes = [8, 64], strides = [1, 1]} : vector<128x64xf32> to vector<8x64xf32>
    %c9 = arith.constant 9 : index
    %c0_143 = arith.constant 0 : index
    %c0_144 = arith.constant 0 : index
    %231 = vector.load %arg8[%c9, %c0_143, %c0_144] : memref<16x64x256xf32, #tpu.memory_space<vmem>>, vector<1x64x256xf32>
    %232 = vector.shape_cast %231 : vector<1x64x256xf32> to vector<64x256xf32>
    %cst_145 = arith.constant dense<0.000000e+00> : vector<8x256xf32>
    %233 = tpu.matmul %230, %232, %cst_145 {dimension_numbers = #tpu.dot_dimension_numbers<[1], [0], [0], [1], [0, 0, 1, 1], [], []>} : vector<8x64xf32>, vector<64x256xf32>, vector<8x256xf32> -> vector<8x256xf32>
    %234 = arith.addf %229, %233 : vector<8x256xf32>
    %235 = vector.extract_strided_slice %183 {offsets = [80, 0], sizes = [8, 64], strides = [1, 1]} : vector<128x64xf32> to vector<8x64xf32>
    %c10 = arith.constant 10 : index
    %c0_146 = arith.constant 0 : index
    %c0_147 = arith.constant 0 : index
    %236 = vector.load %arg8[%c10, %c0_146, %c0_147] : memref<16x64x256xf32, #tpu.memory_space<vmem>>, vector<1x64x256xf32>
    %237 = vector.shape_cast %236 : vector<1x64x256xf32> to vector<64x256xf32>
    %cst_148 = arith.constant dense<0.000000e+00> : vector<8x256xf32>
    %238 = tpu.matmul %235, %237, %cst_148 {dimension_numbers = #tpu.dot_dimension_numbers<[1], [0], [0], [1], [0, 0, 1, 1], [], []>} : vector<8x64xf32>, vector<64x256xf32>, vector<8x256xf32> -> vector<8x256xf32>
    %239 = arith.addf %234, %238 : vector<8x256xf32>
    %240 = vector.extract_strided_slice %183 {offsets = [88, 0], sizes = [8, 64], strides = [1, 1]} : vector<128x64xf32> to vector<8x64xf32>
    %c11 = arith.constant 11 : index
    %c0_149 = arith.constant 0 : index
    %c0_150 = arith.constant 0 : index
    %241 = vector.load %arg8[%c11, %c0_149, %c0_150] : memref<16x64x256xf32, #tpu.memory_space<vmem>>, vector<1x64x256xf32>
    %242 = vector.shape_cast %241 : vector<1x64x256xf32> to vector<64x256xf32>
    %cst_151 = arith.constant dense<0.000000e+00> : vector<8x256xf32>
    %243 = tpu.matmul %240, %242, %cst_151 {dimension_numbers = #tpu.dot_dimension_numbers<[1], [0], [0], [1], [0, 0, 1, 1], [], []>} : vector<8x64xf32>, vector<64x256xf32>, vector<8x256xf32> -> vector<8x256xf32>
    %244 = arith.addf %239, %243 : vector<8x256xf32>
    %245 = vector.extract_strided_slice %183 {offsets = [96, 0], sizes = [8, 64], strides = [1, 1]} : vector<128x64xf32> to vector<8x64xf32>
    %c12 = arith.constant 12 : index
    %c0_152 = arith.constant 0 : index
    %c0_153 = arith.constant 0 : index
    %246 = vector.load %arg8[%c12, %c0_152, %c0_153] : memref<16x64x256xf32, #tpu.memory_space<vmem>>, vector<1x64x256xf32>
    %247 = vector.shape_cast %246 : vector<1x64x256xf32> to vector<64x256xf32>
    %cst_154 = arith.constant dense<0.000000e+00> : vector<8x256xf32>
    %248 = tpu.matmul %245, %247, %cst_154 {dimension_numbers = #tpu.dot_dimension_numbers<[1], [0], [0], [1], [0, 0, 1, 1], [], []>} : vector<8x64xf32>, vector<64x256xf32>, vector<8x256xf32> -> vector<8x256xf32>
    %249 = arith.addf %244, %248 : vector<8x256xf32>
    %250 = vector.extract_strided_slice %183 {offsets = [104, 0], sizes = [8, 64], strides = [1, 1]} : vector<128x64xf32> to vector<8x64xf32>
    %c13 = arith.constant 13 : index
    %c0_155 = arith.constant 0 : index
    %c0_156 = arith.constant 0 : index
    %251 = vector.load %arg8[%c13, %c0_155, %c0_156] : memref<16x64x256xf32, #tpu.memory_space<vmem>>, vector<1x64x256xf32>
    %252 = vector.shape_cast %251 : vector<1x64x256xf32> to vector<64x256xf32>
    %cst_157 = arith.constant dense<0.000000e+00> : vector<8x256xf32>
    %253 = tpu.matmul %250, %252, %cst_157 {dimension_numbers = #tpu.dot_dimension_numbers<[1], [0], [0], [1], [0, 0, 1, 1], [], []>} : vector<8x64xf32>, vector<64x256xf32>, vector<8x256xf32> -> vector<8x256xf32>
    %254 = arith.addf %249, %253 : vector<8x256xf32>
    %255 = vector.extract_strided_slice %183 {offsets = [112, 0], sizes = [8, 64], strides = [1, 1]} : vector<128x64xf32> to vector<8x64xf32>
    %c14 = arith.constant 14 : index
    %c0_158 = arith.constant 0 : index
    %c0_159 = arith.constant 0 : index
    %256 = vector.load %arg8[%c14, %c0_158, %c0_159] : memref<16x64x256xf32, #tpu.memory_space<vmem>>, vector<1x64x256xf32>
    %257 = vector.shape_cast %256 : vector<1x64x256xf32> to vector<64x256xf32>
    %cst_160 = arith.constant dense<0.000000e+00> : vector<8x256xf32>
    %258 = tpu.matmul %255, %257, %cst_160 {dimension_numbers = #tpu.dot_dimension_numbers<[1], [0], [0], [1], [0, 0, 1, 1], [], []>} : vector<8x64xf32>, vector<64x256xf32>, vector<8x256xf32> -> vector<8x256xf32>
    %259 = arith.addf %254, %258 : vector<8x256xf32>
    %260 = vector.extract_strided_slice %183 {offsets = [120, 0], sizes = [8, 64], strides = [1, 1]} : vector<128x64xf32> to vector<8x64xf32>
    %c15 = arith.constant 15 : index
    %c0_161 = arith.constant 0 : index
    %c0_162 = arith.constant 0 : index
    %261 = vector.load %arg8[%c15, %c0_161, %c0_162] : memref<16x64x256xf32, #tpu.memory_space<vmem>>, vector<1x64x256xf32>
    %262 = vector.shape_cast %261 : vector<1x64x256xf32> to vector<64x256xf32>
    %cst_163 = arith.constant dense<0.000000e+00> : vector<8x256xf32>
    %263 = tpu.matmul %260, %262, %cst_163 {dimension_numbers = #tpu.dot_dimension_numbers<[1], [0], [0], [1], [0, 0, 1, 1], [], []>} : vector<8x64xf32>, vector<64x256xf32>, vector<8x256xf32> -> vector<8x256xf32>
    %264 = arith.addf %259, %263 : vector<8x256xf32>
    %265 = vector.extract_strided_slice %2 {offsets = [0, 8], sizes = [8, 1], strides = [1, 1]} : vector<8x9xf32> to vector<8x1xf32>
    %266 = vector.broadcast %265 : vector<8x1xf32> to vector<8x256xf32>
    %267 = arith.addf %264, %266 : vector<8x256xf32>
    %c0_164 = arith.constant 0 : index
    %c0_165 = arith.constant 0 : index
    %c0_166 = arith.constant 0 : index
    %268 = vector.load %arg10[%c0_164, %c0_165, %c0_166] : memref<1x8x256xf32, #tpu.memory_space<vmem>>, vector<1x8x256xf32>
    %269 = vector.shape_cast %268 : vector<1x8x256xf32> to vector<8x256xf32>
    %270 = vector.shape_cast %267 : vector<8x256xf32> to vector<1x8x256xf32>
    tpu.vector_store %arg10[%c0_164, %c0_165, %c0_166], %270 {strides = array<i32>} : memref<1x8x256xf32, #tpu.memory_space<vmem>>, vector<1x8x256xf32>,
    return
  }
  func.func @transform_0(%arg0: i32) -> (i32, i32, i32) {
    %c0_i32 = arith.constant 0 : i32
    %c0_i32_0 = arith.constant 0 : i32
    %c0_i32_1 = arith.constant 0 : i32
    return %arg0, %c0_i32, %c0_i32_0 : i32, i32, i32
  }
  func.func @transform_1(%arg0: i32) -> (i32, i32) {
    %c0_i32 = arith.constant 0 : i32
    %c0_i32_0 = arith.constant 0 : i32
    %c0_i32_1 = arith.constant 0 : i32
    return %c0_i32, %c0_i32_0 : i32, i32
  }
  func.func @transform_2(%arg0: i32) -> (i32, i32, i32) {
    %c0_i32 = arith.constant 0 : i32
    %c0_i32_0 = arith.constant 0 : i32
    %c0_i32_1 = arith.constant 0 : i32
    %c0_i32_2 = arith.constant 0 : i32
    return %c0_i32, %c0_i32_0, %c0_i32_1 : i32, i32, i32
  }
  func.func @transform_3(%arg0: i32) -> (i32, i32, i32) {
    %c0_i32 = arith.constant 0 : i32
    %c0_i32_0 = arith.constant 0 : i32
    %c0_i32_1 = arith.constant 0 : i32
    %c0_i32_2 = arith.constant 0 : i32
    return %c0_i32, %c0_i32_0, %c0_i32_1 : i32, i32, i32
  }
  func.func @transform_4(%arg0: i32) -> (i32, i32) {
    %c0_i32 = arith.constant 0 : i32
    %c0_i32_0 = arith.constant 0 : i32
    %c0_i32_1 = arith.constant 0 : i32
    return %c0_i32, %c0_i32_0 : i32, i32
  }
  func.func @transform_5(%arg0: i32) -> (i32, i32, i32) {
    %c0_i32 = arith.constant 0 : i32
    %c0_i32_0 = arith.constant 0 : i32
    %c0_i32_1 = arith.constant 0 : i32
    %c0_i32_2 = arith.constant 0 : i32
    return %c0_i32, %c0_i32_0, %c0_i32_1 : i32, i32, i32
  }
  func.func @transform_6(%arg0: i32) -> (i32, i32) {
    %c0_i32 = arith.constant 0 : i32
    %c0_i32_0 = arith.constant 0 : i32
    %c0_i32_1 = arith.constant 0 : i32
    return %c0_i32, %c0_i32_0 : i32, i32
  }
  func.func @transform_7(%arg0: i32) -> (i32, i32, i32) {
    %c0_i32 = arith.constant 0 : i32
    %c0_i32_0 = arith.constant 0 : i32
    %c0_i32_1 = arith.constant 0 : i32
    %c0_i32_2 = arith.constant 0 : i32
    return %c0_i32, %c0_i32_0, %c0_i32_1 : i32, i32, i32
  }
  func.func @transform_8(%arg0: i32) -> (i32, i32) {
    %c0_i32 = arith.constant 0 : i32
    %c0_i32_0 = arith.constant 0 : i32
    %c0_i32_1 = arith.constant 0 : i32
    return %c0_i32, %c0_i32_0 : i32, i32
  }
  func.func @transform_9(%arg0: i32) -> (i32, i32, i32) {
    %c0_i32 = arith.constant 0 : i32
    %c0_i32_0 = arith.constant 0 : i32
    %c0_i32_1 = arith.constant 0 : i32
    return %arg0, %c0_i32, %c0_i32_0 : i32, i32, i32
  }
}

</mosaic_0001>

<bundles_post_ra>
// kernel: tpu_custom_call.1
= control target key start
LH: loop header
LB: loop body
LE: loop exit
PB: predicated region body
PF: predicated region fallthrough
CT: control target
= control target key end

     0   :  { %s5441_s0 = inlined_call_operand.hbm [shape: f32[2,4,256], index: 0, kind: input, shape index: {}]   ;;  %s5442_s1 = inlined_call_operand.vmem [shape: f32[72,4], index: 1, kind: input, shape index: {}]   ;;  %s5443_s2 = inlined_call_operand.hbm [shape: f32[9,256,256], index: 2, kind: input, shape index: {}]   ;;  %s5444_s3 = inlined_call_operand.vmem [shape: f32[4,256,64], index: 3, kind: input, shape index: {}]   ;;  %s5445_s4 = inlined_call_operand.vmem [shape: f32[72,8], index: 4, kind: input, shape index: {}]   ;;  %s5446_s5 = inlined_call_operand.hbm [shape: f32[9,64,64], index: 5, kind: input, shape index: {}]   ;;  %s5447_s6 = inlined_call_operand.vmem [shape: f32[128,8], index: 6, kind: input, shape index: {}]   ;;  %s5448_s7 = inlined_call_operand.hbm [shape: f32[16,64,256], index: 7, kind: input, shape index: {}]   ;;  %s5449_s8 = inlined_call_operand.hbm [shape: f32[8,9], index: 8, kind: input, shape index: {}]   ;;  %s5450_s9 = inlined_call_operand.hbm [shape: f32[2,8,256], index: 9, kind: output, shape index: {}]  }
   0x1   :  { %5451 = sst [smem:[#allocation16_spill]] %s5443_s2 }
   0x2   :  { %5452 = sst [smem:[#allocation17_spill]] %s5446_s5 }
   0x3   :  { %5453 = sst [smem:[#allocation18_spill]] %s5448_s7 }
   0x4   :  { %5454 = sst [smem:[#allocation19_spill]] %s5449_s8 }
   0x5   :  { %14 = vsyncpa [#allocation3], 0 }
   0x6   :  { %16 = vsyncpa [#allocation3 + $0x1], 0 }
   0x7   :  { %17 = vsyncpa [#allocation6], 0 }
   0x8   :  { %18 = vsyncpa [#allocation9], 0 }
   0x9   :  { %19 = vsyncpa [#allocation4], 0 }
   0xa   :  { %21 = vsyncpa [#allocation4 + $0x1], 0  ;;  %s4593_s30 = smov 0   ;;  %s4595_s10 = smov 0  }
   0xb   :  { %s4597_s11 = smov 0   ;;  %s4599_s12 = smov 0  }
   0xc LB: > { %s5455_s2 = sld [smem:[#allocation16_spill]]  ;;  %s4617_s16 = sadd.s32 4294967295, %s4522_s12   ;;  %s4522_s12 = sphi %s4599_s12, %s5470_s12   ;;  %s4518_s11 = sphi %s4597_s11, %s5469_s11   ;;  %s4514_s10 = sphi %s4595_s10, %s5468_s10   ;;  %s4510_s30 = sphi %s4593_s30, %s5467_s30  }
   0xd   : > { %p3955_p0 = scmp.ge.s32.totalorder %s4522_s12, 1  ;;  %p48_p1 = scmp.eq.s32.totalorder %s4617_s16, 0 }
   0xe   : > { %p252_p2 = scmp.lt.s32.totalorder %s4522_s12, 3  ;;  %s4524_s18 = smov [#allocation5]  }
   0xf   : > { %s268_s19 = sshll.u32 %s4524_s18, 4  ;;  %s5457_s7 = sld [smem:[#allocation18_spill]]  ;;  %s269_s19 = int_to_ptr.vmem [resolvable:$true] %s268_s19 }
  0x10   : > { %p4622_p3 = pnand %p3955_p0, %p252_p2  ;;  %s5459_s5 = sld [smem:[#allocation17_spill]] }
  0x11   : > { %s4525_s27 = smov [#allocation8]   ;;  %s4526_s29 = smov 256  }
  0x12   : > { %s266_s15 = sshll.u32 %s5455_s2, 4  ;;  %p4196_p4 = pneg %p4622_p3  ;;  %s267_s15 = int_to_ptr.hbm [resolvable:$true] %s266_s15 }
  0x13   : > { %s305_s28 = sshll.u32 %s4525_s27, 4  ;;  %s4527_s13 = smov 16   ;;  %s306_s28 = int_to_ptr.vmem [resolvable:$true] %s305_s28 }
  0x14   : > { %p4634_p6 = pnand %p4196_p4, %p48_p1  ;;  %s4528_s14 = smov [#allocation7]  }
  0x15   : > { %s303_s22 = sshll.u32 %s5457_s7, 4  ;;  %s288_s18 = sshll.u32 %s4528_s14, 4  ;;  %s304_s22 = int_to_ptr.hbm [resolvable:$true] %s303_s22  ;;  %s289_s18 = int_to_ptr.vmem [resolvable:$true] %s288_s18 }
  0x16   : > { %s286_s26 = sshll.u32 %s5459_s5, 4  ;;  %s5460_s8 = sld [smem:[#allocation19_spill]]  ;;  %s287_s26 = int_to_ptr.hbm [resolvable:$true] %s286_s26 }
  0x17   : > { %4199 = dma.hbm_to_vmem [thread:$0]  (!%p4634_p6), %s267_s15, 73728, %s269_s19, [#allocation6], %s4526_s29, %s4526_s29, %s4527_s13  }
  0x18   : > { %4205 = dma.hbm_to_vmem [thread:$0]  (!%p4634_p6), %s304_s22, 32768, %s306_s28, [#allocation9], %s4526_s29, %s4526_s29, %s4527_s13  }
  0x19   : > { %s4529_s15 = smov 128   ;;  %s4530_s19 = smov 8  }
  0x1a   : > { %4202 = dma.hbm_to_vmem [thread:$0]  (!%p4634_p6), %s287_s26, 9216, %s289_s18, [#allocation6], %s4529_s15, %s4529_s15, %s4530_s19  }
  0x1b   : > { %s4531_s22 = smov [#allocation10]   ;;  %s3954_s27 = sadd.s32 4294967294, %s4522_s12  }
  0x1c   : > { %s318_s24 = sshll.u32 %s5460_s8, 4  ;;  %s320_s25 = sshll.u32 %s4531_s22, 4  ;;  %s319_s24 = int_to_ptr.hbm [resolvable:$true] %s318_s24  ;;  %s321_s25 = int_to_ptr.vmem [resolvable:$true] %s320_s25 }
  0x1d   : > { %4208 = dma.hbm_to_vmem [thread:$0]  (!%p4634_p6), %s319_s24, 128, %s321_s25, [#allocation9]  }
  0x1e   : > { %s4654_s28 = sadd.s32 1, %s4522_s12   ;;  %s34_s13 = sadd.s32 1, %s4518_s11 }
  0x1f   : > { %s31_s29 = ssub.s32 %s4522_s12, %s4654_s28  ;;  %p41_p8 = scmp.ne.s32.totalorder %s4518_s11, %s4514_s10 }
  0x20   : > { %p32_p7 = scmp.eq.s32.totalorder %s31_s29, 0  ;;  %p42_p9 = scmp.eq.s32.totalorder %s4522_s12, 0 }
  0x21   : > { %p47_p10 = scmp.ne.s32.totalorder %s4514_s10, %s4510_s30  ;;  %p239_p13 = scmp.eq.s32.totalorder %s4617_s16, 1 }
  0x22   : > { %s4665_s26 = scalar_select %p32_p7, %s4518_s11, %s34_s13  }
  0x23   : > { %p4667_p11 = por %p42_p9, %p41_p8  ;;  %p4673_p12 = por %p48_p1, %p47_p10 }
  0x24   : > { %p245_p0 = scmp.eq.s32.totalorder %s3954_s27, 1  ;;  %p4221_p2 = scmp.lt.s32.totalorder %s4522_s12, 2 }
  0x25   : > { %s331_s18 = sand.u32 1, %s4518_s11   ;;  %p4680_p4 = por %p239_p13, %p41_p8 }
  0x26   : > { %p4684_p6 = por %p245_p0, %p47_p10  ;;  %s3961_s24 = sshll.u32 %s331_s18, 3 }
  0x27   : > { %s4158_s15 = sshll.u32 %s4522_s12, 3  ;;  %s335_s29 = scalar_lea.vmem [#allocation2], %s3961_s24 }
  0x28   : > { %s340_s25 = scalar_lea.hbm %s5441_s0, %s4158_s15  ;;  %s344_s13 = sshll.u32 %s335_s29, 4  ;;  %s345_s13 = int_to_ptr.vmem [resolvable:$true] %s344_s13 }
  0x29   : > { %s342_s2 = sshll.u32 %s340_s25, 4  ;;  %p4694_p7 = pnand %p4221_p2, %p4667_p11  ;;  %s343_s2 = int_to_ptr.hbm [resolvable:$true] %s342_s2 }
  0x2a   : > { %s332_s5 = scalar_lea.sflag [#allocation3], %s331_s18  ;;  %s4418_s7 = sshra.s32 %s343_s2, 4  ;;  %s4419_s7 = int_to_ptr.hbm [resolvable:$true] %s4418_s7 }
  0x2b   : > { %s4420_s8 = scalar_lea.hbm %s4419_s7, 8  ;;  %p4422_p9 = pneg %p4694_p7 }
  0x2c   : > { %p4421_p8 = scmp.ne.s32.totalorder %s4419_s7, %s4420_s8  ;;  %s4425_s19 = scalar_lea.hbm %s5441_s0, 16 }
  0x2d   : > { %p4426_p11 = scmp.lt.s32.totalorder %s4419_s7, %s5441_s0  ;;  %p4427_p0 = scmp.lt.s32.totalorder %s4425_s19, %s4420_s8 }
  0x2e   : > { %p4423_p10 = pnand %p4422_p9, %p4421_p8 }
  0x2f   : > { %p4428_p2 = por %p4427_p0, %p4426_p11 }
  0x30   : > { %p4424_p13 = pneg %p4423_p10 }
  0x32   : > { %p4429_p5 = pnand %p4428_p2, %p4424_p13 }
  0x34   : > { %4432 = shalt.err (!%p4429_p5)
}
  0x35   : > { %4212 = dma.hbm_to_vmem [thread:$0]  (!%p4694_p7), %s343_s2, 128, %s345_s13, %s332_s5  }
  0x36   : > { %353 = sbr.rel (%p4622_p3) target bundleno = 2395 (0x95b), region = 56  ;;  %s4711_s18 = sand.u32 (!%p4622_p3), 1, %s4514_s10  }
  0x37   : > { %s3965_s25 = sshll.u32 (!%p4622_p3), %s4711_s18, 3  ;;  %s356_s29 = scalar_lea.sflag (!%p4622_p3), [#allocation3], %s4711_s18 }
  0x38   : > { %s359_s24 = scalar_lea.vmem (!%p4622_p3), [#allocation2], %s3965_s25 }
  0x3b   : > { %4493 = dma.done.wait (%p4673_p12), %s356_s29, 128  }
  0x3c   : > { %4495 = vsyncadd (%p4673_p12), %s356_s29, 4294967168 }
  0x3d   : > { %4497 = dma.done.wait (%p48_p1), [#allocation6], 82944  }
  0x3e   : > { %4499 = vsyncadd (%p48_p1), [#allocation6], 4294884352 }
  0x3f   : > { %4501 = dma.done.wait (%p48_p1), [#allocation9], 32896  }
  0x40   : > { %4503 = vsyncadd (%p48_p1), [#allocation9], 4294934400  ;;  %v415_v0 = vld [vmem:[%s359_s24] sm:$0xff]  ;;  %vm458_vm0 = vcmask 1043456   ;;  %v417_v1 = vld [vmem:[%s5442_s1] sm:$0xff]  ;;  %vm430_vm1 = vcmask 31744  }
  0x41   : > { %427 = vst [vmem:[#allocation1] ss:$2 sm:$0xff] %v415_v0  ;;  %v581_v4 = vld [vmem:[#allocation5 + $0xf0] sm:$0xff]  ;;  %v579_v6 = vld [vmem:[#allocation5 + $0xe0] sm:$0xff]  ;;  %v419_v31 = vld [vmem:[%s5442_s1 + $0x10] sm:$0xff]  ;;  %vm2260_vm8 = vcmask 64512  }
  0x42   : > { %v613_v5 = vld [vmem:[#allocation5 + $0x1f0] sm:$0xff]  ;;  %v611_v7 = vld [vmem:[#allocation5 + $0x1e0] sm:$0xff]  ;;  %v421_v61 = vld [vmem:[%s5442_s1 + $0x20] sm:$0xff]  ;;  %vm2349_vm9 = vcmask 523264   ;;  %s3970_s25 = sshll.u32 %s4711_s18, 4 }
  0x43   : > { %v577_v8 = vld [vmem:[#allocation5 + $0xd0] sm:$0xff]  ;;  %v575_v11 = vld [vmem:[#allocation5 + $0xc0] sm:$0xff]  ;;  %s414_s5 = scalar_lea.vmem [#allocation11], %s3970_s25 }
  0x44   : > { %v609_v9 = vld [vmem:[#allocation5 + $0x1d0] sm:$0xff]  ;;  %v607_v13 = vld [vmem:[#allocation5 + $0x1c0] sm:$0xff] }
  0x45   : > { %v646_v10 = vld [vmem:[#allocation5 + $0x2f0] sm:$0xff]  ;;  %v644_v14 = vld [vmem:[#allocation5 + $0x2e0] sm:$0xff] }
  0x46   : > { %v678_v12 = vld [vmem:[#allocation5 + $0x3f0] sm:$0xff]  ;;  %680 = vmatpush.msra.mxu2 %v646_v10  ;;  %v676_v15 = vld [vmem:[#allocation5 + $0x3e0] sm:$0xff] }
  0x47   : > { %700 = vmatpush.msra.mxu3 %v678_v12  ;;  %v418_v16 = vld [vmem:[%s5442_s1 + $0x8] sm:$0xff]  ;;  %v571_v21 = vld [vmem:[#allocation5 + $0xa0] sm:$0xff] }
  0x48   : > { %v428_v2 = vld.sshfl [vmem:[#allocation1] sm:$0xff pattern:$0x75316420]  ;;  %v429_v3 = vld.sshfl [vmem:[#allocation1 + $0x8] sm:$0xff pattern:$0x75316420]  ;;  %681 = vmatpush.msra.mxu2 %v644_v14 }
  0x49   : > { %3971 = vmatpush.msk.msra.mxu0 %vm458_vm0, %v428_v2  ;;  %3981 = vmatpush.msk.msra.mxu1 %vm458_vm0, %v429_v3  ;;  %v573_v17 = vld [vmem:[#allocation5 + $0xb0] sm:$0xff]  ;;  %v603_v22 = vld [vmem:[#allocation5 + $0x1a0] sm:$0xff] }
  0x4a   : > { %3972 = vmatmul.msk.f32.vlgmr.msra.gmra.mxu0 %vm430_vm1, %v417_v1  ;;  %3982 = vmatmul.msk.f32.vlgmr.msra.gmra.mxu1 %vm430_vm1, %v417_v1  ;;  %v605_v18 = vld [vmem:[#allocation5 + $0x1b0] sm:$0xff]  ;;  %v640_v23 = vld [vmem:[#allocation5 + $0x2c0] sm:$0xff] }
  0x4b   : > { %760 = vmatpush.msrb.mxu0 %v581_v4  ;;  %780 = vmatpush.msrb.mxu1 %v613_v5  ;;  %v642_v19 = vld [vmem:[#allocation5 + $0x2d0] sm:$0xff]  ;;  %v672_v24 = vld [vmem:[#allocation5 + $0x3c0] sm:$0xff] }
  0x4c   : > { %701 = vmatpush.msra.mxu3 %v676_v15  ;;  %v674_v20 = vld [vmem:[#allocation5 + $0x3d0] sm:$0xff]  ;;  %682 = vmatpush.msra.mxu2 %v642_v19  ;;  %v567_v29 = vld [vmem:[#allocation5 + $0x80] sm:$0xff] }
  0x4d   : > { %761 = vmatpush.msrb.mxu0 %v579_v6  ;;  %781 = vmatpush.msrb.mxu1 %v611_v7  ;;  %v569_v25 = vld [vmem:[#allocation5 + $0x90] sm:$0xff]  ;;  %v599_v30 = vld [vmem:[#allocation5 + $0x180] sm:$0xff] }
  0x4e   : > { %702 = vmatpush.msra.mxu3 %v674_v20  ;;  %v601_v26 = vld [vmem:[#allocation5 + $0x190] sm:$0xff]  ;;  %683 = vmatpush.msra.mxu2 %v640_v23  ;;  %v636_v34 = vld [vmem:[#allocation5 + $0x2a0] sm:$0xff] }
  0x4f   : > { %762 = vmatpush.msrb.mxu0 %v577_v8  ;;  %782 = vmatpush.msrb.mxu1 %v609_v9  ;;  %v638_v27 = vld [vmem:[#allocation5 + $0x2b0] sm:$0xff]  ;;  %v668_v35 = vld [vmem:[#allocation5 + $0x3a0] sm:$0xff] }
  0x50   : > { %v670_v28 = vld [vmem:[#allocation5 + $0x3b0] sm:$0xff]  ;;  %703 = vmatpush.msra.mxu3 %v672_v24  ;;  %684 = vmatpush.msra.mxu2 %v638_v27  ;;  %v563_v36 = vld [vmem:[#allocation5 + $0x60] sm:$0xff]  ;;  %v423_v27 = vld [vmem:[%s5442_s1 + $0x30] sm:$0xff] }
  0x51   : > { %763 = vmatpush.msrb.mxu0 %v575_v11  ;;  %783 = vmatpush.msrb.mxu1 %v607_v13  ;;  %v565_v32 = vld [vmem:[#allocation5 + $0x70] sm:$0xff]  ;;  %v595_v37 = vld [vmem:[#allocation5 + $0x160] sm:$0xff] }
  0x52   : > { %3973 = vmatmul.msk.f32.gmra.mxu0 %vm430_vm1, %v418_v16  ;;  %3983 = vmatmul.msk.f32.gmra.mxu1 %vm430_vm1, %v418_v16  ;;  %v597_v33 = vld [vmem:[#allocation5 + $0x170] sm:$0xff]  ;;  %v632_v42 = vld [vmem:[#allocation5 + $0x280] sm:$0xff] }
  0x53   : > { %764 = vmatpush.msrb.mxu0 %v573_v17  ;;  %784 = vmatpush.msrb.mxu1 %v605_v18  ;;  %v634_v38 = vld [vmem:[#allocation5 + $0x290] sm:$0xff]  ;;  %v664_v43 = vld [vmem:[#allocation5 + $0x380] sm:$0xff]  ;;  %v647_v17 = vld [vmem:[#allocation5 + $0x2f8] sm:$0xff] }
  0x54   : > { %704 = vmatpush.msra.mxu3 %v670_v28  ;;  %v666_v39 = vld [vmem:[#allocation5 + $0x390] sm:$0xff]  ;;  %685 = vmatpush.msra.mxu2 %v636_v34  ;;  %v559_v44 = vld [vmem:[#allocation5 + $0x40] sm:$0xff]  ;;  %v679_v18 = vld [vmem:[#allocation5 + $0x3f8] sm:$0xff] }
  0x55   : > { %765 = vmatpush.msrb.mxu0 %v571_v21  ;;  %785 = vmatpush.msrb.mxu1 %v603_v22  ;;  %v561_v40 = vld [vmem:[#allocation5 + $0x50] sm:$0xff]  ;;  %v591_v45 = vld [vmem:[#allocation5 + $0x140] sm:$0xff]  ;;  %v645_v21 = vld [vmem:[#allocation5 + $0x2e8] sm:$0xff] }
  0x56   : > { %705 = vmatpush.msra.mxu3 %v668_v35  ;;  %v593_v41 = vld [vmem:[#allocation5 + $0x150] sm:$0xff]  ;;  %686 = vmatpush.msra.mxu2 %v634_v38  ;;  %v420_v46 = vld [vmem:[%s5442_s1 + $0x18] sm:$0xff]  ;;  %v677_v22 = vld [vmem:[#allocation5 + $0x3e8] sm:$0xff] }
  0x57   : > { %766 = vmatpush.msrb.mxu0 %v569_v25  ;;  %786 = vmatpush.msrb.mxu1 %v601_v26  ;;  %v630_v47 = vld [vmem:[#allocation5 + $0x270] sm:$0xff]  ;;  %v628_v51 = vld [vmem:[#allocation5 + $0x260] sm:$0xff]  ;;  %v643_v25 = vld [vmem:[#allocation5 + $0x2d8] sm:$0xff] }
  0x58   : > { %706 = vmatpush.msra.mxu3 %v666_v39  ;;  %687 = vmatpush.msra.mxu2 %v632_v42  ;;  %v662_v48 = vld [vmem:[#allocation5 + $0x370] sm:$0xff]  ;;  %v660_v52 = vld [vmem:[#allocation5 + $0x360] sm:$0xff]  ;;  %v675_v26 = vld [vmem:[#allocation5 + $0x3d8] sm:$0xff] }
  0x59   : > { %767 = vmatpush.msrb.mxu0 %v567_v29  ;;  %787 = vmatpush.msrb.mxu1 %v599_v30  ;;  %v557_v49 = vld [vmem:[#allocation5 + $0x30] sm:$0xff]  ;;  %v555_v53 = vld [vmem:[#allocation5 + $0x20] sm:$0xff]  ;;  %v641_v30 = vld [vmem:[#allocation5 + $0x2c8] sm:$0xff] }
  0x5a   : > { %3974 = vmatmul.msk.f32.gmra.mxu0 %vm430_vm1, %v419_v31  ;;  %3984 = vmatmul.msk.f32.gmra.mxu1 %vm430_vm1, %v419_v31  ;;  %v589_v50 = vld [vmem:[#allocation5 + $0x130] sm:$0xff]  ;;  %v587_v54 = vld [vmem:[#allocation5 + $0x120] sm:$0xff]  ;;  %v673_v31 = vld [vmem:[#allocation5 + $0x3c8] sm:$0xff] }
  0x5b   : > { %768 = vmatpush.msrb.mxu0 %v565_v32  ;;  %788 = vmatpush.msrb.mxu1 %v597_v33  ;;  %v626_v55 = vld [vmem:[#allocation5 + $0x250] sm:$0xff]  ;;  %v624_v59 = vld [vmem:[#allocation5 + $0x240] sm:$0xff]  ;;  %v639_v34 = vld [vmem:[#allocation5 + $0x2b8] sm:$0xff] }
  0x5c   : > { %707 = vmatpush.msra.mxu3 %v664_v43  ;;  %688 = vmatpush.msra.mxu2 %v630_v47  ;;  %v658_v56 = vld [vmem:[#allocation5 + $0x350] sm:$0xff]  ;;  %v656_v60 = vld [vmem:[#allocation5 + $0x340] sm:$0xff]  ;;  %v671_v35 = vld [vmem:[#allocation5 + $0x3b8] sm:$0xff] }
  0x5d   : > { %769 = vmatpush.msrb.mxu0 %v563_v36  ;;  %789 = vmatpush.msrb.mxu1 %v595_v37  ;;  %v553_v57 = vld [vmem:[#allocation5 + $0x10] sm:$0xff]  ;;  %v551_v62 = vld [vmem:[#allocation5] sm:$0xff]  ;;  %v637_v38 = vld [vmem:[#allocation5 + $0x2a8] sm:$0xff] }
  0x5e   : > { %708 = vmatpush.msra.mxu3 %v662_v48  ;;  %689 = vmatpush.msra.mxu2 %v628_v51  ;;  %v585_v58 = vld [vmem:[#allocation5 + $0x110] sm:$0xff]  ;;  %v583_v63 = vld [vmem:[#allocation5 + $0x100] sm:$0xff]  ;;  %v669_v39 = vld [vmem:[#allocation5 + $0x3a8] sm:$0xff] }
  0x5f   : > { %770 = vmatpush.msrb.mxu0 %v561_v40  ;;  %790 = vmatpush.msrb.mxu1 %v593_v41  ;;  %v871_v0 = vld [vmem:[#allocation5 + $0x4f0] sm:$0xff]  ;;  %v869_v4 = vld [vmem:[#allocation5 + $0x4e0] sm:$0xff]  ;;  %v635_v43 = vld [vmem:[#allocation5 + $0x298] sm:$0xff] }
  0x60   : > { %709 = vmatpush.msra.mxu3 %v660_v52  ;;  %690 = vmatpush.msra.mxu2 %v626_v55  ;;  %v903_v1 = vld [vmem:[#allocation5 + $0x5f0] sm:$0xff]  ;;  %v901_v5 = vld [vmem:[#allocation5 + $0x5e0] sm:$0xff]  ;;  %v633_v47 = vld [vmem:[#allocation5 + $0x288] sm:$0xff] }
  0x61   : > { %771 = vmatpush.msrb.mxu0 %v559_v44  ;;  %791 = vmatpush.msrb.mxu1 %v591_v45  ;;  %v622_v2 = vld [vmem:[#allocation5 + $0x230] sm:$0xff]  ;;  %v620_v6 = vld [vmem:[#allocation5 + $0x220] sm:$0xff]  ;;  %v667_v44 = vld [vmem:[#allocation5 + $0x398] sm:$0xff] }
  0x62   : > { %3975 = vmatmul.msk.f32.gmra.mxu0 %vm430_vm1, %v420_v46  ;;  %3985 = vmatmul.msk.f32.gmra.mxu1 %vm430_vm1, %v420_v46  ;;  %v654_v3 = vld [vmem:[#allocation5 + $0x330] sm:$0xff]  ;;  %v652_v7 = vld [vmem:[#allocation5 + $0x320] sm:$0xff]  ;;  %v665_v48 = vld [vmem:[#allocation5 + $0x388] sm:$0xff] }
  0x63   : > { %772 = vmatpush.msrb.mxu0 %v557_v49  ;;  %792 = vmatpush.msrb.mxu1 %v589_v50  ;;  %v867_v8 = vld [vmem:[#allocation5 + $0x4d0] sm:$0xff]  ;;  %v865_v13 = vld [vmem:[#allocation5 + $0x4c0] sm:$0xff]  ;;  %v631_v51 = vld [vmem:[#allocation5 + $0x278] sm:$0xff] }
  0x64   : > { %710 = vmatpush.msra.mxu3 %v658_v56  ;;  %691 = vmatpush.msra.mxu2 %v624_v59  ;;  %v899_v9 = vld [vmem:[#allocation5 + $0x5d0] sm:$0xff]  ;;  %v897_v14 = vld [vmem:[#allocation5 + $0x5c0] sm:$0xff]  ;;  %v663_v52 = vld [vmem:[#allocation5 + $0x378] sm:$0xff] }
  0x65   : > { %773 = vmatpush.msrb.mxu0 %v555_v53  ;;  %793 = vmatpush.msrb.mxu1 %v587_v54  ;;  %v618_v10 = vld [vmem:[#allocation5 + $0x210] sm:$0xff]  ;;  %v616_v15 = vld [vmem:[#allocation5 + $0x200] sm:$0xff]  ;;  %v629_v55 = vld [vmem:[#allocation5 + $0x268] sm:$0xff] }
  0x66   : > { %711 = vmatpush.msra.mxu3 %v656_v60  ;;  %692 = vmatpush.msra.mxu2 %v622_v2  ;;  %v650_v11 = vld [vmem:[#allocation5 + $0x310] sm:$0xff]  ;;  %v648_v16 = vld [vmem:[#allocation5 + $0x300] sm:$0xff]  ;;  %v661_v56 = vld [vmem:[#allocation5 + $0x368] sm:$0xff] }
  0x67   : > { %774 = vmatpush.msrb.mxu0 %v553_v57  ;;  %794 = vmatpush.msrb.mxu1 %v585_v58  ;;  %v422_v12 = vld [vmem:[%s5442_s1 + $0x28] sm:$0xff]  ;;  %v861_v23 = vld [vmem:[#allocation5 + $0x4a0] sm:$0xff]  ;;  %v425_v57 = vld [vmem:[%s5442_s1 + $0x40] sm:$0xff] }
  0x68   : > { %712 = vmatpush.msra.mxu3 %v654_v3  ;;  %693 = vmatpush.msra.mxu2 %v620_v6  ;;  %v863_v19 = vld [vmem:[#allocation5 + $0x4b0] sm:$0xff]  ;;  %v893_v24 = vld [vmem:[#allocation5 + $0x5a0] sm:$0xff]  ;;  %v627_v60 = vld [vmem:[#allocation5 + $0x258] sm:$0xff] }
  0x69   : > { %775 = vmatpush.msrb.mxu0 %v551_v62  ;;  %795 = vmatpush.msrb.mxu1 %v583_v63  ;;  %v895_v20 = vld [vmem:[#allocation5 + $0x5b0] sm:$0xff]  ;;  %v857_v32 = vld [vmem:[#allocation5 + $0x480] sm:$0xff]  ;;  %v621_v6 = vld [vmem:[#allocation5 + $0x228] sm:$0xff] }
  0x6a   : > { %3976 = vmatmul.msk.f32.gmra.mxu0 %vm430_vm1, %v421_v61  ;;  %3986 = vmatmul.msk.f32.gmra.mxu1 %vm430_vm1, %v421_v61  ;;  %v859_v28 = vld [vmem:[#allocation5 + $0x490] sm:$0xff]  ;;  %v889_v33 = vld [vmem:[#allocation5 + $0x580] sm:$0xff]  ;;  %v659_v61 = vld [vmem:[#allocation5 + $0x358] sm:$0xff] }
  0x6b   : > { %905 = vmatpush.msra.mxu0 %v871_v0  ;;  %925 = vmatpush.msra.mxu1 %v903_v1  ;;  %v891_v29 = vld [vmem:[#allocation5 + $0x590] sm:$0xff]  ;;  %v853_v40 = vld [vmem:[#allocation5 + $0x460] sm:$0xff]  ;;  %v625_v0 = vld [vmem:[#allocation5 + $0x248] sm:$0xff] }
  0x6c   : > { %713 = vmatpush.msra.mxu3 %v652_v7  ;;  %694 = vmatpush.msra.mxu2 %v618_v10  ;;  %v855_v36 = vld [vmem:[#allocation5 + $0x470] sm:$0xff]  ;;  %v885_v41 = vld [vmem:[#allocation5 + $0x560] sm:$0xff]  ;;  %v657_v1 = vld [vmem:[#allocation5 + $0x348] sm:$0xff] }
  0x6d   : > { %906 = vmatpush.msra.mxu0 %v869_v4  ;;  %926 = vmatpush.msra.mxu1 %v901_v5  ;;  %v887_v37 = vld [vmem:[#allocation5 + $0x570] sm:$0xff]  ;;  %v424_v42 = vld [vmem:[%s5442_s1 + $0x38] sm:$0xff]  ;;  %v623_v4 = vld [vmem:[#allocation5 + $0x238] sm:$0xff] }
  0x6e   : > { %714 = vmatpush.msra.mxu3 %v650_v11  ;;  %695 = vmatpush.msra.mxu2 %v616_v15  ;;  %v851_v45 = vld [vmem:[#allocation5 + $0x450] sm:$0xff]  ;;  %v849_v49 = vld [vmem:[#allocation5 + $0x440] sm:$0xff]  ;;  %v655_v5 = vld [vmem:[#allocation5 + $0x338] sm:$0xff] }
  0x6f   : > { %907 = vmatpush.msra.mxu0 %v867_v8  ;;  %927 = vmatpush.msra.mxu1 %v899_v9  ;;  %v883_v46 = vld [vmem:[#allocation5 + $0x550] sm:$0xff]  ;;  %v881_v50 = vld [vmem:[#allocation5 + $0x540] sm:$0xff]  ;;  %v653_v7 = vld [vmem:[#allocation5 + $0x328] sm:$0xff] }
  0x70   : > { %715 = vmatpush.msra.mxu3 %v648_v16  ;;  %720 = vmatpush.msrb.mxu2 %v647_v17  ;;  %v847_v53 = vld [vmem:[#allocation5 + $0x430] sm:$0xff]  ;;  %v845_v58 = vld [vmem:[#allocation5 + $0x420] sm:$0xff]  ;;  %v619_v8 = vld [vmem:[#allocation5 + $0x218] sm:$0xff] }
  0x71   : > { %908 = vmatpush.msra.mxu0 %v865_v13  ;;  %928 = vmatpush.msra.mxu1 %v897_v14  ;;  %v879_v54 = vld [vmem:[#allocation5 + $0x530] sm:$0xff]  ;;  %v877_v59 = vld [vmem:[#allocation5 + $0x520] sm:$0xff]  ;;  %v651_v9 = vld [vmem:[#allocation5 + $0x318] sm:$0xff] }
  0x72   : > { %3977 = vmatmul.msk.f32.gmra.mxu0 %vm430_vm1, %v422_v12  ;;  %3987 = vmatmul.msk.f32.gmra.mxu1 %vm430_vm1, %v422_v12  ;;  %v843_v62 = vld [vmem:[#allocation5 + $0x410] sm:$0xff]  ;;  %v841_v2 = vld [vmem:[#allocation5 + $0x400] sm:$0xff]  ;;  %v617_v10 = vld [vmem:[#allocation5 + $0x208] sm:$0xff] }
  0x73   : > { %740 = vmatpush.msrb.mxu3 %v679_v18  ;;  %909 = vmatpush.msra.mxu0 %v863_v19  ;;  %v875_v63 = vld [vmem:[#allocation5 + $0x510] sm:$0xff]  ;;  %v873_v3 = vld [vmem:[#allocation5 + $0x500] sm:$0xff]  ;;  %v649_v11 = vld [vmem:[#allocation5 + $0x308] sm:$0xff] }
  0x74   : > { %929 = vmatpush.msra.mxu1 %v895_v20  ;;  %721 = vmatpush.msrb.mxu2 %v645_v21  ;;  %v1018_v12 = vld [vmem:[#allocation5 + $0x6f0] sm:$0xff]  ;;  %v1016_v16 = vld [vmem:[#allocation5 + $0x6e0] sm:$0xff] }
  0x75   : > { %741 = vmatpush.msrb.mxu3 %v677_v22  ;;  %910 = vmatpush.msra.mxu0 %v861_v23  ;;  %v1050_v13 = vld [vmem:[#allocation5 + $0x7f0] sm:$0xff]  ;;  %v1048_v17 = vld [vmem:[#allocation5 + $0x7e0] sm:$0xff]  ;;  %v582_v22 = vld [vmem:[#allocation5 + $0xf8] sm:$0xff] }
  0x76   : > { %930 = vmatpush.msra.mxu1 %v893_v24  ;;  %722 = vmatpush.msrb.mxu2 %v643_v25  ;;  %v1014_v18 = vld [vmem:[#allocation5 + $0x6d0] sm:$0xff]  ;;  %v1012_v20 = vld [vmem:[#allocation5 + $0x6c0] sm:$0xff]  ;;  %v614_v23 = vld [vmem:[#allocation5 + $0x1f8] sm:$0xff] }
  0x77   : > { %742 = vmatpush.msrb.mxu3 %v675_v26  ;;  %911 = vmatpush.msra.mxu0 %v859_v28  ;;  %v1046_v19 = vld [vmem:[#allocation5 + $0x7d0] sm:$0xff]  ;;  %v1044_v21 = vld [vmem:[#allocation5 + $0x7c0] sm:$0xff]  ;;  %v580_v28 = vld [vmem:[#allocation5 + $0xe8] sm:$0xff] }
  0x78   : > { %931 = vmatpush.msra.mxu1 %v891_v29  ;;  %723 = vmatpush.msrb.mxu2 %v641_v30  ;;  %v1010_v26 = vld [vmem:[#allocation5 + $0x6b0] sm:$0xff]  ;;  %v612_v29 = vld [vmem:[#allocation5 + $0x1e8] sm:$0xff]  ;;  %v1008_v30 = vld [vmem:[#allocation5 + $0x6a0] sm:$0xff] }
  0x79   : > { %743 = vmatpush.msrb.mxu3 %v673_v31  ;;  %912 = vmatpush.msra.mxu0 %v857_v32  ;;  %v1040_v31 = vld [vmem:[#allocation5 + $0x7a0] sm:$0xff]  ;;  %v578_v32 = vld [vmem:[#allocation5 + $0xd8] sm:$0xff] }
  0x7a   : > { %3978 = vmatmul.msk.f32.gmra.mxu0 %vm430_vm1, %v423_v27  ;;  %3988 = vmatmul.msk.f32.gmra.mxu1 %vm430_vm1, %v423_v27  ;;  %v1042_v27 = vld [vmem:[#allocation5 + $0x7b0] sm:$0xff] }
  0x7b   : > { %932 = vmatpush.msra.mxu1 %v889_v33  ;;  %724 = vmatpush.msrb.mxu2 %v639_v34  ;;  %v610_v33 = vld [vmem:[#allocation5 + $0x1d8] sm:$0xff]  ;;  %v1006_v34 = vld [vmem:[#allocation5 + $0x690] sm:$0xff] }
  0x7c   : > { %744 = vmatpush.msrb.mxu3 %v671_v35  ;;  %913 = vmatpush.msra.mxu0 %v855_v36  ;;  %v1038_v35 = vld [vmem:[#allocation5 + $0x790] sm:$0xff]  ;;  %v576_v36 = vld [vmem:[#allocation5 + $0xc8] sm:$0xff] }
  0x7d   : > { %933 = vmatpush.msra.mxu1 %v887_v37  ;;  %725 = vmatpush.msrb.mxu2 %v637_v38  ;;  %v608_v37 = vld [vmem:[#allocation5 + $0x1c8] sm:$0xff]  ;;  %v1004_v38 = vld [vmem:[#allocation5 + $0x680] sm:$0xff] }
  0x7e   : > { %745 = vmatpush.msrb.mxu3 %v669_v39  ;;  %914 = vmatpush.msra.mxu0 %v853_v40  ;;  %v1036_v39 = vld [vmem:[#allocation5 + $0x780] sm:$0xff]  ;;  %v574_v40 = vld [vmem:[#allocation5 + $0xb8] sm:$0xff] }
  0x7f   : > { %934 = vmatpush.msra.mxu1 %v885_v41  ;;  %726 = vmatpush.msrb.mxu2 %v635_v43  ;;  %v606_v41 = vld [vmem:[#allocation5 + $0x1b8] sm:$0xff]  ;;  %v1034_v43 = vld [vmem:[#allocation5 + $0x770] sm:$0xff] }
  0x80   : > { %746 = vmatpush.msrb.mxu3 %v667_v44  ;;  %915 = vmatpush.msra.mxu0 %v851_v45  ;;  %v572_v44 = vld [vmem:[#allocation5 + $0xa8] sm:$0xff] }
  0x81   : > { %935 = vmatpush.msra.mxu1 %v883_v46  ;;  %727 = vmatpush.msrb.mxu2 %v633_v47  ;;  %v604_v45 = vld [vmem:[#allocation5 + $0x1a8] sm:$0xff] }
  0x82   : > { %3979 = vmatmul.msk.f32.gmra.mxu0 %vm430_vm1, %v424_v42  ;;  %3989 = vmatmul.msk.f32.gmra.mxu1 %vm430_vm1, %v424_v42  ;;  %v1002_v42 = vld [vmem:[#allocation5 + $0x670] sm:$0xff] }
  0x83   : > { %747 = vmatpush.msrb.mxu3 %v665_v48  ;;  %916 = vmatpush.msra.mxu0 %v849_v49  ;;  %v1000_v48 = vld [vmem:[#allocation5 + $0x660] sm:$0xff] }
  0x84   : > { %936 = vmatpush.msra.mxu1 %v881_v50  ;;  %728 = vmatpush.msrb.mxu2 %v631_v51  ;;  %v1032_v49 = vld [vmem:[#allocation5 + $0x760] sm:$0xff]  ;;  %v570_v50 = vld [vmem:[#allocation5 + $0x98] sm:$0xff] }
  0x85   : > { %748 = vmatpush.msrb.mxu3 %v663_v52  ;;  %917 = vmatpush.msra.mxu0 %v847_v53  ;;  %v602_v51 = vld [vmem:[#allocation5 + $0x198] sm:$0xff]  ;;  %v998_v52 = vld [vmem:[#allocation5 + $0x650] sm:$0xff] }
  0x86   : > { %937 = vmatpush.msra.mxu1 %v879_v54  ;;  %729 = vmatpush.msrb.mxu2 %v629_v55  ;;  %v1030_v53 = vld [vmem:[#allocation5 + $0x750] sm:$0xff]  ;;  %v568_v54 = vld [vmem:[#allocation5 + $0x88] sm:$0xff] }
  0x87   : > { %749 = vmatpush.msrb.mxu3 %v661_v56  ;;  %918 = vmatpush.msra.mxu0 %v845_v58  ;;  %v600_v55 = vld [vmem:[#allocation5 + $0x188] sm:$0xff]  ;;  %v996_v56 = vld [vmem:[#allocation5 + $0x640] sm:$0xff]  ;;  %v566_v58 = vld [vmem:[#allocation5 + $0x78] sm:$0xff] }
  0x88   : > { %938 = vmatpush.msra.mxu1 %v877_v59  ;;  %730 = vmatpush.msrb.mxu2 %v627_v60  ;;  %v598_v59 = vld [vmem:[#allocation5 + $0x178] sm:$0xff]  ;;  %v994_v60 = vld [vmem:[#allocation5 + $0x630] sm:$0xff] }
  0x89   : > { %750 = vmatpush.msrb.mxu3 %v659_v61  ;;  %919 = vmatpush.msra.mxu0 %v843_v62  ;;  %v1026_v61 = vld [vmem:[#allocation5 + $0x730] sm:$0xff]  ;;  %v564_v62 = vld [vmem:[#allocation5 + $0x68] sm:$0xff] }
  0x8a   : > { %3980 = vmatmul.msk.f32.gmra.mxu0 %vm430_vm1, %v425_v57  ;;  %3990 = vmatmul.msk.f32.gmra.mxu1 %vm430_vm1, %v425_v57  ;;  %v1028_v57 = vld [vmem:[#allocation5 + $0x740] sm:$0xff] }
  0x8b   : > { %939 = vmatpush.msra.mxu1 %v875_v63  ;;  %731 = vmatpush.msrb.mxu2 %v625_v0  ;;  %v596_v63 = vld [vmem:[#allocation5 + $0x168] sm:$0xff]  ;;  %v992_v0 = vld [vmem:[#allocation5 + $0x620] sm:$0xff] }
  0x8c   : > { %751 = vmatpush.msrb.mxu3 %v657_v1  ;;  %920 = vmatpush.msra.mxu0 %v841_v2  ;;  %v1024_v1 = vld [vmem:[#allocation5 + $0x720] sm:$0xff]  ;;  %v562_v2 = vld [vmem:[#allocation5 + $0x58] sm:$0xff] }
  0x8d   : > { %940 = vmatpush.msra.mxu1 %v873_v3  ;;  %732 = vmatpush.msrb.mxu2 %v623_v4  ;;  %v594_v3 = vld [vmem:[#allocation5 + $0x158] sm:$0xff]  ;;  %v990_v4 = vld [vmem:[#allocation5 + $0x610] sm:$0xff] }
  0x8e   : > { %752 = vmatpush.msrb.mxu3 %v655_v5  ;;  %v1022_v5 = vld [vmem:[#allocation5 + $0x710] sm:$0xff] }
  0x8f   : > { %733 = vmatpush.msrb.mxu2 %v621_v6  ;;  %v560_v6 = vld [vmem:[#allocation5 + $0x48] sm:$0xff] }
  0x90   : > { %753 = vmatpush.msrb.mxu3 %v653_v7  ;;  %v592_v7 = vld [vmem:[#allocation5 + $0x148] sm:$0xff] }
  0x91   : > { %734 = vmatpush.msrb.mxu2 %v619_v8  ;;  %v988_v8 = vld [vmem:[#allocation5 + $0x600] sm:$0xff] }
  0x92   : > { %754 = vmatpush.msrb.mxu3 %v651_v9  ;;  %v1020_v9 = vld [vmem:[#allocation5 + $0x700] sm:$0xff] }
  0x93   : > { %735 = vmatpush.msrb.mxu2 %v617_v10 }
  0x94   : > { %755 = vmatpush.msrb.mxu3 %v649_v11 }
  0xc7   : > { %v4772_v14 = vpop.f32.mrf.mxu0  ;;  %v4774_v15 = vpop.f32.mrf.mxu1 }
  0xc8   : > { %776 = vmatmul.f32.vlgmr.msrb.gmra.mxu0 %v4772_v14  ;;  %796 = vmatmul.f32.vlgmr.msrb.gmra.mxu1 %v4774_v15 }
  0xc9   : > { %1052 = vmatpush.msrb.mxu0 %v1018_v12  ;;  %1072 = vmatpush.msrb.mxu1 %v1050_v13  ;;  %v1165_v12 = vld [vmem:[#allocation5 + $0x8f0] sm:$0xff] }
  0xca   : > { %v1197_v13 = vld [vmem:[#allocation5 + $0x9f0] sm:$0xff] }
  0xcb   : > { %1053 = vmatpush.msrb.mxu0 %v1016_v16  ;;  %1073 = vmatpush.msrb.mxu1 %v1048_v17  ;;  %v558_v16 = vld [vmem:[#allocation5 + $0x38] sm:$0xff] }
  0xcc   : > { %v590_v17 = vld [vmem:[#allocation5 + $0x138] sm:$0xff] }
  0xcd   : > { %1054 = vmatpush.msrb.mxu0 %v1014_v18  ;;  %1074 = vmatpush.msrb.mxu1 %v1046_v19  ;;  %v1163_v18 = vld [vmem:[#allocation5 + $0x8e0] sm:$0xff] }
  0xce   : > { %v1195_v19 = vld [vmem:[#allocation5 + $0x9e0] sm:$0xff] }
  0xcf   : > { %1055 = vmatpush.msrb.mxu0 %v1012_v20  ;;  %1075 = vmatpush.msrb.mxu1 %v1044_v21  ;;  %v483_v24 = vpop.f32.mrf.mxu0  ;;  %v527_v25 = vpop.f32.mrf.mxu1  ;;  %v556_v20 = vld [vmem:[#allocation5 + $0x28] sm:$0xff] }
  0xd0   : > { %696 = vmatmul.f32.vlgmr.msra.gmra.mxu2 %v483_v24  ;;  %716 = vmatmul.f32.vlgmr.msra.gmra.mxu3 %v527_v25  ;;  %v588_v21 = vld [vmem:[#allocation5 + $0x128] sm:$0xff] }
  0xd1   : > { %800 = vmatpush.msra.mxu2 %v582_v22  ;;  %820 = vmatpush.msra.mxu3 %v614_v23  ;;  %v1161_v22 = vld [vmem:[#allocation5 + $0x8d0] sm:$0xff] }
  0xd2   : > { %1056 = vmatpush.msrb.mxu0 %v1010_v26  ;;  %1076 = vmatpush.msrb.mxu1 %v1042_v27  ;;  %v1193_v23 = vld [vmem:[#allocation5 + $0x9d0] sm:$0xff]  ;;  %v1159_v26 = vld [vmem:[#allocation5 + $0x8c0] sm:$0xff] }
  0xd3   : > { %801 = vmatpush.msra.mxu2 %v580_v28  ;;  %821 = vmatpush.msra.mxu3 %v612_v29  ;;  %v1191_v27 = vld [vmem:[#allocation5 + $0x9c0] sm:$0xff]  ;;  %v552_v28 = vld [vmem:[#allocation5 + $0x8] sm:$0xff] }
  0xd4   : > { %1057 = vmatpush.msrb.mxu0 %v1008_v30  ;;  %1077 = vmatpush.msrb.mxu1 %v1040_v31  ;;  %v584_v29 = vld [vmem:[#allocation5 + $0x108] sm:$0xff]  ;;  %v872_v30 = vld [vmem:[#allocation5 + $0x4f8] sm:$0xff] }
  0xd5   : > { %802 = vmatpush.msra.mxu2 %v578_v32  ;;  %822 = vmatpush.msra.mxu3 %v610_v33  ;;  %v904_v31 = vld [vmem:[#allocation5 + $0x5f8] sm:$0xff]  ;;  %v1157_v32 = vld [vmem:[#allocation5 + $0x8b0] sm:$0xff] }
  0xd6   : > { %1058 = vmatpush.msrb.mxu0 %v1006_v34  ;;  %1078 = vmatpush.msrb.mxu1 %v1038_v35  ;;  %v1189_v33 = vld [vmem:[#allocation5 + $0x9b0] sm:$0xff]  ;;  %v870_v34 = vld [vmem:[#allocation5 + $0x4e8] sm:$0xff] }
  0xd7   : > { %803 = vmatpush.msra.mxu2 %v576_v36  ;;  %823 = vmatpush.msra.mxu3 %v608_v37  ;;  %v4778_v46 = vpop.f32.mrf.mxu0  ;;  %v4780_v47 = vpop.f32.mrf.mxu1  ;;  %v902_v35 = vld [vmem:[#allocation5 + $0x5e8] sm:$0xff]  ;;  %v1155_v36 = vld [vmem:[#allocation5 + $0x8a0] sm:$0xff] }
  0xd8   : > { %1059 = vmatpush.msrb.mxu0 %v1004_v38  ;;  %1079 = vmatpush.msrb.mxu1 %v1036_v39  ;;  %v1187_v37 = vld [vmem:[#allocation5 + $0x9a0] sm:$0xff]  ;;  %v868_v38 = vld [vmem:[#allocation5 + $0x4d8] sm:$0xff] }
  0xd9   : > { %736 = vmatmul.f32.vlgmr.msrb.gmra.mxu2 %v483_v24  ;;  %756 = vmatmul.f32.vlgmr.msrb.gmra.mxu3 %v527_v25  ;;  %v554_v24 = vld [vmem:[#allocation5 + $0x18] sm:$0xff] }
  0xda   : > { %804 = vmatpush.msra.mxu2 %v574_v40  ;;  %824 = vmatpush.msra.mxu3 %v606_v41  ;;  %v586_v25 = vld [vmem:[#allocation5 + $0x118] sm:$0xff]  ;;  %v1153_v40 = vld [vmem:[#allocation5 + $0x890] sm:$0xff] }
  0xdb   : > { %1060 = vmatpush.msrb.mxu0 %v1002_v42  ;;  %1080 = vmatpush.msrb.mxu1 %v1034_v43  ;;  %v900_v39 = vld [vmem:[#allocation5 + $0x5d8] sm:$0xff]  ;;  %v1185_v41 = vld [vmem:[#allocation5 + $0x990] sm:$0xff]  ;;  %v866_v42 = vld [vmem:[#allocation5 + $0x4c8] sm:$0xff] }
  0xdc   : > { %805 = vmatpush.msra.mxu2 %v572_v44  ;;  %825 = vmatpush.msra.mxu3 %v604_v45  ;;  %v1183_v43 = vld [vmem:[#allocation5 + $0x980] sm:$0xff]  ;;  %v864_v44 = vld [vmem:[#allocation5 + $0x4b8] sm:$0xff] }
  0xdd   : > { %921 = vmatmul.f32.vlgmr.msra.gmra.mxu0 %v4778_v46  ;;  %941 = vmatmul.f32.vlgmr.msra.gmra.mxu1 %v4780_v47  ;;  %v896_v45 = vld [vmem:[#allocation5 + $0x5b8] sm:$0xff] }
  0xde   : > { %1061 = vmatpush.msrb.mxu0 %v1000_v48  ;;  %1081 = vmatpush.msrb.mxu1 %v1032_v49  ;;  %v1149_v48 = vld [vmem:[#allocation5 + $0x870] sm:$0xff] }
  0xdf   : > { %806 = vmatpush.msra.mxu2 %v570_v50  ;;  %826 = vmatpush.msra.mxu3 %v602_v51  ;;  %v4784_v10 = vpop.f32.mrf.mxu0  ;;  %v4786_v11 = vpop.f32.mrf.mxu1  ;;  %v1181_v49 = vld [vmem:[#allocation5 + $0x970] sm:$0xff]  ;;  %v862_v50 = vld [vmem:[#allocation5 + $0x4a8] sm:$0xff] }
  0xe0   : > { %1062 = vmatpush.msrb.mxu0 %v998_v52  ;;  %1082 = vmatpush.msrb.mxu1 %v1030_v53  ;;  %v894_v51 = vld [vmem:[#allocation5 + $0x5a8] sm:$0xff]  ;;  %v1147_v52 = vld [vmem:[#allocation5 + $0x860] sm:$0xff] }
  0xe1   : > { %807 = vmatpush.msra.mxu2 %v568_v54  ;;  %827 = vmatpush.msra.mxu3 %v600_v55  ;;  %v1179_v53 = vld [vmem:[#allocation5 + $0x960] sm:$0xff]  ;;  %v860_v54 = vld [vmem:[#allocation5 + $0x498] sm:$0xff] }
  0xe2   : > { %1063 = vmatpush.msrb.mxu0 %v996_v56  ;;  %1083 = vmatpush.msrb.mxu1 %v1028_v57  ;;  %v892_v55 = vld [vmem:[#allocation5 + $0x598] sm:$0xff]  ;;  %v1145_v56 = vld [vmem:[#allocation5 + $0x850] sm:$0xff] }
  0xe3   : > { %808 = vmatpush.msra.mxu2 %v566_v58  ;;  %828 = vmatpush.msra.mxu3 %v598_v59  ;;  %v1177_v57 = vld [vmem:[#allocation5 + $0x950] sm:$0xff]  ;;  %v858_v58 = vld [vmem:[#allocation5 + $0x488] sm:$0xff] }
  0xe4   : > { %1064 = vmatpush.msrb.mxu0 %v994_v60  ;;  %1084 = vmatpush.msrb.mxu1 %v1026_v61  ;;  %v890_v59 = vld [vmem:[#allocation5 + $0x588] sm:$0xff]  ;;  %v1143_v60 = vld [vmem:[#allocation5 + $0x840] sm:$0xff] }
  0xe5   : > { %809 = vmatpush.msra.mxu2 %v564_v62  ;;  %829 = vmatpush.msra.mxu3 %v596_v63  ;;  %v1175_v61 = vld [vmem:[#allocation5 + $0x940] sm:$0xff]  ;;  %v856_v62 = vld [vmem:[#allocation5 + $0x478] sm:$0xff] }
  0xe6   : > { %1065 = vmatpush.msrb.mxu0 %v992_v0  ;;  %1085 = vmatpush.msrb.mxu1 %v1024_v1  ;;  %v888_v63 = vld [vmem:[#allocation5 + $0x578] sm:$0xff]  ;;  %v1141_v0 = vld [vmem:[#allocation5 + $0x830] sm:$0xff] }
  0xe7   : > { %810 = vmatpush.msra.mxu2 %v562_v2  ;;  %830 = vmatpush.msra.mxu3 %v594_v3  ;;  %v1173_v1 = vld [vmem:[#allocation5 + $0x930] sm:$0xff]  ;;  %v854_v2 = vld [vmem:[#allocation5 + $0x468] sm:$0xff] }
  0xe8   : > { %1066 = vmatpush.msrb.mxu0 %v990_v4  ;;  %1086 = vmatpush.msrb.mxu1 %v1022_v5  ;;  %v886_v3 = vld [vmem:[#allocation5 + $0x568] sm:$0xff]  ;;  %v1139_v4 = vld [vmem:[#allocation5 + $0x820] sm:$0xff] }
  0xe9   : > { %811 = vmatpush.msra.mxu2 %v560_v6  ;;  %831 = vmatpush.msra.mxu3 %v592_v7  ;;  %v1171_v5 = vld [vmem:[#allocation5 + $0x920] sm:$0xff]  ;;  %v852_v6 = vld [vmem:[#allocation5 + $0x458] sm:$0xff] }
  0xea   : > { %1067 = vmatpush.msrb.mxu0 %v988_v8  ;;  %1087 = vmatpush.msrb.mxu1 %v1020_v9  ;;  %v884_v7 = vld [vmem:[#allocation5 + $0x558] sm:$0xff]  ;;  %v1137_v8 = vld [vmem:[#allocation5 + $0x810] sm:$0xff] }
  0xeb   : > { %1068 = vmatmul.f32.vlgmr.msrb.gmra.mxu0 %v4784_v10  ;;  %1088 = vmatmul.f32.vlgmr.msrb.gmra.mxu1 %v4786_v11  ;;  %v1169_v9 = vld [vmem:[#allocation5 + $0x910] sm:$0xff] }
  0xec   : > { %1199 = vmatpush.msra.mxu0 %v1165_v12  ;;  %1219 = vmatpush.msra.mxu1 %v1197_v13  ;;  %v850_v12 = vld [vmem:[#allocation5 + $0x448] sm:$0xff] }
  0xed   : > { %812 = vmatpush.msra.mxu2 %v558_v16  ;;  %832 = vmatpush.msra.mxu3 %v590_v17  ;;  %v882_v13 = vld [vmem:[#allocation5 + $0x548] sm:$0xff]  ;;  %v1135_v16 = vld [vmem:[#allocation5 + $0x800] sm:$0xff] }
  0xee   : > { %1200 = vmatpush.msra.mxu0 %v1163_v18  ;;  %1220 = vmatpush.msra.mxu1 %v1195_v19  ;;  %v1167_v17 = vld [vmem:[#allocation5 + $0x900] sm:$0xff]  ;;  %v4792_v18 = vpop.f32.mrf.mxu0  ;;  %v4794_v19 = vpop.f32.mrf.mxu1 }
  0xef   : > { %813 = vmatpush.msra.mxu2 %v556_v20  ;;  %833 = vmatpush.msra.mxu3 %v588_v21  ;;  %v1312_v20 = vld [vmem:[#allocation5 + $0xaf0] sm:$0xff] }
  0xf0   : > { %1201 = vmatpush.msra.mxu0 %v1161_v22  ;;  %1221 = vmatpush.msra.mxu1 %v1193_v23  ;;  %v1344_v21 = vld [vmem:[#allocation5 + $0xbf0] sm:$0xff]  ;;  %v848_v22 = vld [vmem:[#allocation5 + $0x438] sm:$0xff] }
  0xf1   : > { %814 = vmatpush.msra.mxu2 %v554_v24  ;;  %834 = vmatpush.msra.mxu3 %v586_v25  ;;  %v880_v23 = vld [vmem:[#allocation5 + $0x538] sm:$0xff]  ;;  %v1310_v24 = vld [vmem:[#allocation5 + $0xae0] sm:$0xff] }
  0xf2   : > { %1202 = vmatpush.msra.mxu0 %v1159_v26  ;;  %1222 = vmatpush.msra.mxu1 %v1191_v27  ;;  %v1342_v25 = vld [vmem:[#allocation5 + $0xbe0] sm:$0xff]  ;;  %v846_v26 = vld [vmem:[#allocation5 + $0x428] sm:$0xff] }
  0xf3   : > { %815 = vmatpush.msra.mxu2 %v552_v28  ;;  %835 = vmatpush.msra.mxu3 %v584_v29  ;;  %v878_v27 = vld [vmem:[#allocation5 + $0x528] sm:$0xff]  ;;  %v1308_v28 = vld [vmem:[#allocation5 + $0xad0] sm:$0xff] }
  0xf4   : > { %816 = vmatmul.f32.vlgmr.msra.gmra.mxu2 %v4772_v14  ;;  %836 = vmatmul.f32.vlgmr.msra.gmra.mxu3 %v4774_v15  ;;  %v898_v14 = vld [vmem:[#allocation5 + $0x5c8] sm:$0xff]  ;;  %v1151_v15 = vld [vmem:[#allocation5 + $0x880] sm:$0xff]  ;;  %v1340_v29 = vld [vmem:[#allocation5 + $0xbd0] sm:$0xff] }
  0xf5   : > { %945 = vmatpush.msrb.mxu2 %v872_v30  ;;  %965 = vmatpush.msrb.mxu3 %v904_v31  ;;  %v844_v30 = vld [vmem:[#allocation5 + $0x418] sm:$0xff] }
  0xf6   : > { %1203 = vmatpush.msra.mxu0 %v1157_v32  ;;  %1223 = vmatpush.msra.mxu1 %v1189_v33  ;;  %v876_v31 = vld [vmem:[#allocation5 + $0x518] sm:$0xff]  ;;  %v1306_v32 = vld [vmem:[#allocation5 + $0xac0] sm:$0xff] }
  0xf7   : > { %946 = vmatpush.msrb.mxu2 %v870_v34  ;;  %966 = vmatpush.msrb.mxu3 %v902_v35  ;;  %v1338_v33 = vld [vmem:[#allocation5 + $0xbc0] sm:$0xff]  ;;  %v842_v34 = vld [vmem:[#allocation5 + $0x408] sm:$0xff] }
  0xf8   : > { %1204 = vmatpush.msra.mxu0 %v1155_v36  ;;  %1224 = vmatpush.msra.mxu1 %v1187_v37  ;;  %v874_v35 = vld [vmem:[#allocation5 + $0x508] sm:$0xff]  ;;  %v1019_v36 = vld [vmem:[#allocation5 + $0x6f8] sm:$0xff] }
  0xf9   : > { %947 = vmatpush.msrb.mxu2 %v868_v38  ;;  %967 = vmatpush.msrb.mxu3 %v900_v39  ;;  %v1051_v37 = vld [vmem:[#allocation5 + $0x7f8] sm:$0xff]  ;;  %v1304_v38 = vld [vmem:[#allocation5 + $0xab0] sm:$0xff] }
  0xfa   : > { %1205 = vmatpush.msra.mxu0 %v1153_v40  ;;  %1225 = vmatpush.msra.mxu1 %v1185_v41  ;;  %v1336_v39 = vld [vmem:[#allocation5 + $0xbb0] sm:$0xff]  ;;  %v1017_v40 = vld [vmem:[#allocation5 + $0x6e8] sm:$0xff] }
  0xfb   : > { %948 = vmatpush.msrb.mxu2 %v866_v42  ;;  %968 = vmatpush.msrb.mxu3 %v898_v14  ;;  %v1049_v41 = vld [vmem:[#allocation5 + $0x7e8] sm:$0xff]  ;;  %v1302_v42 = vld [vmem:[#allocation5 + $0xaa0] sm:$0xff] }
  0xfc   : > { %1206 = vmatpush.msra.mxu0 %v1151_v15  ;;  %1226 = vmatpush.msra.mxu1 %v1183_v43  ;;  %v1334_v14 = vld [vmem:[#allocation5 + $0xba0] sm:$0xff]  ;;  %v1015_v15 = vld [vmem:[#allocation5 + $0x6d8] sm:$0xff] }
  0xfd   : > { %949 = vmatpush.msrb.mxu2 %v864_v44  ;;  %969 = vmatpush.msrb.mxu3 %v896_v45  ;;  %v1047_v43 = vld [vmem:[#allocation5 + $0x7d8] sm:$0xff]  ;;  %v1300_v44 = vld [vmem:[#allocation5 + $0xa90] sm:$0xff] }
  0xfe   : > { %1207 = vmatpush.msra.mxu0 %v1149_v48  ;;  %1227 = vmatpush.msra.mxu1 %v1181_v49  ;;  %v1332_v45 = vld [vmem:[#allocation5 + $0xb90] sm:$0xff]  ;;  %v1013_v48 = vld [vmem:[#allocation5 + $0x6c8] sm:$0xff]  ;;  %v1330_v49 = vld [vmem:[#allocation5 + $0xb80] sm:$0xff] }
  0xff   : > { %950 = vmatpush.msrb.mxu2 %v862_v50  ;;  %970 = vmatpush.msrb.mxu3 %v894_v51  ;;  %v1011_v50 = vld [vmem:[#allocation5 + $0x6b8] sm:$0xff] }
 0x100   : > { %1208 = vmatpush.msra.mxu0 %v1147_v52  ;;  %1228 = vmatpush.msra.mxu1 %v1179_v53  ;;  %v1043_v51 = vld [vmem:[#allocation5 + $0x7b8] sm:$0xff]  ;;  %v1296_v52 = vld [vmem:[#allocation5 + $0xa70] sm:$0xff] }
 0x101   : > { %951 = vmatpush.msrb.mxu2 %v860_v54  ;;  %971 = vmatpush.msrb.mxu3 %v892_v55  ;;  %v1328_v53 = vld [vmem:[#allocation5 + $0xb70] sm:$0xff]  ;;  %v1009_v54 = vld [vmem:[#allocation5 + $0x6a8] sm:$0xff] }
 0x102   : > { %1209 = vmatpush.msra.mxu0 %v1145_v56  ;;  %1229 = vmatpush.msra.mxu1 %v1177_v57  ;;  %v1041_v55 = vld [vmem:[#allocation5 + $0x7a8] sm:$0xff]  ;;  %v1294_v56 = vld [vmem:[#allocation5 + $0xa60] sm:$0xff] }
 0x103   : > { %952 = vmatpush.msrb.mxu2 %v858_v58  ;;  %972 = vmatpush.msrb.mxu3 %v890_v59  ;;  %v1326_v57 = vld [vmem:[#allocation5 + $0xb60] sm:$0xff]  ;;  %v1007_v58 = vld [vmem:[#allocation5 + $0x698] sm:$0xff] }
 0x104   : > { %1210 = vmatpush.msra.mxu0 %v1143_v60  ;;  %1230 = vmatpush.msra.mxu1 %v1175_v61  ;;  %v1039_v59 = vld [vmem:[#allocation5 + $0x798] sm:$0xff]  ;;  %v1292_v60 = vld [vmem:[#allocation5 + $0xa50] sm:$0xff] }
 0x105   : > { %953 = vmatpush.msrb.mxu2 %v856_v62  ;;  %973 = vmatpush.msrb.mxu3 %v888_v63  ;;  %v1324_v61 = vld [vmem:[#allocation5 + $0xb50] sm:$0xff]  ;;  %v1005_v62 = vld [vmem:[#allocation5 + $0x688] sm:$0xff] }
 0x106   : > { %1211 = vmatpush.msra.mxu0 %v1141_v0  ;;  %1231 = vmatpush.msra.mxu1 %v1173_v1  ;;  %v1037_v63 = vld [vmem:[#allocation5 + $0x788] sm:$0xff]  ;;  %v1290_v0 = vld [vmem:[#allocation5 + $0xa40] sm:$0xff] }
 0x107   : > { %954 = vmatpush.msrb.mxu2 %v854_v2  ;;  %974 = vmatpush.msrb.mxu3 %v886_v3  ;;  %v1322_v1 = vld [vmem:[#allocation5 + $0xb40] sm:$0xff]  ;;  %v1003_v2 = vld [vmem:[#allocation5 + $0x678] sm:$0xff] }
 0x108   : > { %1212 = vmatpush.msra.mxu0 %v1139_v4  ;;  %1232 = vmatpush.msra.mxu1 %v1171_v5  ;;  %v1035_v3 = vld [vmem:[#allocation5 + $0x778] sm:$0xff]  ;;  %v1288_v4 = vld [vmem:[#allocation5 + $0xa30] sm:$0xff] }
 0x109   : > { %955 = vmatpush.msrb.mxu2 %v852_v6  ;;  %975 = vmatpush.msrb.mxu3 %v884_v7  ;;  %v1320_v5 = vld [vmem:[#allocation5 + $0xb30] sm:$0xff]  ;;  %v1001_v6 = vld [vmem:[#allocation5 + $0x668] sm:$0xff] }
 0x10a   : > { %1213 = vmatpush.msra.mxu0 %v1137_v8  ;;  %1233 = vmatpush.msra.mxu1 %v1169_v9  ;;  %v1033_v7 = vld [vmem:[#allocation5 + $0x768] sm:$0xff]  ;;  %v1286_v8 = vld [vmem:[#allocation5 + $0xa20] sm:$0xff] }
 0x10b   : > { %956 = vmatpush.msrb.mxu2 %v850_v12  ;;  %976 = vmatpush.msrb.mxu3 %v882_v13  ;;  %v1318_v9 = vld [vmem:[#allocation5 + $0xb20] sm:$0xff]  ;;  %v999_v12 = vld [vmem:[#allocation5 + $0x658] sm:$0xff] }
 0x10c   : > { %1214 = vmatpush.msra.mxu0 %v1135_v16  ;;  %1234 = vmatpush.msra.mxu1 %v1167_v17  ;;  %v1031_v13 = vld [vmem:[#allocation5 + $0x758] sm:$0xff]  ;;  %v1284_v16 = vld [vmem:[#allocation5 + $0xa10] sm:$0xff] }
 0x10d   : > { %1215 = vmatmul.f32.vlgmr.msra.gmra.mxu0 %v4792_v18  ;;  %1235 = vmatmul.f32.vlgmr.msra.gmra.mxu1 %v4794_v19  ;;  %v1316_v17 = vld [vmem:[#allocation5 + $0xb10] sm:$0xff] }
 0x10e   : > { %1346 = vmatpush.msrb.mxu0 %v1312_v20  ;;  %1366 = vmatpush.msrb.mxu1 %v1344_v21  ;;  %v997_v20 = vld [vmem:[#allocation5 + $0x648] sm:$0xff] }
 0x10f   : > { %957 = vmatpush.msrb.mxu2 %v848_v22  ;;  %977 = vmatpush.msrb.mxu3 %v880_v23  ;;  %v1029_v21 = vld [vmem:[#allocation5 + $0x748] sm:$0xff]  ;;  %v1282_v22 = vld [vmem:[#allocation5 + $0xa00] sm:$0xff] }
 0x110   : > { %1347 = vmatpush.msrb.mxu0 %v1310_v24  ;;  %1367 = vmatpush.msrb.mxu1 %v1342_v25  ;;  %v1314_v23 = vld [vmem:[#allocation5 + $0xb00] sm:$0xff]  ;;  %v4800_v24 = vpop.f32.mrf.mxu0  ;;  %v4802_v25 = vpop.f32.mrf.mxu1 }
 0x111   : > { %958 = vmatpush.msrb.mxu2 %v846_v26  ;;  %978 = vmatpush.msrb.mxu3 %v878_v27  ;;  %v1459_v26 = vld [vmem:[#allocation5 + $0xcf0] sm:$0xff] }
 0x112   : > { %1348 = vmatpush.msrb.mxu0 %v1308_v28  ;;  %1368 = vmatpush.msrb.mxu1 %v1340_v29  ;;  %v1491_v27 = vld [vmem:[#allocation5 + $0xdf0] sm:$0xff]  ;;  %v995_v28 = vld [vmem:[#allocation5 + $0x638] sm:$0xff] }
 0x113   : > { %959 = vmatpush.msrb.mxu2 %v844_v30  ;;  %979 = vmatpush.msrb.mxu3 %v876_v31  ;;  %v1027_v29 = vld [vmem:[#allocation5 + $0x738] sm:$0xff]  ;;  %v1457_v30 = vld [vmem:[#allocation5 + $0xce0] sm:$0xff] }
 0x114   : > { %1349 = vmatpush.msrb.mxu0 %v1306_v32  ;;  %1369 = vmatpush.msrb.mxu1 %v1338_v33  ;;  %v1489_v31 = vld [vmem:[#allocation5 + $0xde0] sm:$0xff]  ;;  %v993_v32 = vld [vmem:[#allocation5 + $0x628] sm:$0xff] }
 0x115   : > { %960 = vmatpush.msrb.mxu2 %v842_v34  ;;  %980 = vmatpush.msrb.mxu3 %v874_v35  ;;  %v1025_v33 = vld [vmem:[#allocation5 + $0x728] sm:$0xff]  ;;  %v1455_v34 = vld [vmem:[#allocation5 + $0xcd0] sm:$0xff] }
 0x116   : > { %961 = vmatmul.f32.vlgmr.msrb.gmra.mxu2 %v4778_v46  ;;  %981 = vmatmul.f32.vlgmr.msrb.gmra.mxu3 %v4780_v47  ;;  %v1045_v46 = vld [vmem:[#allocation5 + $0x7c8] sm:$0xff]  ;;  %v1298_v47 = vld [vmem:[#allocation5 + $0xa80] sm:$0xff]  ;;  %v1487_v35 = vld [vmem:[#allocation5 + $0xdd0] sm:$0xff] }
 0x117   : > { %1092 = vmatpush.msra.mxu2 %v1019_v36  ;;  %1112 = vmatpush.msra.mxu3 %v1051_v37  ;;  %v991_v36 = vld [vmem:[#allocation5 + $0x618] sm:$0xff] }
 0x118   : > { %1350 = vmatpush.msrb.mxu0 %v1304_v38  ;;  %1370 = vmatpush.msrb.mxu1 %v1336_v39  ;;  %v1023_v37 = vld [vmem:[#allocation5 + $0x718] sm:$0xff]  ;;  %v1453_v38 = vld [vmem:[#allocation5 + $0xcc0] sm:$0xff] }
 0x119   : > { %1093 = vmatpush.msra.mxu2 %v1017_v40  ;;  %1113 = vmatpush.msra.mxu3 %v1049_v41  ;;  %v1485_v39 = vld [vmem:[#allocation5 + $0xdc0] sm:$0xff]  ;;  %v989_v40 = vld [vmem:[#allocation5 + $0x608] sm:$0xff] }
 0x11a   : > { %1351 = vmatpush.msrb.mxu0 %v1302_v42  ;;  %1371 = vmatpush.msrb.mxu1 %v1334_v14  ;;  %v1021_v41 = vld [vmem:[#allocation5 + $0x708] sm:$0xff]  ;;  %v1166_v42 = vld [vmem:[#allocation5 + $0x8f8] sm:$0xff] }
 0x11b   : > { %1094 = vmatpush.msra.mxu2 %v1015_v15  ;;  %1114 = vmatpush.msra.mxu3 %v1047_v43  ;;  %v1198_v14 = vld [vmem:[#allocation5 + $0x9f8] sm:$0xff]  ;;  %v1451_v15 = vld [vmem:[#allocation5 + $0xcb0] sm:$0xff] }
 0x11c   : > { %1352 = vmatpush.msrb.mxu0 %v1300_v44  ;;  %1372 = vmatpush.msrb.mxu1 %v1332_v45  ;;  %v1483_v43 = vld [vmem:[#allocation5 + $0xdb0] sm:$0xff]  ;;  %v1164_v44 = vld [vmem:[#allocation5 + $0x8e8] sm:$0xff] }
 0x11d   : > { %1095 = vmatpush.msra.mxu2 %v1013_v48  ;;  %1115 = vmatpush.msra.mxu3 %v1045_v46  ;;  %v1196_v45 = vld [vmem:[#allocation5 + $0x9e8] sm:$0xff]  ;;  %v1449_v48 = vld [vmem:[#allocation5 + $0xca0] sm:$0xff] }
 0x11e   : > { %1353 = vmatpush.msrb.mxu0 %v1298_v47  ;;  %1373 = vmatpush.msrb.mxu1 %v1330_v49  ;;  %v1481_v46 = vld [vmem:[#allocation5 + $0xda0] sm:$0xff]  ;;  %v1162_v47 = vld [vmem:[#allocation5 + $0x8d8] sm:$0xff] }
 0x11f   : > { %1096 = vmatpush.msra.mxu2 %v1011_v50  ;;  %1116 = vmatpush.msra.mxu3 %v1043_v51  ;;  %v1194_v49 = vld [vmem:[#allocation5 + $0x9d8] sm:$0xff]  ;;  %v1447_v50 = vld [vmem:[#allocation5 + $0xc90] sm:$0xff] }
 0x120   : > { %1354 = vmatpush.msrb.mxu0 %v1296_v52  ;;  %1374 = vmatpush.msrb.mxu1 %v1328_v53  ;;  %v1479_v51 = vld [vmem:[#allocation5 + $0xd90] sm:$0xff]  ;;  %v1160_v52 = vld [vmem:[#allocation5 + $0x8c8] sm:$0xff]  ;;  %v1477_v53 = vld [vmem:[#allocation5 + $0xd80] sm:$0xff] }
 0x121   : > { %1097 = vmatpush.msra.mxu2 %v1009_v54  ;;  %1117 = vmatpush.msra.mxu3 %v1041_v55  ;;  %v1158_v54 = vld [vmem:[#allocation5 + $0x8b8] sm:$0xff] }
 0x122   : > { %1355 = vmatpush.msrb.mxu0 %v1294_v56  ;;  %1375 = vmatpush.msrb.mxu1 %v1326_v57  ;;  %v1190_v55 = vld [vmem:[#allocation5 + $0x9b8] sm:$0xff]  ;;  %v1443_v56 = vld [vmem:[#allocation5 + $0xc70] sm:$0xff] }
 0x123   : > { %1098 = vmatpush.msra.mxu2 %v1007_v58  ;;  %1118 = vmatpush.msra.mxu3 %v1039_v59  ;;  %v1475_v57 = vld [vmem:[#allocation5 + $0xd70] sm:$0xff]  ;;  %v1156_v58 = vld [vmem:[#allocation5 + $0x8a8] sm:$0xff] }
 0x124   : > { %1356 = vmatpush.msrb.mxu0 %v1292_v60  ;;  %1376 = vmatpush.msrb.mxu1 %v1324_v61  ;;  %v1188_v59 = vld [vmem:[#allocation5 + $0x9a8] sm:$0xff]  ;;  %v1441_v60 = vld [vmem:[#allocation5 + $0xc60] sm:$0xff] }
 0x125   : > { %1099 = vmatpush.msra.mxu2 %v1005_v62  ;;  %1119 = vmatpush.msra.mxu3 %v1037_v63  ;;  %v1473_v61 = vld [vmem:[#allocation5 + $0xd60] sm:$0xff]  ;;  %v1154_v62 = vld [vmem:[#allocation5 + $0x898] sm:$0xff] }
 0x126   : > { %1357 = vmatpush.msrb.mxu0 %v1290_v0  ;;  %1377 = vmatpush.msrb.mxu1 %v1322_v1  ;;  %v1186_v63 = vld [vmem:[#allocation5 + $0x998] sm:$0xff]  ;;  %v1439_v0 = vld [vmem:[#allocation5 + $0xc50] sm:$0xff] }
 0x127   : > { %1100 = vmatpush.msra.mxu2 %v1003_v2  ;;  %1120 = vmatpush.msra.mxu3 %v1035_v3  ;;  %v1471_v1 = vld [vmem:[#allocation5 + $0xd50] sm:$0xff]  ;;  %v1152_v2 = vld [vmem:[#allocation5 + $0x888] sm:$0xff] }
 0x128   : > { %1358 = vmatpush.msrb.mxu0 %v1288_v4  ;;  %1378 = vmatpush.msrb.mxu1 %v1320_v5  ;;  %v1184_v3 = vld [vmem:[#allocation5 + $0x988] sm:$0xff]  ;;  %v1437_v4 = vld [vmem:[#allocation5 + $0xc40] sm:$0xff] }
 0x129   : > { %1101 = vmatpush.msra.mxu2 %v1001_v6  ;;  %1121 = vmatpush.msra.mxu3 %v1033_v7  ;;  %v1469_v5 = vld [vmem:[#allocation5 + $0xd40] sm:$0xff]  ;;  %v1150_v6 = vld [vmem:[#allocation5 + $0x878] sm:$0xff] }
 0x12a   : > { %1359 = vmatpush.msrb.mxu0 %v1286_v8  ;;  %1379 = vmatpush.msrb.mxu1 %v1318_v9  ;;  %v1182_v7 = vld [vmem:[#allocation5 + $0x978] sm:$0xff]  ;;  %v1435_v8 = vld [vmem:[#allocation5 + $0xc30] sm:$0xff] }
 0x12b   : > { %1102 = vmatpush.msra.mxu2 %v999_v12  ;;  %1122 = vmatpush.msra.mxu3 %v1031_v13  ;;  %v1467_v9 = vld [vmem:[#allocation5 + $0xd30] sm:$0xff]  ;;  %v1148_v12 = vld [vmem:[#allocation5 + $0x868] sm:$0xff] }
 0x12c   : > { %1360 = vmatpush.msrb.mxu0 %v1284_v16  ;;  %1380 = vmatpush.msrb.mxu1 %v1316_v17  ;;  %v1180_v13 = vld [vmem:[#allocation5 + $0x968] sm:$0xff]  ;;  %v1433_v16 = vld [vmem:[#allocation5 + $0xc20] sm:$0xff] }
 0x12d   : > { %1103 = vmatpush.msra.mxu2 %v997_v20  ;;  %1123 = vmatpush.msra.mxu3 %v1029_v21  ;;  %v1465_v17 = vld [vmem:[#allocation5 + $0xd20] sm:$0xff]  ;;  %v1146_v20 = vld [vmem:[#allocation5 + $0x858] sm:$0xff] }
 0x12e   : > { %1361 = vmatpush.msrb.mxu0 %v1282_v22  ;;  %1381 = vmatpush.msrb.mxu1 %v1314_v23  ;;  %v1178_v21 = vld [vmem:[#allocation5 + $0x958] sm:$0xff]  ;;  %v1431_v22 = vld [vmem:[#allocation5 + $0xc10] sm:$0xff] }
 0x12f   : > { %1362 = vmatmul.f32.vlgmr.msrb.gmra.mxu0 %v4800_v24  ;;  %1382 = vmatmul.f32.vlgmr.msrb.gmra.mxu1 %v4802_v25  ;;  %v1463_v23 = vld [vmem:[#allocation5 + $0xd10] sm:$0xff] }
 0x130   : > { %1493 = vmatpush.msra.mxu0 %v1459_v26  ;;  %1513 = vmatpush.msra.mxu1 %v1491_v27  ;;  %v1144_v26 = vld [vmem:[#allocation5 + $0x848] sm:$0xff] }
 0x131   : > { %1104 = vmatpush.msra.mxu2 %v995_v28  ;;  %1124 = vmatpush.msra.mxu3 %v1027_v29  ;;  %v1176_v27 = vld [vmem:[#allocation5 + $0x948] sm:$0xff]  ;;  %v1429_v28 = vld [vmem:[#allocation5 + $0xc00] sm:$0xff] }
 0x132   : > { %1494 = vmatpush.msra.mxu0 %v1457_v30  ;;  %1514 = vmatpush.msra.mxu1 %v1489_v31  ;;  %v1461_v29 = vld [vmem:[#allocation5 + $0xd00] sm:$0xff]  ;;  %v1606_v30 = vld [vmem:[#allocation5 + $0xef0] sm:$0xff] }
 0x133   : > { %1105 = vmatpush.msra.mxu2 %v993_v32  ;;  %1125 = vmatpush.msra.mxu3 %v1025_v33  ;;  %v1638_v31 = vld [vmem:[#allocation5 + $0xff0] sm:$0xff]  ;;  %v4808_v32 = vpop.f32.mrf.mxu0  ;;  %v4810_v33 = vpop.f32.mrf.mxu1 }
 0x134   : > { %1495 = vmatpush.msra.mxu0 %v1455_v34  ;;  %1515 = vmatpush.msra.mxu1 %v1487_v35  ;;  %v1142_v34 = vld [vmem:[#allocation5 + $0x838] sm:$0xff] }
 0x135   : > { %1106 = vmatpush.msra.mxu2 %v991_v36  ;;  %1126 = vmatpush.msra.mxu3 %v1023_v37  ;;  %v1174_v35 = vld [vmem:[#allocation5 + $0x938] sm:$0xff]  ;;  %v1604_v36 = vld [vmem:[#allocation5 + $0xee0] sm:$0xff] }
 0x136   : > { %1496 = vmatpush.msra.mxu0 %v1453_v38  ;;  %1516 = vmatpush.msra.mxu1 %v1485_v39  ;;  %v1636_v37 = vld [vmem:[#allocation5 + $0xfe0] sm:$0xff]  ;;  %v1140_v38 = vld [vmem:[#allocation5 + $0x828] sm:$0xff] }
 0x137   : > { %1107 = vmatpush.msra.mxu2 %v989_v40  ;;  %1127 = vmatpush.msra.mxu3 %v1021_v41  ;;  %v1172_v39 = vld [vmem:[#allocation5 + $0x928] sm:$0xff]  ;;  %v1602_v40 = vld [vmem:[#allocation5 + $0xed0] sm:$0xff] }
 0x138   : > { %1108 = vmatmul.f32.vlgmr.msra.gmra.mxu2 %v4784_v10  ;;  %1128 = vmatmul.f32.vlgmr.msra.gmra.mxu3 %v4786_v11  ;;  %v1192_v10 = vld [vmem:[#allocation5 + $0x9c8] sm:$0xff]  ;;  %v1445_v11 = vld [vmem:[#allocation5 + $0xc80] sm:$0xff]  ;;  %v1634_v41 = vld [vmem:[#allocation5 + $0xfd0] sm:$0xff] }
 0x139   : > { %1239 = vmatpush.msrb.mxu2 %v1166_v42  ;;  %1259 = vmatpush.msrb.mxu3 %v1198_v14  ;;  %v1138_v42 = vld [vmem:[#allocation5 + $0x818] sm:$0xff] }
 0x13a   : > { %1497 = vmatpush.msra.mxu0 %v1451_v15  ;;  %1517 = vmatpush.msra.mxu1 %v1483_v43  ;;  %v1170_v14 = vld [vmem:[#allocation5 + $0x918] sm:$0xff]  ;;  %v1600_v15 = vld [vmem:[#allocation5 + $0xec0] sm:$0xff] }
 0x13b   : > { %1240 = vmatpush.msrb.mxu2 %v1164_v44  ;;  %1260 = vmatpush.msrb.mxu3 %v1196_v45  ;;  %v1632_v43 = vld [vmem:[#allocation5 + $0xfc0] sm:$0xff]  ;;  %v1136_v44 = vld [vmem:[#allocation5 + $0x808] sm:$0xff] }
 0x13c   : > { %1498 = vmatpush.msra.mxu0 %v1449_v48  ;;  %1518 = vmatpush.msra.mxu1 %v1481_v46  ;;  %v1168_v45 = vld [vmem:[#allocation5 + $0x908] sm:$0xff]  ;;  %v1313_v48 = vld [vmem:[#allocation5 + $0xaf8] sm:$0xff] }
 0x13d   : > { %1241 = vmatpush.msrb.mxu2 %v1162_v47  ;;  %1261 = vmatpush.msrb.mxu3 %v1194_v49  ;;  %v1345_v46 = vld [vmem:[#allocation5 + $0xbf8] sm:$0xff]  ;;  %v1598_v47 = vld [vmem:[#allocation5 + $0xeb0] sm:$0xff] }
 0x13e   : > { %1499 = vmatpush.msra.mxu0 %v1447_v50  ;;  %1519 = vmatpush.msra.mxu1 %v1479_v51  ;;  %v1630_v49 = vld [vmem:[#allocation5 + $0xfb0] sm:$0xff]  ;;  %v1311_v50 = vld [vmem:[#allocation5 + $0xae8] sm:$0xff] }
 0x13f   : > { %1242 = vmatpush.msrb.mxu2 %v1160_v52  ;;  %1262 = vmatpush.msrb.mxu3 %v1192_v10  ;;  %v1343_v51 = vld [vmem:[#allocation5 + $0xbe8] sm:$0xff]  ;;  %v1596_v52 = vld [vmem:[#allocation5 + $0xea0] sm:$0xff] }
 0x140   : > { %1500 = vmatpush.msra.mxu0 %v1445_v11  ;;  %1520 = vmatpush.msra.mxu1 %v1477_v53  ;;  %v1628_v10 = vld [vmem:[#allocation5 + $0xfa0] sm:$0xff]  ;;  %v1309_v11 = vld [vmem:[#allocation5 + $0xad8] sm:$0xff] }
 0x141   : > { %1243 = vmatpush.msrb.mxu2 %v1158_v54  ;;  %1263 = vmatpush.msrb.mxu3 %v1190_v55  ;;  %v1341_v53 = vld [vmem:[#allocation5 + $0xbd8] sm:$0xff]  ;;  %v1594_v54 = vld [vmem:[#allocation5 + $0xe90] sm:$0xff] }
 0x142   : > { %1501 = vmatpush.msra.mxu0 %v1443_v56  ;;  %1521 = vmatpush.msra.mxu1 %v1475_v57  ;;  %v1626_v55 = vld [vmem:[#allocation5 + $0xf90] sm:$0xff]  ;;  %v1307_v56 = vld [vmem:[#allocation5 + $0xac8] sm:$0xff]  ;;  %v1624_v57 = vld [vmem:[#allocation5 + $0xf80] sm:$0xff] }
 0x143   : > { %1244 = vmatpush.msrb.mxu2 %v1156_v58  ;;  %1264 = vmatpush.msrb.mxu3 %v1188_v59  ;;  %v1305_v58 = vld [vmem:[#allocation5 + $0xab8] sm:$0xff] }
 0x144   : > { %1502 = vmatpush.msra.mxu0 %v1441_v60  ;;  %1522 = vmatpush.msra.mxu1 %v1473_v61  ;;  %v1337_v59 = vld [vmem:[#allocation5 + $0xbb8] sm:$0xff]  ;;  %v1590_v60 = vld [vmem:[#allocation5 + $0xe70] sm:$0xff] }
 0x145   : > { %1245 = vmatpush.msrb.mxu2 %v1154_v62  ;;  %1265 = vmatpush.msrb.mxu3 %v1186_v63  ;;  %v1622_v61 = vld [vmem:[#allocation5 + $0xf70] sm:$0xff]  ;;  %v1303_v62 = vld [vmem:[#allocation5 + $0xaa8] sm:$0xff] }
 0x146   : > { %1503 = vmatpush.msra.mxu0 %v1439_v0  ;;  %1523 = vmatpush.msra.mxu1 %v1471_v1  ;;  %v1335_v63 = vld [vmem:[#allocation5 + $0xba8] sm:$0xff]  ;;  %v1588_v0 = vld [vmem:[#allocation5 + $0xe60] sm:$0xff] }
 0x147   : > { %1246 = vmatpush.msrb.mxu2 %v1152_v2  ;;  %1266 = vmatpush.msrb.mxu3 %v1184_v3  ;;  %v1620_v1 = vld [vmem:[#allocation5 + $0xf60] sm:$0xff]  ;;  %v1301_v2 = vld [vmem:[#allocation5 + $0xa98] sm:$0xff] }
 0x148   : > { %1504 = vmatpush.msra.mxu0 %v1437_v4  ;;  %1524 = vmatpush.msra.mxu1 %v1469_v5  ;;  %v1333_v3 = vld [vmem:[#allocation5 + $0xb98] sm:$0xff]  ;;  %v1586_v4 = vld [vmem:[#allocation5 + $0xe50] sm:$0xff] }
 0x149   : > { %1247 = vmatpush.msrb.mxu2 %v1150_v6  ;;  %1267 = vmatpush.msrb.mxu3 %v1182_v7  ;;  %v1618_v5 = vld [vmem:[#allocation5 + $0xf50] sm:$0xff]  ;;  %v1299_v6 = vld [vmem:[#allocation5 + $0xa88] sm:$0xff] }
 0x14a   : > { %1505 = vmatpush.msra.mxu0 %v1435_v8  ;;  %1525 = vmatpush.msra.mxu1 %v1467_v9  ;;  %v1331_v7 = vld [vmem:[#allocation5 + $0xb88] sm:$0xff]  ;;  %v1584_v8 = vld [vmem:[#allocation5 + $0xe40] sm:$0xff] }
 0x14b   : > { %1248 = vmatpush.msrb.mxu2 %v1148_v12  ;;  %1268 = vmatpush.msrb.mxu3 %v1180_v13  ;;  %v1616_v9 = vld [vmem:[#allocation5 + $0xf40] sm:$0xff]  ;;  %v1297_v12 = vld [vmem:[#allocation5 + $0xa78] sm:$0xff] }
 0x14c   : > { %1506 = vmatpush.msra.mxu0 %v1433_v16  ;;  %1526 = vmatpush.msra.mxu1 %v1465_v17  ;;  %v1329_v13 = vld [vmem:[#allocation5 + $0xb78] sm:$0xff]  ;;  %v1582_v16 = vld [vmem:[#allocation5 + $0xe30] sm:$0xff] }
 0x14d   : > { %1249 = vmatpush.msrb.mxu2 %v1146_v20  ;;  %1269 = vmatpush.msrb.mxu3 %v1178_v21  ;;  %v1614_v17 = vld [vmem:[#allocation5 + $0xf30] sm:$0xff]  ;;  %v1295_v20 = vld [vmem:[#allocation5 + $0xa68] sm:$0xff] }
 0x14e   : > { %1507 = vmatpush.msra.mxu0 %v1431_v22  ;;  %1527 = vmatpush.msra.mxu1 %v1463_v23  ;;  %v1327_v21 = vld [vmem:[#allocation5 + $0xb68] sm:$0xff]  ;;  %v1580_v22 = vld [vmem:[#allocation5 + $0xe20] sm:$0xff] }
 0x14f   : > { %1250 = vmatpush.msrb.mxu2 %v1144_v26  ;;  %1270 = vmatpush.msrb.mxu3 %v1176_v27  ;;  %v1612_v23 = vld [vmem:[#allocation5 + $0xf20] sm:$0xff]  ;;  %v1293_v26 = vld [vmem:[#allocation5 + $0xa58] sm:$0xff] }
 0x150   : > { %1508 = vmatpush.msra.mxu0 %v1429_v28  ;;  %1528 = vmatpush.msra.mxu1 %v1461_v29  ;;  %v1325_v27 = vld [vmem:[#allocation5 + $0xb58] sm:$0xff]  ;;  %v1578_v28 = vld [vmem:[#allocation5 + $0xe10] sm:$0xff] }
 0x151   : > { %1509 = vmatmul.f32.vlgmr.msra.gmra.mxu0 %v4808_v32  ;;  %1529 = vmatmul.f32.vlgmr.msra.gmra.mxu1 %v4810_v33  ;;  %v1610_v29 = vld [vmem:[#allocation5 + $0xf10] sm:$0xff] }
 0x152   : > { %1640 = vmatpush.msrb.mxu0 %v1606_v30  ;;  %1660 = vmatpush.msrb.mxu1 %v1638_v31  ;;  %v1291_v30 = vld [vmem:[#allocation5 + $0xa48] sm:$0xff] }
 0x153   : > { %1251 = vmatpush.msrb.mxu2 %v1142_v34  ;;  %1271 = vmatpush.msrb.mxu3 %v1174_v35  ;;  %v1323_v31 = vld [vmem:[#allocation5 + $0xb48] sm:$0xff]  ;;  %v1576_v34 = vld [vmem:[#allocation5 + $0xe00] sm:$0xff] }
 0x154   : > { %1641 = vmatpush.msrb.mxu0 %v1604_v36  ;;  %1661 = vmatpush.msrb.mxu1 %v1636_v37  ;;  %v1608_v35 = vld [vmem:[#allocation5 + $0xf00] sm:$0xff]  ;;  %v1753_v36 = vld [vmem:[#allocation5 + $0x10f0] sm:$0xff] }
 0x155   : > { %1252 = vmatpush.msrb.mxu2 %v1140_v38  ;;  %1272 = vmatpush.msrb.mxu3 %v1172_v39  ;;  %v1785_v37 = vld [vmem:[#allocation5 + $0x11f0] sm:$0xff]  ;;  %v4816_v38 = vpop.f32.mrf.mxu0  ;;  %v4818_v39 = vpop.f32.mrf.mxu1 }
 0x156   : > { %1642 = vmatpush.msrb.mxu0 %v1602_v40  ;;  %1662 = vmatpush.msrb.mxu1 %v1634_v41  ;;  %v1289_v40 = vld [vmem:[#allocation5 + $0xa38] sm:$0xff] }
 0x157   : > { %1253 = vmatpush.msrb.mxu2 %v1138_v42  ;;  %1273 = vmatpush.msrb.mxu3 %v1170_v14  ;;  %v1321_v41 = vld [vmem:[#allocation5 + $0xb38] sm:$0xff]  ;;  %v1751_v42 = vld [vmem:[#allocation5 + $0x10e0] sm:$0xff] }
 0x158   : > { %1643 = vmatpush.msrb.mxu0 %v1600_v15  ;;  %1663 = vmatpush.msrb.mxu1 %v1632_v43  ;;  %v1783_v14 = vld [vmem:[#allocation5 + $0x11e0] sm:$0xff]  ;;  %v1287_v15 = vld [vmem:[#allocation5 + $0xa28] sm:$0xff] }
 0x159   : > { %1254 = vmatpush.msrb.mxu2 %v1136_v44  ;;  %1274 = vmatpush.msrb.mxu3 %v1168_v45  ;;  %v1319_v43 = vld [vmem:[#allocation5 + $0xb28] sm:$0xff]  ;;  %v1749_v44 = vld [vmem:[#allocation5 + $0x10d0] sm:$0xff] }
 0x15a   : > { %1255 = vmatmul.f32.vlgmr.msrb.gmra.mxu2 %v4792_v18  ;;  %1275 = vmatmul.f32.vlgmr.msrb.gmra.mxu3 %v4794_v19  ;;  %v1339_v18 = vld [vmem:[#allocation5 + $0xbc8] sm:$0xff]  ;;  %v1592_v19 = vld [vmem:[#allocation5 + $0xe80] sm:$0xff]  ;;  %v1781_v45 = vld [vmem:[#allocation5 + $0x11d0] sm:$0xff] }
 0x15b   : > { %1386 = vmatpush.msra.mxu2 %v1313_v48  ;;  %1406 = vmatpush.msra.mxu3 %v1345_v46  ;;  %v1285_v48 = vld [vmem:[#allocation5 + $0xa18] sm:$0xff] }
 0x15c   : > { %1644 = vmatpush.msrb.mxu0 %v1598_v47  ;;  %1664 = vmatpush.msrb.mxu1 %v1630_v49  ;;  %v1317_v46 = vld [vmem:[#allocation5 + $0xb18] sm:$0xff]  ;;  %v1747_v47 = vld [vmem:[#allocation5 + $0x10c0] sm:$0xff] }
 0x15d   : > { %1387 = vmatpush.msra.mxu2 %v1311_v50  ;;  %1407 = vmatpush.msra.mxu3 %v1343_v51  ;;  %v1779_v49 = vld [vmem:[#allocation5 + $0x11c0] sm:$0xff]  ;;  %v1283_v50 = vld [vmem:[#allocation5 + $0xa08] sm:$0xff] }
 0x15e   : > { %1645 = vmatpush.msrb.mxu0 %v1596_v52  ;;  %1665 = vmatpush.msrb.mxu1 %v1628_v10  ;;  %v1315_v51 = vld [vmem:[#allocation5 + $0xb08] sm:$0xff]  ;;  %v1460_v52 = vld [vmem:[#allocation5 + $0xcf8] sm:$0xff] }
 0x15f   : > { %1388 = vmatpush.msra.mxu2 %v1309_v11  ;;  %1408 = vmatpush.msra.mxu3 %v1341_v53  ;;  %v1492_v10 = vld [vmem:[#allocation5 + $0xdf8] sm:$0xff]  ;;  %v1745_v11 = vld [vmem:[#allocation5 + $0x10b0] sm:$0xff] }
 0x160   : > { %1646 = vmatpush.msrb.mxu0 %v1594_v54  ;;  %1666 = vmatpush.msrb.mxu1 %v1626_v55  ;;  %v1777_v53 = vld [vmem:[#allocation5 + $0x11b0] sm:$0xff]  ;;  %v1458_v54 = vld [vmem:[#allocation5 + $0xce8] sm:$0xff] }
 0x161   : > { %1389 = vmatpush.msra.mxu2 %v1307_v56  ;;  %1409 = vmatpush.msra.mxu3 %v1339_v18  ;;  %v1490_v55 = vld [vmem:[#allocation5 + $0xde8] sm:$0xff]  ;;  %v1743_v56 = vld [vmem:[#allocation5 + $0x10a0] sm:$0xff] }
 0x162   : > { %1647 = vmatpush.msrb.mxu0 %v1592_v19  ;;  %1667 = vmatpush.msrb.mxu1 %v1624_v57  ;;  %v1775_v18 = vld [vmem:[#allocation5 + $0x11a0] sm:$0xff]  ;;  %v1456_v19 = vld [vmem:[#allocation5 + $0xcd8] sm:$0xff] }
 0x163   : > { %1390 = vmatpush.msra.mxu2 %v1305_v58  ;;  %1410 = vmatpush.msra.mxu3 %v1337_v59  ;;  %v1488_v57 = vld [vmem:[#allocation5 + $0xdd8] sm:$0xff]  ;;  %v1741_v58 = vld [vmem:[#allocation5 + $0x1090] sm:$0xff] }
 0x164   : > { %1648 = vmatpush.msrb.mxu0 %v1590_v60  ;;  %1668 = vmatpush.msrb.mxu1 %v1622_v61  ;;  %v1773_v59 = vld [vmem:[#allocation5 + $0x1190] sm:$0xff]  ;;  %v1454_v60 = vld [vmem:[#allocation5 + $0xcc8] sm:$0xff]  ;;  %v1771_v61 = vld [vmem:[#allocation5 + $0x1180] sm:$0xff] }
 0x165   : > { %1391 = vmatpush.msra.mxu2 %v1303_v62  ;;  %1411 = vmatpush.msra.mxu3 %v1335_v63  ;;  %v1452_v62 = vld [vmem:[#allocation5 + $0xcb8] sm:$0xff] }
 0x166   : > { %1649 = vmatpush.msrb.mxu0 %v1588_v0  ;;  %1669 = vmatpush.msrb.mxu1 %v1620_v1  ;;  %v1484_v63 = vld [vmem:[#allocation5 + $0xdb8] sm:$0xff]  ;;  %v1737_v0 = vld [vmem:[#allocation5 + $0x1070] sm:$0xff] }
 0x167   : > { %1392 = vmatpush.msra.mxu2 %v1301_v2  ;;  %1412 = vmatpush.msra.mxu3 %v1333_v3  ;;  %v1769_v1 = vld [vmem:[#allocation5 + $0x1170] sm:$0xff]  ;;  %v1450_v2 = vld [vmem:[#allocation5 + $0xca8] sm:$0xff] }
 0x168   : > { %1650 = vmatpush.msrb.mxu0 %v1586_v4  ;;  %1670 = vmatpush.msrb.mxu1 %v1618_v5  ;;  %v1482_v3 = vld [vmem:[#allocation5 + $0xda8] sm:$0xff]  ;;  %v1735_v4 = vld [vmem:[#allocation5 + $0x1060] sm:$0xff] }
 0x169   : > { %1393 = vmatpush.msra.mxu2 %v1299_v6  ;;  %1413 = vmatpush.msra.mxu3 %v1331_v7  ;;  %v1767_v5 = vld [vmem:[#allocation5 + $0x1160] sm:$0xff]  ;;  %v1448_v6 = vld [vmem:[#allocation5 + $0xc98] sm:$0xff] }
 0x16a   : > { %1651 = vmatpush.msrb.mxu0 %v1584_v8  ;;  %1671 = vmatpush.msrb.mxu1 %v1616_v9  ;;  %v1480_v7 = vld [vmem:[#allocation5 + $0xd98] sm:$0xff]  ;;  %v1733_v8 = vld [vmem:[#allocation5 + $0x1050] sm:$0xff] }
 0x16b   : > { %1394 = vmatpush.msra.mxu2 %v1297_v12  ;;  %1414 = vmatpush.msra.mxu3 %v1329_v13  ;;  %v1765_v9 = vld [vmem:[#allocation5 + $0x1150] sm:$0xff]  ;;  %v1446_v12 = vld [vmem:[#allocation5 + $0xc88] sm:$0xff] }
 0x16c   : > { %1652 = vmatpush.msrb.mxu0 %v1582_v16  ;;  %1672 = vmatpush.msrb.mxu1 %v1614_v17  ;;  %v1478_v13 = vld [vmem:[#allocation5 + $0xd88] sm:$0xff]  ;;  %v1731_v16 = vld [vmem:[#allocation5 + $0x1040] sm:$0xff] }
 0x16d   : > { %1395 = vmatpush.msra.mxu2 %v1295_v20  ;;  %1415 = vmatpush.msra.mxu3 %v1327_v21  ;;  %v1763_v17 = vld [vmem:[#allocation5 + $0x1140] sm:$0xff]  ;;  %v1444_v20 = vld [vmem:[#allocation5 + $0xc78] sm:$0xff] }
 0x16e   : > { %1653 = vmatpush.msrb.mxu0 %v1580_v22  ;;  %1673 = vmatpush.msrb.mxu1 %v1612_v23  ;;  %v1476_v21 = vld [vmem:[#allocation5 + $0xd78] sm:$0xff]  ;;  %v1729_v22 = vld [vmem:[#allocation5 + $0x1030] sm:$0xff] }
 0x16f   : > { %1396 = vmatpush.msra.mxu2 %v1293_v26  ;;  %1416 = vmatpush.msra.mxu3 %v1325_v27  ;;  %v1761_v23 = vld [vmem:[#allocation5 + $0x1130] sm:$0xff]  ;;  %v1442_v26 = vld [vmem:[#allocation5 + $0xc68] sm:$0xff] }
 0x170   : > { %1654 = vmatpush.msrb.mxu0 %v1578_v28  ;;  %1674 = vmatpush.msrb.mxu1 %v1610_v29  ;;  %v1474_v27 = vld [vmem:[#allocation5 + $0xd68] sm:$0xff]  ;;  %v1727_v28 = vld [vmem:[#allocation5 + $0x1020] sm:$0xff] }
 0x171   : > { %1397 = vmatpush.msra.mxu2 %v1291_v30  ;;  %1417 = vmatpush.msra.mxu3 %v1323_v31  ;;  %v1759_v29 = vld [vmem:[#allocation5 + $0x1120] sm:$0xff]  ;;  %v1440_v30 = vld [vmem:[#allocation5 + $0xc58] sm:$0xff] }
 0x172   : > { %1655 = vmatpush.msrb.mxu0 %v1576_v34  ;;  %1675 = vmatpush.msrb.mxu1 %v1608_v35  ;;  %v1472_v31 = vld [vmem:[#allocation5 + $0xd58] sm:$0xff]  ;;  %v1725_v34 = vld [vmem:[#allocation5 + $0x1010] sm:$0xff] }
 0x173   : > { %1656 = vmatmul.f32.vlgmr.msrb.gmra.mxu0 %v4816_v38  ;;  %1676 = vmatmul.f32.vlgmr.msrb.gmra.mxu1 %v4818_v39  ;;  %v1757_v35 = vld [vmem:[#allocation5 + $0x1110] sm:$0xff] }
 0x174   : > { %1787 = vmatpush.msra.mxu0 %v1753_v36  ;;  %1807 = vmatpush.msra.mxu1 %v1785_v37  ;;  %v1438_v36 = vld [vmem:[#allocation5 + $0xc48] sm:$0xff] }
 0x175   : > { %1398 = vmatpush.msra.mxu2 %v1289_v40  ;;  %1418 = vmatpush.msra.mxu3 %v1321_v41  ;;  %v1470_v37 = vld [vmem:[#allocation5 + $0xd48] sm:$0xff]  ;;  %v1723_v40 = vld [vmem:[#allocation5 + $0x1000] sm:$0xff] }
 0x176   : > { %1788 = vmatpush.msra.mxu0 %v1751_v42  ;;  %1808 = vmatpush.msra.mxu1 %v1783_v14  ;;  %v1755_v41 = vld [vmem:[#allocation5 + $0x1100] sm:$0xff]  ;;  %v1436_v42 = vld [vmem:[#allocation5 + $0xc38] sm:$0xff] }
 0x177   : > { %1399 = vmatpush.msra.mxu2 %v1287_v15  ;;  %1419 = vmatpush.msra.mxu3 %v1319_v43  ;;  %v1468_v14 = vld [vmem:[#allocation5 + $0xd38] sm:$0xff]  ;;  %v4824_v15 = vpop.f32.mrf.mxu0  ;;  %v4826_v43 = vpop.f32.mrf.mxu1 }
 0x178   : > { %1789 = vmatpush.msra.mxu0 %v1749_v44  ;;  %1809 = vmatpush.msra.mxu1 %v1781_v45  ;;  %v1434_v44 = vld [vmem:[#allocation5 + $0xc28] sm:$0xff] }
 0x179   : > { %1400 = vmatpush.msra.mxu2 %v1285_v48  ;;  %1420 = vmatpush.msra.mxu3 %v1317_v46  ;;  %v1466_v45 = vld [vmem:[#allocation5 + $0xd28] sm:$0xff]  ;;  %v4830_v48 = vld [vmem:[#allocation10] sm:$0xff]  ;;  %v1432_v46 = vld [vmem:[#allocation5 + $0xc18] sm:$0xff] }
 0x17a   : > { %1790 = vmatpush.msra.mxu0 %v1747_v47  ;;  %1810 = vmatpush.msra.mxu1 %v1779_v49  ;;  %v1464_v47 = vld [vmem:[#allocation5 + $0xd18] sm:$0xff]  ;;  %v4532_v49 = vmov 0  }
 0x17b   : > { %1401 = vmatpush.msra.mxu2 %v1283_v50  ;;  %1421 = vmatpush.msra.mxu3 %v1315_v51  ;;  %v1430_v50 = vld [vmem:[#allocation5 + $0xc08] sm:$0xff] }
 0x17c   : > { %1402 = vmatmul.f32.vlgmr.msra.gmra.mxu2 %v4800_v24  ;;  %1422 = vmatmul.f32.vlgmr.msra.gmra.mxu3 %v4802_v25  ;;  %v1486_v24 = vld [vmem:[#allocation5 + $0xdc8] sm:$0xff]  ;;  %v1739_v25 = vld [vmem:[#allocation5 + $0x1080] sm:$0xff] }
 0x17d   : > { %1533 = vmatpush.msrb.mxu2 %v1460_v52  ;;  %1553 = vmatpush.msrb.mxu3 %v1492_v10  ;;  %v1462_v51 = vld [vmem:[#allocation5 + $0xd08] sm:$0xff]  ;;  %v1607_v52 = vld [vmem:[#allocation5 + $0xef8] sm:$0xff] }
 0x17e   : > { %1791 = vmatpush.msra.mxu0 %v1745_v11  ;;  %1811 = vmatpush.msra.mxu1 %v1777_v53  ;;  %v1639_v10 = vld [vmem:[#allocation5 + $0xff8] sm:$0xff]  ;;  %v1605_v11 = vld [vmem:[#allocation5 + $0xee8] sm:$0xff] }
 0x17f   : > { %1534 = vmatpush.msrb.mxu2 %v1458_v54  ;;  %1554 = vmatpush.msrb.mxu3 %v1490_v55  ;;  %v1637_v53 = vld [vmem:[#allocation5 + $0xfe8] sm:$0xff]  ;;  %v1603_v54 = vld [vmem:[#allocation5 + $0xed8] sm:$0xff] }
 0x180   : > { %1792 = vmatpush.msra.mxu0 %v1743_v56  ;;  %1812 = vmatpush.msra.mxu1 %v1775_v18  ;;  %v1635_v55 = vld [vmem:[#allocation5 + $0xfd8] sm:$0xff]  ;;  %v1601_v56 = vld [vmem:[#allocation5 + $0xec8] sm:$0xff] }
 0x181   : > { %1535 = vmatpush.msrb.mxu2 %v1456_v19  ;;  %1555 = vmatpush.msrb.mxu3 %v1488_v57  ;;  %v1633_v18 = vld [vmem:[#allocation5 + $0xfc8] sm:$0xff]  ;;  %v1599_v19 = vld [vmem:[#allocation5 + $0xeb8] sm:$0xff] }
 0x182   : > { %1793 = vmatpush.msra.mxu0 %v1741_v58  ;;  %1813 = vmatpush.msra.mxu1 %v1773_v59  ;;  %v1631_v57 = vld [vmem:[#allocation5 + $0xfb8] sm:$0xff]  ;;  %v1597_v58 = vld [vmem:[#allocation5 + $0xea8] sm:$0xff] }
 0x183   : > { %1536 = vmatpush.msrb.mxu2 %v1454_v60  ;;  %1556 = vmatpush.msrb.mxu3 %v1486_v24  ;;  %v1627_v59 = vld [vmem:[#allocation5 + $0xf98] sm:$0xff]  ;;  %v1593_v60 = vld [vmem:[#allocation5 + $0xe88] sm:$0xff] }
 0x184   : > { %1794 = vmatpush.msra.mxu0 %v1739_v25  ;;  %1814 = vmatpush.msra.mxu1 %v1771_v61  ;;  %v1625_v24 = vld [vmem:[#allocation5 + $0xf88] sm:$0xff]  ;;  %v1591_v25 = vld [vmem:[#allocation5 + $0xe78] sm:$0xff] }
 0x185   : > { %1537 = vmatpush.msrb.mxu2 %v1452_v62  ;;  %1557 = vmatpush.msrb.mxu3 %v1484_v63  ;;  %v1623_v61 = vld [vmem:[#allocation5 + $0xf78] sm:$0xff]  ;;  %v1589_v62 = vld [vmem:[#allocation5 + $0xe68] sm:$0xff] }
 0x186   : > { %1795 = vmatpush.msra.mxu0 %v1737_v0  ;;  %1815 = vmatpush.msra.mxu1 %v1769_v1  ;;  %v1621_v63 = vld [vmem:[#allocation5 + $0xf68] sm:$0xff]  ;;  %v1587_v0 = vld [vmem:[#allocation5 + $0xe58] sm:$0xff] }
 0x187   : > { %1538 = vmatpush.msrb.mxu2 %v1450_v2  ;;  %1558 = vmatpush.msrb.mxu3 %v1482_v3  ;;  %v1619_v1 = vld [vmem:[#allocation5 + $0xf58] sm:$0xff]  ;;  %v1585_v2 = vld [vmem:[#allocation5 + $0xe48] sm:$0xff] }
 0x188   : > { %1796 = vmatpush.msra.mxu0 %v1735_v4  ;;  %1816 = vmatpush.msra.mxu1 %v1767_v5  ;;  %v1617_v3 = vld [vmem:[#allocation5 + $0xf48] sm:$0xff]  ;;  %v1583_v4 = vld [vmem:[#allocation5 + $0xe38] sm:$0xff] }
 0x189   : > { %1539 = vmatpush.msrb.mxu2 %v1448_v6  ;;  %1559 = vmatpush.msrb.mxu3 %v1480_v7  ;;  %v1615_v5 = vld [vmem:[#allocation5 + $0xf38] sm:$0xff]  ;;  %v1581_v6 = vld [vmem:[#allocation5 + $0xe28] sm:$0xff] }
 0x18a   : > { %1797 = vmatpush.msra.mxu0 %v1733_v8  ;;  %1817 = vmatpush.msra.mxu1 %v1765_v9  ;;  %v1613_v7 = vld [vmem:[#allocation5 + $0xf28] sm:$0xff]  ;;  %v1579_v8 = vld [vmem:[#allocation5 + $0xe18] sm:$0xff] }
 0x18b   : > { %1540 = vmatpush.msrb.mxu2 %v1446_v12  ;;  %1560 = vmatpush.msrb.mxu3 %v1478_v13  ;;  %v1611_v9 = vld [vmem:[#allocation5 + $0xf18] sm:$0xff]  ;;  %v1577_v12 = vld [vmem:[#allocation5 + $0xe08] sm:$0xff] }
 0x18c   : > { %1798 = vmatpush.msra.mxu0 %v1731_v16  ;;  %1818 = vmatpush.msra.mxu1 %v1763_v17  ;;  %v1609_v13 = vld [vmem:[#allocation5 + $0xf08] sm:$0xff]  ;;  %v1754_v16 = vld [vmem:[#allocation5 + $0x10f8] sm:$0xff] }
 0x18d   : > { %1541 = vmatpush.msrb.mxu2 %v1444_v20  ;;  %1561 = vmatpush.msrb.mxu3 %v1476_v21  ;;  %v1786_v17 = vld [vmem:[#allocation5 + $0x11f8] sm:$0xff]  ;;  %v1752_v20 = vld [vmem:[#allocation5 + $0x10e8] sm:$0xff] }
 0x18e   : > { %1799 = vmatpush.msra.mxu0 %v1729_v22  ;;  %1819 = vmatpush.msra.mxu1 %v1761_v23  ;;  %v1784_v21 = vld [vmem:[#allocation5 + $0x11e8] sm:$0xff]  ;;  %v1750_v22 = vld [vmem:[#allocation5 + $0x10d8] sm:$0xff] }
 0x18f   : > { %1542 = vmatpush.msrb.mxu2 %v1442_v26  ;;  %1562 = vmatpush.msrb.mxu3 %v1474_v27  ;;  %v1782_v23 = vld [vmem:[#allocation5 + $0x11d8] sm:$0xff]  ;;  %v1748_v26 = vld [vmem:[#allocation5 + $0x10c8] sm:$0xff] }
 0x190   : > { %1800 = vmatpush.msra.mxu0 %v1727_v28  ;;  %1820 = vmatpush.msra.mxu1 %v1759_v29  ;;  %v1780_v27 = vld [vmem:[#allocation5 + $0x11c8] sm:$0xff]  ;;  %v1746_v28 = vld [vmem:[#allocation5 + $0x10b8] sm:$0xff] }
 0x191   : > { %1543 = vmatpush.msrb.mxu2 %v1440_v30  ;;  %1563 = vmatpush.msrb.mxu3 %v1472_v31  ;;  %v1778_v29 = vld [vmem:[#allocation5 + $0x11b8] sm:$0xff]  ;;  %v1744_v30 = vld [vmem:[#allocation5 + $0x10a8] sm:$0xff] }
 0x192   : > { %1801 = vmatpush.msra.mxu0 %v1725_v34  ;;  %1821 = vmatpush.msra.mxu1 %v1757_v35  ;;  %v1774_v31 = vld [vmem:[#allocation5 + $0x1198] sm:$0xff]  ;;  %v1740_v34 = vld [vmem:[#allocation5 + $0x1088] sm:$0xff] }
 0x193   : > { %1544 = vmatpush.msrb.mxu2 %v1438_v36  ;;  %1564 = vmatpush.msrb.mxu3 %v1470_v37  ;;  %v1772_v35 = vld [vmem:[#allocation5 + $0x1188] sm:$0xff]  ;;  %v1738_v36 = vld [vmem:[#allocation5 + $0x1078] sm:$0xff] }
 0x194   : > { %1802 = vmatpush.msra.mxu0 %v1723_v40  ;;  %1822 = vmatpush.msra.mxu1 %v1755_v41  ;;  %v1770_v37 = vld [vmem:[#allocation5 + $0x1178] sm:$0xff]  ;;  %v1736_v40 = vld [vmem:[#allocation5 + $0x1068] sm:$0xff] }
 0x195   : > { %1803 = vmatmul.f32.vlgmr.msra.gmra.mxu0 %v4824_v15  ;;  %1823 = vmatmul.f32.vlgmr.msra.gmra.mxu1 %v4826_v43  ;;  %v1768_v41 = vld [vmem:[#allocation5 + $0x1168] sm:$0xff] }
 0x196   : > { %1545 = vmatpush.msrb.mxu2 %v1436_v42  ;;  %1565 = vmatpush.msrb.mxu3 %v1468_v14  ;;  %v1734_v42 = vld [vmem:[#allocation5 + $0x1058] sm:$0xff] }
 0x197   : > { %4278 = vset.pattern.permute.xlu0 %v4532_v49  ;;  %v1766_v14 = vld [vmem:[#allocation5 + $0x1158] sm:$0xff]  ;;  %v1728_v49 = vld [vmem:[#allocation5 + $0x1028] sm:$0xff] }
 0x198   : > { %1546 = vmatpush.msrb.mxu2 %v1434_v44  ;;  %1566 = vmatpush.msrb.mxu3 %v1466_v45  ;;  %v1732_v44 = vld [vmem:[#allocation5 + $0x1048] sm:$0xff] }
 0x199   : > { %1871 = vperm.xlu0 %4278, %v4830_v48   ;;  %v1764_v45 = vld [vmem:[#allocation5 + $0x1148] sm:$0xff] }
 0x19a   : > { %1547 = vmatpush.msrb.mxu2 %v1432_v46  ;;  %1567 = vmatpush.msrb.mxu3 %v1464_v47  ;;  %v1730_v46 = vld [vmem:[#allocation5 + $0x1038] sm:$0xff] }
 0x19b   : > { %v1762_v47 = vld [vmem:[#allocation5 + $0x1138] sm:$0xff] }
 0x19c   : > { %1548 = vmatpush.msrb.mxu2 %v1430_v50  ;;  %1568 = vmatpush.msrb.mxu3 %v1462_v51  ;;  %v1760_v50 = vld [vmem:[#allocation5 + $0x1128] sm:$0xff]  ;;  %v1726_v51 = vld [vmem:[#allocation5 + $0x1018] sm:$0xff] }
 0x19d   : > { %1549 = vmatmul.f32.vlgmr.msrb.gmra.mxu2 %v4808_v32  ;;  %1569 = vmatmul.f32.vlgmr.msrb.gmra.mxu3 %v4810_v33  ;;  %v1629_v32 = vld [vmem:[#allocation5 + $0xfa8] sm:$0xff]  ;;  %v1595_v33 = vld [vmem:[#allocation5 + $0xe98] sm:$0xff] }
 0x19e   : > { %1680 = vmatpush.msra.mxu2 %v1607_v52  ;;  %1700 = vmatpush.msra.mxu3 %v1639_v10  ;;  %v1758_v52 = vld [vmem:[#allocation5 + $0x1118] sm:$0xff]  ;;  %v1724_v10 = vld [vmem:[#allocation5 + $0x1008] sm:$0xff] }
 0x1a0   : > { %1681 = vmatpush.msra.mxu2 %v1605_v11  ;;  %1701 = vmatpush.msra.mxu3 %v1637_v53  ;;  %v1756_v11 = vld [vmem:[#allocation5 + $0x1108] sm:$0xff]  ;;  %v697_v53 = vpop.f32.mrf.mxu2 }
 0x1a2   : > { %1682 = vmatpush.msra.mxu2 %v1603_v54  ;;  %1702 = vmatpush.msra.mxu3 %v1635_v55  ;;  %v717_v54 = vpop.f32.mrf.mxu3 }
 0x1a4   : > { %1683 = vmatpush.msra.mxu2 %v1601_v56  ;;  %1703 = vmatpush.msra.mxu3 %v1633_v18  ;;  %v777_v18 = vpop.f32.mrf.mxu0 }
 0x1a6   : > { %1684 = vmatpush.msra.mxu2 %v1599_v19  ;;  %1704 = vmatpush.msra.mxu3 %v1631_v57  ;;  %v797_v19 = vpop.f32.mrf.mxu1 }
 0x1a8   : > { %1685 = vmatpush.msra.mxu2 %v1597_v58  ;;  %1705 = vmatpush.msra.mxu3 %v1629_v32  ;;  %v737_v55 = vpop.f32.mrf.mxu2 }
 0x1aa   : > { %1686 = vmatpush.msra.mxu2 %v1595_v33  ;;  %1706 = vmatpush.msra.mxu3 %v1627_v59  ;;  %v757_v56 = vpop.f32.mrf.mxu3 }
 0x1ac   : > { %1687 = vmatpush.msra.mxu2 %v1593_v60  ;;  %1707 = vmatpush.msra.mxu3 %v1625_v24  ;;  %v922_v32 = vpop.f32.mrf.mxu0 }
 0x1ae   : > { %1688 = vmatpush.msra.mxu2 %v1591_v25  ;;  %1708 = vmatpush.msra.mxu3 %v1623_v61  ;;  %v942_v33 = vpop.f32.mrf.mxu1 }
 0x1b0   : > { %1689 = vmatpush.msra.mxu2 %v1589_v62  ;;  %1709 = vmatpush.msra.mxu3 %v1621_v63  ;;  %v817_v57 = vpop.f32.mrf.mxu2 }
 0x1b2   : > { %1690 = vmatpush.msra.mxu2 %v1587_v0  ;;  %1710 = vmatpush.msra.mxu3 %v1619_v1  ;;  %v837_v58 = vpop.f32.mrf.mxu3 }
 0x1b4   : > { %1691 = vmatpush.msra.mxu2 %v1585_v2  ;;  %1711 = vmatpush.msra.mxu3 %v1617_v3  ;;  %v1069_v24 = vpop.f32.mrf.mxu0 }
 0x1b6   : > { %1692 = vmatpush.msra.mxu2 %v1583_v4  ;;  %1712 = vmatpush.msra.mxu3 %v1615_v5  ;;  %v1089_v25 = vpop.f32.mrf.mxu1  ;;  %v718_v5 = vadd.f32 %v717_v54, %v697_v53 }
 0x1b8   : > { %1693 = vmatpush.msra.mxu2 %v1581_v6  ;;  %1713 = vmatpush.msra.mxu3 %v1613_v7  ;;  %v962_v59 = vpop.f32.mrf.mxu2 }
 0x1ba   : > { %1694 = vmatpush.msra.mxu2 %v1579_v8  ;;  %1714 = vmatpush.msra.mxu3 %v1611_v9  ;;  %v982_v60 = vpop.f32.mrf.mxu3  ;;  %v778_v8 = vadd.f32 %v777_v18, %v718_v5  ;;  %v758_v9 = vadd.f32 %v757_v56, %v737_v55 }
 0x1bc   : > { %1695 = vmatpush.msra.mxu2 %v1577_v12  ;;  %1715 = vmatpush.msra.mxu3 %v1609_v13  ;;  %v1216_v63 = vpop.f32.mrf.mxu0 }
 0x1bd   : > { %1696 = vmatmul.f32.vlgmr.msra.gmra.mxu2 %v4816_v38  ;;  %1716 = vmatmul.f32.vlgmr.msra.gmra.mxu3 %v4818_v39  ;;  %v1776_v38 = vld [vmem:[#allocation5 + $0x11a8] sm:$0xff]  ;;  %v1742_v39 = vld [vmem:[#allocation5 + $0x1098] sm:$0xff] }
 0x1be   : > { %1827 = vmatpush.msrb.mxu2 %v1754_v16  ;;  %1847 = vmatpush.msrb.mxu3 %v1786_v17  ;;  %v798_v16 = vadd.f32 %v797_v19, %v778_v8  ;;  %v943_v17 = vadd.f32 %v942_v33, %v922_v32 }
 0x1c0   : > { %1828 = vmatpush.msrb.mxu2 %v1752_v20  ;;  %1848 = vmatpush.msrb.mxu3 %v1784_v21  ;;  %v1109_v61 = vpop.f32.mrf.mxu2  ;;  %v818_v20 = vadd.f32 %v817_v57, %v758_v9 }
 0x1c2   : > { %1829 = vmatpush.msrb.mxu2 %v1750_v22  ;;  %1849 = vmatpush.msrb.mxu3 %v1782_v23  ;;  %v1129_v62 = vpop.f32.mrf.mxu3  ;;  %v1090_v23 = vadd.f32 %v1089_v25, %v1069_v24 }
 0x1c4   : > { %1830 = vmatpush.msrb.mxu2 %v1748_v26  ;;  %1850 = vmatpush.msrb.mxu3 %v1780_v27  ;;  %v1363_v1 = vpop.f32.mrf.mxu0  ;;  %v983_v26 = vadd.f32 %v982_v60, %v962_v59  ;;  %v985_v27 = vadd.f32 %v943_v17, %v798_v16  ;;  %v4533_v60 = vmov 2048.0   ;;  %v4534_v16 = vmov 1  }
 0x1c5   : > { %4288 = vrcp.f32 %v4533_v60  ;;  %4279 = vset.pattern.permute.xlu1 %v4534_v16  ;;  %v4535_v17 = vmov 2   ;;  %v1980_v60 = vld [vmem:[%s5444_s3 + $0xb8] sm:$0xff] }
 0x1c6   : > { %1831 = vmatpush.msrb.mxu2 %v1746_v28  ;;  %1851 = vmatpush.msrb.mxu3 %v1778_v29  ;;  %v838_v28 = vadd.f32 %v837_v58, %v818_v20  ;;  %v4536_v20 = vmov 3   ;;  %v1976_v16 = vld [vmem:[%s5444_s3 + $0x98] sm:$0xff] }
 0x1c7   : > { %4280 = vset.pattern.permute.xlu2 %v4535_v17 }
 0x1c8   : > { %1832 = vmatpush.msrb.mxu2 %v1744_v30  ;;  %1852 = vmatpush.msrb.mxu3 %v1776_v38  ;;  %v1130_v30 = vadd.f32 %v1129_v62, %v1109_v61  ;;  %v1132_v38 = vadd.f32 %v1090_v23, %v985_v27 }
 0x1c9   : > { %1942 = vperm.xlu2 %4280, %v4830_v48  }
 0x1ca   : > { %1833 = vmatpush.msrb.mxu2 %v1742_v39  ;;  %1853 = vmatpush.msrb.mxu3 %v1774_v31  ;;  %v986_v39 = vadd.f32 %v983_v26, %v838_v28 }
 0x1cb   : > { %v4289_v24 = vpop.eup %4288 }
 0x1cc   : > { %1834 = vmatpush.msrb.mxu2 %v1740_v34  ;;  %1854 = vmatpush.msrb.mxu3 %v1772_v35  ;;  %v1887_v25 = vmul.f32 2048.0, %v4289_v24  ;;  %vm1891_vm2 = vweird.f32 %v4289_v24 }
 0x1ce   : > { %1835 = vmatpush.msrb.mxu2 %v1738_v36  ;;  %1855 = vmatpush.msrb.mxu3 %v1770_v37  ;;  %v1510_v6 = vpop.f32.mrf.mxu0  ;;  %v1888_v61 = vsub.f32 1.0, %v1887_v25  ;;  %v4014_v25 = vld [vmem:[%s5444_s3 + $0x1b8] sm:$0xff] }
 0x1d0   : > { %1836 = vmatpush.msrb.mxu2 %v1736_v40  ;;  %1856 = vmatpush.msrb.mxu3 %v1768_v41  ;;  %v1133_v40 = vadd.f32 %v1130_v30, %v986_v39  ;;  %v1972_v30 = vld [vmem:[%s5444_s3 + $0x78] sm:$0xff] }
 0x1d1   : > { %4281 = vset.pattern.permute.xlu2 %v4536_v20  ;;  %1989 = vmatpush.msrb.mxu0 %v1972_v30  ;;  %v4022_v39 = vld [vmem:[%s5444_s3 + $0x1f8] sm:$0xff]  ;;  %v1974_v30 = vld [vmem:[%s5444_s3 + $0x88] sm:$0xff] }
 0x1d2   : > { %1837 = vmatpush.msrb.mxu2 %v1734_v42  ;;  %1857 = vmatpush.msrb.mxu3 %v1766_v14  ;;  %v3994_v20 = vld [vmem:[%s5444_s3 + $0x118] sm:$0xff] }
 0x1d3   : > { %1950 = vperm.xlu2 %4281, %v4830_v48  }
 0x1d4   : > { %1838 = vmatpush.msrb.mxu2 %v1732_v44  ;;  %1858 = vmatpush.msrb.mxu3 %v1764_v45 }
 0x1d6   : > { %1839 = vmatpush.msrb.mxu2 %v1730_v46  ;;  %1859 = vmatpush.msrb.mxu3 %v1762_v47 }
 0x1d8   : > { %1840 = vmatpush.msrb.mxu2 %v1728_v49  ;;  %1860 = vmatpush.msrb.mxu3 %v1760_v50 }
 0x1da   : > { %1841 = vmatpush.msrb.mxu2 %v1726_v51  ;;  %1861 = vmatpush.msrb.mxu3 %v1758_v52 }
 0x1dc   : > { %1842 = vmatpush.msrb.mxu2 %v1724_v10  ;;  %1862 = vmatpush.msrb.mxu3 %v1756_v11 }
 0x1dd   : > { %1843 = vmatmul.f32.vlgmr.msrb.gmra.mxu2 %v4824_v15  ;;  %1863 = vmatmul.f32.vlgmr.msrb.gmra.mxu3 %v4826_v43  ;;  %v1236_v15 = vpop.f32.mrf.mxu1  ;;  %v1256_v0 = vpop.f32.mrf.mxu2 }
 0x1de   : > { %v1276_v43 = vpop.f32.mrf.mxu3  ;;  %v1237_v29 = vadd.f32 %v1236_v15, %v1216_v63  ;;  %2082 = vmatpush.msra.mxu3 %v4022_v39  ;;  %v4008_v39 = vld [vmem:[%s5444_s3 + $0x188] sm:$0xff] }
 0x1df   : > { %v1277_v34 = vadd.f32 %v1276_v43, %v1256_v0  ;;  %v1889_v0 = vmul.f32 %v4289_v24, %v1888_v61  ;;  %v1963_v61 = vld [vmem:[%s5444_s3 + $0x30] sm:$0xff] }
 0x1e0   : > { %v1279_v37 = vadd.f32 %v1237_v29, %v1132_v38  ;;  %v1988_v38 = vld [vmem:[%s5444_s3 + $0xf8] sm:$0xff] }
 0x1e1   : > { %v1280_v46 = vadd.f32 %v1277_v34, %v1133_v40  ;;  %2009 = vmatpush.msrb.mxu1 %v1988_v38  ;;  %v1987_v34 = vld [vmem:[%s5444_s3 + $0xf0] sm:$0xff]  ;;  %v1986_v40 = vld [vmem:[%s5444_s3 + $0xe8] sm:$0xff] }
 0x1e3   : > { %2010 = vmatpush.msrb.mxu1 %v1987_v34  ;;  %v1973_v34 = vld [vmem:[%s5444_s3 + $0x80] sm:$0xff] }
 0x1e5   : > { %v1383_v2 = vpop.f32.mrf.mxu1  ;;  %2011 = vmatpush.msrb.mxu1 %v1986_v40  ;;  %v4038_v40 = vld [vmem:[%s5444_s3 + $0x278] sm:$0xff] }
 0x1e6   : > { %v1384_v31 = vadd.f32 %v1383_v2, %v1363_v1  ;;  %v1890_v2 = vadd.f32 %v4289_v24, %v1889_v0  ;;  %v1962_v0 = vld [vmem:[%s5444_s3 + $0x28] sm:$0xff] }
 0x1e8   : > { %v1426_v45 = vadd.f32 %v1384_v31, %v1279_v37  ;;  %v1892_v5 = vsel %vm1891_vm2, %v4289_v24, %v1890_v2  ;;  %v1971_v31 = vld [vmem:[%s5444_s3 + $0x70] sm:$0xff]  ;;  %v1970_v37 = vld [vmem:[%s5444_s3 + $0x68] sm:$0xff]  ;;  %v3998_v24 = vld [vmem:[%s5444_s3 + $0x138] sm:$0xff] }
 0x1e9   : > { %1990 = vmatpush.msrb.mxu0 %v1971_v31  ;;  %v4012_v2 = vld [vmem:[%s5444_s3 + $0x1a8] sm:$0xff]  ;;  %v1957_v31 = vld [vmem:[%s5444_s3] sm:$0xff] }
 0x1eb   : > { %1991 = vmatpush.msrb.mxu0 %v1970_v37  ;;  %v4007_v37 = vld [vmem:[%s5444_s3 + $0x180] sm:$0xff] }
 0x1ed   : > { %v1530_v7 = vpop.f32.mrf.mxu1 }
 0x1ee   : > { %v1531_v41 = vadd.f32 %v1530_v7, %v1510_v6 }
 0x1f0   : > { %v1657_v21 = vpop.f32.mrf.mxu0  ;;  %v1573_v50 = vadd.f32 %v1531_v41, %v1426_v45  ;;  %v4004_v41 = vld [vmem:[%s5444_s3 + $0x168] sm:$0xff]  ;;  %v4003_v45 = vld [vmem:[%s5444_s3 + $0x160] sm:$0xff] }
 0x1f5   : > { %v1677_v22 = vpop.f32.mrf.mxu1 }
 0x1f6   : > { %v1678_v47 = vadd.f32 %v1677_v22, %v1657_v21 }
 0x1f8   : > { %v1720_v11 = vadd.f32 %v1678_v47, %v1573_v50  ;;  %v1968_v47 = vld [vmem:[%s5444_s3 + $0x58] sm:$0xff] }
 0x1f9   : > { %v4002_v50 = vld [vmem:[%s5444_s3 + $0x158] sm:$0xff] }
 0x1ff   : > { %v1403_v3 = vpop.f32.mrf.mxu2  ;;  %v1423_v4 = vpop.f32.mrf.mxu3 }
 0x200   : > { %v1424_v42 = vadd.f32 %v1423_v4, %v1403_v3 }
 0x202   : > { %v1427_v51 = vadd.f32 %v1424_v42, %v1280_v46  ;;  %v4020_v42 = vld [vmem:[%s5444_s3 + $0x1e8] sm:$0xff]  ;;  %v4019_v46 = vld [vmem:[%s5444_s3 + $0x1e0] sm:$0xff] }
 0x20b   : > { %v1872_v57 = vpop.permute.xlu0 %1871 }
 0x212   : > { %v1804_v14 = vpop.f32.mrf.mxu0  ;;  %v1824_v44 = vpop.f32.mrf.mxu1 }
 0x213   : > { %v1825_v52 = vadd.f32 %v1824_v44, %v1804_v14  ;;  %v1969_v14 = vld [vmem:[%s5444_s3 + $0x60] sm:$0xff] }
 0x214   : > { %v1985_v44 = vld [vmem:[%s5444_s3 + $0xe0] sm:$0xff]  ;;  %1992 = vmatpush.msrb.mxu0 %v1969_v14  ;;  %v4070_v14 = vld [vmem:[%s5444_s3 + $0x378] sm:$0xff] }
 0x215   : > { %v1867_v56 = vadd.f32 %v1825_v52, %v1720_v11  ;;  %2012 = vmatpush.msrb.mxu1 %v1985_v44  ;;  %v1967_v52 = vld [vmem:[%s5444_s3 + $0x50] sm:$0xff]  ;;  %v4086_v44 = vld [vmem:[%s5444_s3 + $0x3f8] sm:$0xff] }
 0x216   : > { %1993 = vmatpush.msrb.mxu0 %v1968_v47  ;;  %v4001_v11 = vld [vmem:[%s5444_s3 + $0x150] sm:$0xff] }
 0x217   : > { %v1874_v32 = vadd.f32 %v1872_v57, %v1867_v56  ;;  %v4000_v56 = vld [vmem:[%s5444_s3 + $0x148] sm:$0xff]  ;;  %v4069_v47 = vld [vmem:[%s5444_s3 + $0x370] sm:$0xff] }
 0x218   : > { %1994 = vmatpush.msrb.mxu0 %v1967_v52  ;;  %v4068_v52 = vld [vmem:[%s5444_s3 + $0x368] sm:$0xff] }
 0x220   : > { %v1550_v12 = vpop.f32.mrf.mxu2  ;;  %v1570_v13 = vpop.f32.mrf.mxu3 }
 0x221   : > { %v1571_v49 = vadd.f32 %v1570_v13, %v1550_v12 }
 0x223   : > { %v1574_v53 = vadd.f32 %v1571_v49, %v1427_v51  ;;  %v1984_v49 = vld [vmem:[%s5444_s3 + $0xd8] sm:$0xff] }
 0x224   : > { %v4018_v51 = vld [vmem:[%s5444_s3 + $0x1d8] sm:$0xff]  ;;  %2013 = vmatpush.msrb.mxu1 %v1984_v49  ;;  %v4085_v49 = vld [vmem:[%s5444_s3 + $0x3f0] sm:$0xff] }
 0x240   : > { %v1697_v35 = vpop.f32.mrf.mxu2  ;;  %v1717_v36 = vpop.f32.mrf.mxu3 }
 0x241   : > { %v1718_v10 = vadd.f32 %v1717_v36, %v1697_v35  ;;  %v4005_v35 = vld [vmem:[%s5444_s3 + $0x170] sm:$0xff] }
 0x242   : > { %v4021_v36 = vld [vmem:[%s5444_s3 + $0x1f0] sm:$0xff] }
 0x243   : > { %v1721_v18 = vadd.f32 %v1718_v10, %v1574_v53  ;;  %2083 = vmatpush.msra.mxu3 %v4021_v36  ;;  %v1983_v10 = vld [vmem:[%s5444_s3 + $0xd0] sm:$0xff]  ;;  %v3991_v36 = vld [vmem:[%s5444_s3 + $0x100] sm:$0xff] }
 0x244   : > { %v4017_v53 = vld [vmem:[%s5444_s3 + $0x1d0] sm:$0xff]  ;;  %2014 = vmatpush.msrb.mxu1 %v1983_v10  ;;  %v4084_v10 = vld [vmem:[%s5444_s3 + $0x3e8] sm:$0xff] }
 0x245   : > { %2084 = vmatpush.msra.mxu3 %v4020_v42 }
 0x247   : > { %2085 = vmatpush.msra.mxu3 %v4019_v46  ;;  %v4053_v46 = vld [vmem:[%s5444_s3 + $0x2f0] sm:$0xff] }
 0x249   : > { %2086 = vmatpush.msra.mxu3 %v4018_v51  ;;  %v4052_v51 = vld [vmem:[%s5444_s3 + $0x2e8] sm:$0xff] }
 0x24b   : > { %2087 = vmatpush.msra.mxu3 %v4017_v53  ;;  %v4051_v53 = vld [vmem:[%s5444_s3 + $0x2e0] sm:$0xff] }
 0x260   : > { %v1844_v54 = vpop.f32.mrf.mxu2  ;;  %v1864_v55 = vpop.f32.mrf.mxu3 }
 0x261   : > { %v1865_v19 = vadd.f32 %v1864_v55, %v1844_v54  ;;  %v1966_v54 = vld [vmem:[%s5444_s3 + $0x48] sm:$0xff] }
 0x262   : > { %v1982_v55 = vld [vmem:[%s5444_s3 + $0xc8] sm:$0xff]  ;;  %1995 = vmatpush.msrb.mxu0 %v1966_v54  ;;  %v4067_v54 = vld [vmem:[%s5444_s3 + $0x360] sm:$0xff] }
 0x263   : > { %v1868_v58 = vadd.f32 %v1865_v19, %v1721_v18  ;;  %v4016_v18 = vld [vmem:[%s5444_s3 + $0x1c8] sm:$0xff]  ;;  %v1965_v19 = vld [vmem:[%s5444_s3 + $0x40] sm:$0xff]  ;;  %2015 = vmatpush.msrb.mxu1 %v1982_v55 }
 0x264   : > { %2088 = vmatpush.msra.mxu3 %v4016_v18  ;;  %1996 = vmatpush.msrb.mxu0 %v1965_v19  ;;  %v4083_v55 = vld [vmem:[%s5444_s3 + $0x3e0] sm:$0xff]  ;;  %v4050_v18 = vld [vmem:[%s5444_s3 + $0x2d8] sm:$0xff] }
 0x265   : > { %v1875_v33 = vadd.f32 %v1872_v57, %v1868_v58  ;;  %v1981_v57 = vld [vmem:[%s5444_s3 + $0xc0] sm:$0xff]  ;;  %v4066_v19 = vld [vmem:[%s5444_s3 + $0x358] sm:$0xff] }
 0x266   : > { %2016 = vmatpush.msrb.mxu1 %v1981_v57  ;;  %v4082_v57 = vld [vmem:[%s5444_s3 + $0x3d8] sm:$0xff] }
 0x267   : > { %v1876_v59 = vadd.f32 %v1875_v33, %v1874_v32 }
 0x268   : > { %2017 = vmatpush.msrb.mxu1 %v1980_v60  ;;  %v4032_v60 = vld [vmem:[%s5444_s3 + $0x248] sm:$0xff] }
 0x269   : > { %1877 = vadd.xlane.f32.xlu0 %v1876_v59  ;;  %v1964_v59 = vld [vmem:[%s5444_s3 + $0x38] sm:$0xff] }
 0x26a   : > { %1997 = vmatpush.msrb.mxu0 %v1964_v59  ;;  %v4081_v59 = vld [vmem:[%s5444_s3 + $0x3d0] sm:$0xff] }
 0x26c   : > { %1998 = vmatpush.msrb.mxu0 %v1963_v61  ;;  %v4080_v61 = vld [vmem:[%s5444_s3 + $0x3c8] sm:$0xff] }
 0x26e   : > { %1999 = vmatpush.msrb.mxu0 %v1962_v0  ;;  %v4079_v0 = vld [vmem:[%s5444_s3 + $0x3c0] sm:$0xff] }
 0x2dc   : > { %v1878_v62 = vpop.xlane.xlu0 %1877 }
 0x2dd   : > { %v1879_v63 = vrot.slane %v1878_v62, 4 }
 0x2df   : > { %v1880_v15 = vadd.f32 %v1879_v63, %v1878_v62  ;;  %v1979_v62 = vld [vmem:[%s5444_s3 + $0xb0] sm:$0xff] }
 0x2e0   : > { %v3997_v63 = vld [vmem:[%s5444_s3 + $0x130] sm:$0xff]  ;;  %2018 = vmatpush.msrb.mxu1 %v1979_v62  ;;  %v4031_v62 = vld [vmem:[%s5444_s3 + $0x240] sm:$0xff] }
 0x2e1   : > { %v1881_v43 = vrot.slane %v1880_v15, 2 }
 0x2e3   : > { %v1882_v1 = vadd.f32 %v1881_v43, %v1880_v15  ;;  %v4013_v15 = vld [vmem:[%s5444_s3 + $0x1b0] sm:$0xff]  ;;  %v1978_v43 = vld [vmem:[%s5444_s3 + $0xa8] sm:$0xff] }
 0x2e4   : > { %2019 = vmatpush.msrb.mxu1 %v1978_v43  ;;  %v4030_v43 = vld [vmem:[%s5444_s3 + $0x238] sm:$0xff] }
 0x2e5   : > { %v1883_v3 = vrot.slane %v1882_v1, 1 }
 0x2e7   : > { %v1884_v4 = vadd.f32 %v1883_v3, %v1882_v1  ;;  %v3996_v1 = vld [vmem:[%s5444_s3 + $0x128] sm:$0xff] }
 0x2e9   : > { %4160 = vpush %v1884_v4  ;;  %v1961_v4 = vld [vmem:[%s5444_s3 + $0x20] sm:$0xff] }
 0x2ea   : > { %4162 = vpush %v1892_v5  ;;  %v1977_v5 = vld [vmem:[%s5444_s3 + $0xa0] sm:$0xff]  ;;  %2000 = vmatpush.msrb.mxu0 %v1961_v4  ;;  %v4029_v4 = vld [vmem:[%s5444_s3 + $0x230] sm:$0xff] }
 0x2eb   : > { %2020 = vmatpush.msrb.mxu1 %v1977_v5  ;;  %v4045_v5 = vld [vmem:[%s5444_s3 + $0x2b0] sm:$0xff] }
 0x2ed   : > { %2021 = vmatpush.msrb.mxu1 %v1976_v16  ;;  %v4060_v16 = vld [vmem:[%s5444_s3 + $0x328] sm:$0xff] }
 0x31a   : > { %s4161_s8 = spop %4160 }
 0x31b   : > { %s4839_s17 = spop %4162 }
 0x31c   : > { %s1894_s23 = smul.f32 %s4839_s17, %s4161_s8 }
 0x31e   : > { %v1895_v6 = vstv %s1894_s23 }
 0x31f   : > { %v4842_v7 = vsub.f32 %v1874_v32, %v1895_v6  ;;  %v4844_v8 = vsub.f32 %v1875_v33, %v1895_v6  ;;  %v3999_v32 = vld [vmem:[%s5444_s3 + $0x140] sm:$0xff] }
 0x320   : > { %v4015_v33 = vld [vmem:[%s5444_s3 + $0x1c0] sm:$0xff] }
 0x321   : > { %v1898_v9 = vmul.f32 %v4842_v7, %v4842_v7  ;;  %v1899_v12 = vmul.f32 %v4844_v8, %v4844_v8  ;;  %2089 = vmatpush.msra.mxu3 %v4015_v33  ;;  %v4065_v33 = vld [vmem:[%s5444_s3 + $0x350] sm:$0xff] }
 0x323   : > { %v1900_v13 = vadd.f32 %v1899_v12, %v1898_v9  ;;  %2090 = vmatpush.msra.mxu3 %v4014_v25  ;;  %v3995_v9 = vld [vmem:[%s5444_s3 + $0x120] sm:$0xff]  ;;  %v4064_v25 = vld [vmem:[%s5444_s3 + $0x348] sm:$0xff] }
 0x324   : > { %v4011_v12 = vld [vmem:[%s5444_s3 + $0x1a0] sm:$0xff] }
 0x325   : > { %1901 = vadd.xlane.f32.xlu1 %v1900_v13  ;;  %2091 = vmatpush.msra.mxu3 %v4013_v15  ;;  %v1960_v13 = vld [vmem:[%s5444_s3 + $0x18] sm:$0xff]  ;;  %v4063_v15 = vld [vmem:[%s5444_s3 + $0x340] sm:$0xff] }
 0x326   : > { %2001 = vmatpush.msrb.mxu0 %v1960_v13  ;;  %v4044_v13 = vld [vmem:[%s5444_s3 + $0x2a8] sm:$0xff] }
 0x327   : > { %2092 = vmatpush.msra.mxu3 %v4012_v2  ;;  %v4062_v2 = vld [vmem:[%s5444_s3 + $0x338] sm:$0xff] }
 0x329   : > { %2093 = vmatpush.msra.mxu3 %v4011_v12  ;;  %v4028_v12 = vld [vmem:[%s5444_s3 + $0x228] sm:$0xff] }
 0x33e   : > { %1936 = vperm.xlu1 %4279, %v4830_v48   ;;  %v4006_v48 = vld [vmem:[%s5444_s3 + $0x178] sm:$0xff] }
 0x33f   : > { %2062 = vmatpush.msra.mxu2 %v4006_v48  ;;  %v3992_v48 = vld [vmem:[%s5444_s3 + $0x108] sm:$0xff] }
 0x341   : > { %2063 = vmatpush.msra.mxu2 %v4005_v35 }
 0x343   : > { %2064 = vmatpush.msra.mxu2 %v4004_v41  ;;  %v4054_v41 = vld [vmem:[%s5444_s3 + $0x2f8] sm:$0xff] }
 0x345   : > { %2065 = vmatpush.msra.mxu2 %v4003_v45  ;;  %v4037_v45 = vld [vmem:[%s5444_s3 + $0x270] sm:$0xff] }
 0x347   : > { %2066 = vmatpush.msra.mxu2 %v4002_v50  ;;  %v4036_v50 = vld [vmem:[%s5444_s3 + $0x268] sm:$0xff] }
 0x349   : > { %2067 = vmatpush.msra.mxu2 %v4001_v11  ;;  %v4035_v11 = vld [vmem:[%s5444_s3 + $0x260] sm:$0xff] }
 0x34b   : > { %2068 = vmatpush.msra.mxu2 %v4000_v56  ;;  %v4034_v56 = vld [vmem:[%s5444_s3 + $0x258] sm:$0xff] }
 0x34d   : > { %2069 = vmatpush.msra.mxu2 %v3999_v32  ;;  %v4049_v32 = vld [vmem:[%s5444_s3 + $0x2d0] sm:$0xff] }
 0x34f   : > { %2070 = vmatpush.msra.mxu2 %v3998_v24  ;;  %v4048_v24 = vld [vmem:[%s5444_s3 + $0x2c8] sm:$0xff] }
 0x351   : > { %2071 = vmatpush.msra.mxu2 %v3997_v63  ;;  %v4047_v63 = vld [vmem:[%s5444_s3 + $0x2c0] sm:$0xff] }
 0x353   : > { %2072 = vmatpush.msra.mxu2 %v3996_v1  ;;  %v4046_v1 = vld [vmem:[%s5444_s3 + $0x2b8] sm:$0xff] }
 0x355   : > { %2073 = vmatpush.msra.mxu2 %v3995_v9  ;;  %v4077_v9 = vld [vmem:[%s5444_s3 + $0x3b0] sm:$0xff] }
 0x357   : > { %2074 = vmatpush.msra.mxu2 %v3994_v20  ;;  %v4027_v20 = vld [vmem:[%s5444_s3 + $0x220] sm:$0xff] }
 0x398   : > { %v1902_v21 = vpop.xlane.xlu1 %1901 }
 0x399   : > { %v1903_v22 = vrot.slane %v1902_v21, 4 }
 0x39b   : > { %v1904_v23 = vadd.f32 %v1903_v22, %v1902_v21  ;;  %v4010_v21 = vld [vmem:[%s5444_s3 + $0x198] sm:$0xff]  ;;  %v1959_v22 = vld [vmem:[%s5444_s3 + $0x10] sm:$0xff] }
 0x39c   : > { %2094 = vmatpush.msra.mxu3 %v4010_v21  ;;  %2002 = vmatpush.msrb.mxu0 %v1959_v22  ;;  %v4043_v21 = vld [vmem:[%s5444_s3 + $0x2a0] sm:$0xff] }
 0x39d   : > { %v1905_v26 = vrot.slane %v1904_v23, 2  ;;  %v4059_v22 = vld [vmem:[%s5444_s3 + $0x320] sm:$0xff] }
 0x39f   : > { %v1906_v27 = vadd.f32 %v1905_v26, %v1904_v23  ;;  %v1975_v23 = vld [vmem:[%s5444_s3 + $0x90] sm:$0xff] }
 0x3a0   : > { %2022 = vmatpush.msrb.mxu1 %v1975_v23  ;;  %v4075_v23 = vld [vmem:[%s5444_s3 + $0x3a0] sm:$0xff] }
 0x3a1   : > { %v1907_v28 = vrot.slane %v1906_v27, 1 }
 0x3a2   : > { %2023 = vmatpush.msrb.mxu1 %v1974_v30  ;;  %v4025_v30 = vld [vmem:[%s5444_s3 + $0x210] sm:$0xff] }
 0x3a3   : > { %v1908_v29 = vadd.f32 %v1907_v28, %v1906_v27  ;;  %v3993_v27 = vld [vmem:[%s5444_s3 + $0x110] sm:$0xff] }
 0x3a4   : > { %v4009_v28 = vld [vmem:[%s5444_s3 + $0x190] sm:$0xff]  ;;  %2075 = vmatpush.msra.mxu2 %v3993_v27  ;;  %2024 = vmatpush.msrb.mxu1 %v1973_v34  ;;  %v4042_v27 = vld [vmem:[%s5444_s3 + $0x298] sm:$0xff]  ;;  %v4040_v34 = vld [vmem:[%s5444_s3 + $0x288] sm:$0xff] }
 0x3a5   : > { %4164 = vpush %v1908_v29  ;;  %v1958_v29 = vld [vmem:[%s5444_s3 + $0x8] sm:$0xff]  ;;  %2095 = vmatpush.msra.mxu3 %v4009_v28  ;;  %v4058_v28 = vld [vmem:[%s5444_s3 + $0x318] sm:$0xff] }
 0x3a6   : > { %2003 = vmatpush.msrb.mxu0 %v1958_v29  ;;  %2076 = vmatpush.msra.mxu2 %v3992_v48  ;;  %v4074_v29 = vld [vmem:[%s5444_s3 + $0x398] sm:$0xff]  ;;  %v4057_v48 = vld [vmem:[%s5444_s3 + $0x310] sm:$0xff] }
 0x3a7   : > { %2096 = vmatpush.msra.mxu3 %v4008_v39  ;;  %2156 = vmatpush.msra.mxu1 %v4054_v41  ;;  %v4073_v39 = vld [vmem:[%s5444_s3 + $0x390] sm:$0xff]  ;;  %v4055_v41 = vld [vmem:[%s5444_s3 + $0x300] sm:$0xff] }
 0x3a8   : > { %2004 = vmatpush.msrb.mxu0 %v1957_v31  ;;  %2077 = vmatpush.msra.mxu2 %v3991_v36  ;;  %v4024_v31 = vld [vmem:[%s5444_s3 + $0x208] sm:$0xff] }
 0x3a9   : > { %2097 = vmatpush.msra.mxu3 %v4007_v37  ;;  %2157 = vmatpush.msra.mxu1 %v4053_v46  ;;  %v4072_v36 = vld [vmem:[%s5444_s3 + $0x388] sm:$0xff]  ;;  %v4023_v37 = vld [vmem:[%s5444_s3 + $0x200] sm:$0xff] }
 0x3aa   : > { %2136 = vmatpush.msra.mxu0 %v4038_v40  ;;  %2209 = vmatpush.msrb.mxu2 %v4070_v14  ;;  %v4039_v40 = vld [vmem:[%s5444_s3 + $0x280] sm:$0xff]  ;;  %v1943_v14 = vpop.permute.xlu2 %1942 }
 0x3ab   : > { %2229 = vmatpush.msrb.mxu3 %v4086_v44  ;;  %2158 = vmatpush.msra.mxu1 %v4052_v51 }
 0x3ac   : > { %2137 = vmatpush.msra.mxu0 %v4037_v45  ;;  %2210 = vmatpush.msrb.mxu2 %v4069_v47 }
 0x3ad   : > { %2230 = vmatpush.msrb.mxu3 %v4085_v49  ;;  %2159 = vmatpush.msra.mxu1 %v4051_v53 }
 0x3ae   : > { %2138 = vmatpush.msra.mxu0 %v4036_v50  ;;  %2211 = vmatpush.msrb.mxu2 %v4068_v52 }
 0x3af   : > { %2231 = vmatpush.msrb.mxu3 %v4084_v10  ;;  %2160 = vmatpush.msra.mxu1 %v4050_v18 }
 0x3b0   : > { %2139 = vmatpush.msra.mxu0 %v4035_v11  ;;  %2212 = vmatpush.msrb.mxu2 %v4067_v54  ;;  %v1937_v45 = vpop.permute.xlu1 %1936 }
 0x3b1   : > { %2232 = vmatpush.msrb.mxu3 %v4083_v55  ;;  %2161 = vmatpush.msra.mxu1 %v4049_v32 }
 0x3b2   : > { %2140 = vmatpush.msra.mxu0 %v4034_v56  ;;  %2213 = vmatpush.msrb.mxu2 %v4066_v19  ;;  %v1951_v51 = vpop.permute.xlu2 %1950 }
 0x3b3   : > { %2233 = vmatpush.msrb.mxu3 %v4082_v57  ;;  %2162 = vmatpush.msra.mxu1 %v4048_v24 }
 0x3b4   : > { %2214 = vmatpush.msrb.mxu2 %v4065_v33 }
 0x3b5   : > { %2234 = vmatpush.msrb.mxu3 %v4081_v59  ;;  %2163 = vmatpush.msra.mxu1 %v4047_v63  ;;  %v2251_v63 = vld [vmem:[%s5445_s4] sm:$0xff] }
 0x3b6   : > { %2215 = vmatpush.msrb.mxu2 %v4064_v25 }
 0x3b7   : > { %2235 = vmatpush.msrb.mxu3 %v4080_v61  ;;  %2164 = vmatpush.msra.mxu1 %v4046_v1  ;;  %v2255_v1 = vld [vmem:[%s5445_s4 + $0x20] sm:$0xff] }
 0x3b8   : > { %2216 = vmatpush.msrb.mxu2 %v4063_v15  ;;  %v2252_v15 = vld [vmem:[%s5445_s4 + $0x8] sm:$0xff] }
 0x3b9   : > { %2236 = vmatpush.msrb.mxu3 %v4079_v0  ;;  %2165 = vmatpush.msra.mxu1 %v4045_v5  ;;  %v2253_v0 = vld [vmem:[%s5445_s4 + $0x10] sm:$0xff]  ;;  %v2345_v5 = vld [vmem:[#allocation7 + $0x60] sm:$0xff] }
 0x3ba   : > { %2217 = vmatpush.msrb.mxu2 %v4062_v2  ;;  %v2348_v2 = vld [vmem:[#allocation7 + $0x78] sm:$0xff] }
 0x3bb   : > { %2166 = vmatpush.msra.mxu1 %v4044_v13  ;;  %v2342_v13 = vld [vmem:[#allocation7 + $0x48] sm:$0xff] }
 0x3bd   : > { %2167 = vmatpush.msra.mxu1 %v4043_v21  ;;  %v2341_v21 = vld [vmem:[#allocation7 + $0x40] sm:$0xff] }
 0x3bf   : > { %2168 = vmatpush.msra.mxu1 %v4042_v27  ;;  %v2403_v27 = vld [vmem:[#allocation7 + $0xb0] sm:$0xff] }
 0x3d6   : > { %s4165_s8 = spop %4164 }
 0x3d7   : > { %s1918_s19 = smul.f32 %s4165_s8, %s4839_s17 }
 0x3d9   : > { %s1919_s17 = sadd.f32 1e-05, %s1918_s19  ;;  %s4159_s19 = sshll.u32 %s4617_s16, 4 }
 0x3da   : > { %s3841_s2 = scalar_lea.hbm %s5450_s9, %s4159_s19 }
 0x3db   : > { %v4944_v58 = vstv %s1919_s17  ;;  %s3845_s16 = sshll.u32 %s3841_s2, 4  ;;  %s3846_s16 = int_to_ptr.hbm [resolvable:$true] %s3845_s16 }
 0x3dc   : > { %4290 = vrsqrt.f32 %v4944_v58  ;;  %vm1927_vm4 = vweird.f32 %v4944_v58 }
 0x3e2   : > { %v4291_v3 = vpop.eup %4290 }
 0x3e3   : > { %v1922_v6 = vmul.f32 %v4291_v3, %v4944_v58  ;;  %vm1928_vm3 = vweird.f32 %v4291_v3  ;;  %v4033_v58 = vld [vmem:[%s5444_s3 + $0x250] sm:$0xff] }
 0x3e4   : > { %vm1929_vm5 = vmor %vm1927_vm4, %vm1928_vm3  ;;  %2141 = vmatpush.msra.mxu0 %v4033_v58 }
 0x3e5   : > { %v1923_v17 = vmul.f32 %v4291_v3, %v1922_v6  ;;  %v4061_v6 = vld [vmem:[%s5444_s3 + $0x330] sm:$0xff] }
 0x3e6   : > { %2142 = vmatpush.msra.mxu0 %v4032_v60  ;;  %2218 = vmatpush.msrb.mxu2 %v4061_v6  ;;  %v2256_v6 = vld [vmem:[%s5445_s4 + $0x28] sm:$0xff] }
 0x3e7   : > { %v1924_v26 = vmul.f32 0.5, %v1923_v17  ;;  %v4076_v17 = vld [vmem:[%s5444_s3 + $0x3a8] sm:$0xff] }
 0x3e8   : > { %2143 = vmatpush.msra.mxu0 %v4031_v62  ;;  %2219 = vmatpush.msrb.mxu2 %v4060_v16  ;;  %v2257_v16 = vld [vmem:[%s5445_s4 + $0x30] sm:$0xff] }
 0x3e9   : > { %v1925_v38 = vsub.f32 1.5, %v1924_v26  ;;  %v4026_v26 = vld [vmem:[%s5444_s3 + $0x218] sm:$0xff] }
 0x3ea   : > { %2144 = vmatpush.msra.mxu0 %v4030_v43  ;;  %2220 = vmatpush.msrb.mxu2 %v4059_v22  ;;  %v2254_v43 = vld [vmem:[%s5445_s4 + $0x18] sm:$0xff]  ;;  %v2339_v22 = vld [vmem:[#allocation7 + $0x38] sm:$0xff] }
 0x3eb   : > { %v1926_v35 = vmul.f32 %v4291_v3, %v1925_v38  ;;  %v4041_v38 = vld [vmem:[%s5444_s3 + $0x290] sm:$0xff] }
 0x3ec   : > { %2145 = vmatpush.msra.mxu0 %v4029_v4  ;;  %2221 = vmatpush.msrb.mxu2 %v4058_v28  ;;  %v2346_v4 = vld [vmem:[#allocation7 + $0x68] sm:$0xff] }
 0x3ed   : > { %v1930_v42 = vsel %vm1929_vm5, %v4291_v3, %v1926_v35  ;;  %v4078_v3 = vld [vmem:[%s5444_s3 + $0x3b8] sm:$0xff]  ;;  %2169 = vmatpush.msra.mxu1 %v4041_v38  ;;  %v4056_v35 = vld [vmem:[%s5444_s3 + $0x308] sm:$0xff]  ;;  %v2402_v28 = vld [vmem:[#allocation7 + $0xa8] sm:$0xff] }
 0x3ee   : > { %4166 = vpush %v1930_v42  ;;  %2237 = vmatpush.msrb.mxu3 %v4078_v3  ;;  %2146 = vmatpush.msra.mxu0 %v4028_v12  ;;  %v4071_v42 = vld [vmem:[%s5444_s3 + $0x380] sm:$0xff]  ;;  %v2347_v3 = vld [vmem:[#allocation7 + $0x70] sm:$0xff]  ;;  %v2401_v38 = vld [vmem:[#allocation7 + $0xa0] sm:$0xff] }
 0x3ef   : > { %2222 = vmatpush.msrb.mxu2 %v4057_v48  ;;  %2170 = vmatpush.msra.mxu1 %v4040_v34  ;;  %v2343_v12 = vld [vmem:[#allocation7 + $0x50] sm:$0xff]  ;;  %v2335_v48 = vld [vmem:[#allocation7 + $0x18] sm:$0xff] }
 0x3f0   : > { %2238 = vmatpush.msrb.mxu3 %v4077_v9  ;;  %2147 = vmatpush.msra.mxu0 %v4027_v20  ;;  %v2344_v9 = vld [vmem:[#allocation7 + $0x58] sm:$0xff]  ;;  %v2259_v20 = vld [vmem:[%s5445_s4 + $0x40] sm:$0xff]  ;;  %v2334_v34 = vld [vmem:[#allocation7 + $0x10] sm:$0xff] }
 0x3f1   : > { %2223 = vmatpush.msrb.mxu2 %v4056_v35  ;;  %2171 = vmatpush.msra.mxu1 %v4039_v40  ;;  %v2399_v35 = vld [vmem:[#allocation7 + $0x90] sm:$0xff]  ;;  %v2398_v40 = vld [vmem:[#allocation7 + $0x88] sm:$0xff] }
 0x3f2   : > { %2239 = vmatpush.msrb.mxu3 %v4076_v17  ;;  %2148 = vmatpush.msra.mxu0 %v4026_v26  ;;  %v2258_v17 = vld [vmem:[%s5445_s4 + $0x38] sm:$0xff]  ;;  %v2338_v26 = vld [vmem:[#allocation7 + $0x30] sm:$0xff] }
 0x3f3   : > { %2224 = vmatpush.msrb.mxu2 %v4055_v41  ;;  %v2435_v41 = vld [vmem:[#allocation7 + $0xe8] sm:$0xff] }
 0x3f4   : > { %2240 = vmatpush.msrb.mxu3 %v4075_v23  ;;  %2149 = vmatpush.msra.mxu0 %v4025_v30  ;;  %v2404_v23 = vld [vmem:[#allocation7 + $0xb8] sm:$0xff]  ;;  %v2336_v30 = vld [vmem:[#allocation7 + $0x20] sm:$0xff] }
 0x3f6   : > { %2241 = vmatpush.msrb.mxu3 %v4074_v29  ;;  %2150 = vmatpush.msra.mxu0 %v4024_v31  ;;  %v2337_v29 = vld [vmem:[#allocation7 + $0x28] sm:$0xff]  ;;  %v2437_v31 = vld [vmem:[#allocation7 + $0xf8] sm:$0xff] }
 0x3f8   : > { %2242 = vmatpush.msrb.mxu3 %v4073_v39  ;;  %2151 = vmatpush.msra.mxu0 %v4023_v37  ;;  %v2400_v39 = vld [vmem:[#allocation7 + $0x98] sm:$0xff]  ;;  %v2333_v37 = vld [vmem:[#allocation7 + $0x8] sm:$0xff] }
 0x3fa   : > { %2243 = vmatpush.msrb.mxu3 %v4072_v36  ;;  %v2436_v36 = vld [vmem:[#allocation7 + $0xf0] sm:$0xff] }
 0x3fc   : > { %2244 = vmatpush.msrb.mxu3 %v4071_v42  ;;  %v2332_v42 = vld [vmem:[#allocation7] sm:$0xff] }
 0x41f   : > { %s4167_s29 = spop %4166 }
 0x420   : > { %v1932_v44 = vstv %s4167_s29 }
 0x421   : > { %v1933_v46 = vmul.f32 %v1932_v44, %v4842_v7  ;;  %v1934_v47 = vmul.f32 %v1932_v44, %v4844_v8  ;;  %v2434_v44 = vld [vmem:[#allocation7 + $0xe0] sm:$0xff] }
 0x423   : > { %v1939_v49 = vmul.f32 %v1937_v45, %v1933_v46  ;;  %v1940_v50 = vmul.f32 %v1937_v45, %v1934_v47  ;;  %v2433_v45 = vld [vmem:[#allocation7 + $0xd8] sm:$0xff]  ;;  %v2432_v46 = vld [vmem:[#allocation7 + $0xd0] sm:$0xff]  ;;  %v2431_v47 = vld [vmem:[#allocation7 + $0xc8] sm:$0xff] }
 0x425   : > { %v1945_v52 = vadd.f32 %v1943_v14, %v1939_v49  ;;  %v1946_v10 = vadd.f32 %v1943_v14, %v1940_v50  ;;  %v2397_v14 = vld [vmem:[#allocation7 + $0x80] sm:$0xff]  ;;  %v2503_v50 = vld [vmem:[#allocation7 + $0x178] sm:$0xff] }
 0x426   : > { %v2430_v49 = vld [vmem:[#allocation7 + $0xc0] sm:$0xff] }
 0x427   : > { %v1953_v11 = vmul.f32 %v1951_v51, %v1945_v52  ;;  %v1954_v53 = vmul.f32 %v1951_v51, %v1946_v10  ;;  %vm1947_vm6 = vcmp.gt.f32.partialorder %v1945_v52, 0.0  ;;  %vm1948_vm7 = vcmp.gt.f32.partialorder %v1946_v10, 0.0  ;;  %v2502_v51 = vld [vmem:[#allocation7 + $0x170] sm:$0xff] }
 0x429   : > { %v1955_v54 = vsel %vm1947_vm6, %v1945_v52, %v1953_v11  ;;  %v1956_v55 = vsel %vm1948_vm7, %v1946_v10, %v1954_v53  ;;  %v2501_v52 = vld [vmem:[#allocation7 + $0x168] sm:$0xff]  ;;  %v2500_v10 = vld [vmem:[#allocation7 + $0x160] sm:$0xff]  ;;  %v2499_v53 = vld [vmem:[#allocation7 + $0x158] sm:$0xff] }
 0x42a   : > { %2005 = vmatmul.f32.vlgmr.msrb.gmra.mxu0 %v1955_v54  ;;  %2025 = vmatmul.f32.vlgmr.msrb.gmra.mxu1 %v1956_v55 }
 0x42b   : > { %2078 = vmatmul.f32.vlgmr.msra.gmra.mxu2 %v1955_v54  ;;  %2098 = vmatmul.f32.vlgmr.msra.gmra.mxu3 %v1956_v55 }
 0x42c   : > { %2361 = vmatpush.msrb.mxu1 %v2348_v2  ;;  %2416 = vmatpush.msra.mxu2 %v2404_v23  ;;  %v2600_v2 = vld [vmem:[#allocation7 + $0x228] sm:$0xff] }
 0x42d   : > { %2449 = vmatpush.msra.mxu3 %v2437_v31 }
 0x42e   : > { %2362 = vmatpush.msrb.mxu1 %v2347_v3  ;;  %2417 = vmatpush.msra.mxu2 %v2403_v27  ;;  %v2463_v3 = vld [vmem:[#allocation7 + $0x100] sm:$0xff]  ;;  %v4537_v27 = vmov 4  }
 0x42f   : > { %2450 = vmatpush.msra.mxu3 %v2436_v36  ;;  %4282 = vset.pattern.permute.xlu2 %v4537_v27 }
 0x430   : > { %2363 = vmatpush.msrb.mxu1 %v2346_v4  ;;  %2418 = vmatpush.msra.mxu2 %v2402_v28  ;;  %v2569_v4 = vld [vmem:[#allocation7 + $0x1f8] sm:$0xff]  ;;  %v2563_v28 = vld [vmem:[#allocation7 + $0x1c8] sm:$0xff] }
 0x431   : > { %2451 = vmatpush.msra.mxu3 %v2435_v41 }
 0x432   : > { %2152 = vmatmul.f32.vlgmr.msra.gmra.mxu0 %v1955_v54  ;;  %2172 = vmatmul.f32.vlgmr.msra.gmra.mxu1 %v1956_v55 }
 0x433   : > { %2225 = vmatmul.f32.vlgmr.msrb.gmra.mxu2 %v1955_v54  ;;  %2245 = vmatmul.f32.vlgmr.msrb.gmra.mxu3 %v1956_v55  ;;  %v2536_v54 = vld [vmem:[#allocation7 + $0x1b8] sm:$0xff]  ;;  %v2498_v55 = vld [vmem:[#allocation7 + $0x150] sm:$0xff] }
 0x434   : > { %2364 = vmatpush.msrb.mxu1 %v2345_v5  ;;  %2419 = vmatpush.msra.mxu2 %v2401_v38  ;;  %v2599_v5 = vld [vmem:[#allocation7 + $0x220] sm:$0xff] }
 0x435   : > { %2452 = vmatpush.msra.mxu3 %v2434_v44 }
 0x436   : > { %2365 = vmatpush.msrb.mxu1 %v2344_v9  ;;  %2420 = vmatpush.msra.mxu2 %v2400_v39  ;;  %v2568_v9 = vld [vmem:[#allocation7 + $0x1f0] sm:$0xff] }
 0x437   : > { %2453 = vmatpush.msra.mxu3 %v2433_v45 }
 0x438   : > { %2366 = vmatpush.msrb.mxu1 %v2343_v12  ;;  %2421 = vmatpush.msra.mxu2 %v2399_v35  ;;  %v2598_v12 = vld [vmem:[#allocation7 + $0x218] sm:$0xff] }
 0x439   : > { %2454 = vmatpush.msra.mxu3 %v2432_v46 }
 0x43a   : > { %2367 = vmatpush.msrb.mxu1 %v2342_v13  ;;  %2422 = vmatpush.msra.mxu2 %v2398_v40  ;;  %v2597_v13 = vld [vmem:[#allocation7 + $0x210] sm:$0xff] }
 0x43b   : > { %2455 = vmatpush.msra.mxu3 %v2431_v47 }
 0x43c   : > { %2368 = vmatpush.msrb.mxu1 %v2341_v21  ;;  %2423 = vmatpush.msra.mxu2 %v2397_v14  ;;  %v2565_v21 = vld [vmem:[#allocation7 + $0x1d8] sm:$0xff] }
 0x43d   : > { %2456 = vmatpush.msra.mxu3 %v2430_v49 }
 0x43e   : > { %2384 = vmatpush.msra.mxu1 %v2339_v22  ;;  %2515 = vmatpush.msrb.mxu2 %v2503_v50  ;;  %v2595_v22 = vld [vmem:[#allocation7 + $0x200] sm:$0xff] }
 0x43f   : > { %2548 = vmatpush.msrb.mxu3 %v2536_v54 }
 0x440   : > { %2385 = vmatpush.msra.mxu1 %v2338_v26  ;;  %2516 = vmatpush.msrb.mxu2 %v2502_v51  ;;  %v2564_v26 = vld [vmem:[#allocation7 + $0x1d0] sm:$0xff] }
 0x442   : > { %2386 = vmatpush.msra.mxu1 %v2337_v29  ;;  %2517 = vmatpush.msrb.mxu2 %v2501_v52  ;;  %v5287_v29 = vld [vmem:[#allocation10] sm:$0xff] }
 0x443   : > { %2628 = vperm.xlu2 %4282, %v5287_v29  }
 0x444   : > { %2387 = vmatpush.msra.mxu1 %v2336_v30  ;;  %2518 = vmatpush.msrb.mxu2 %v2500_v10  ;;  %v2562_v30 = vld [vmem:[#allocation7 + $0x1c0] sm:$0xff] }
 0x446   : > { %2388 = vmatpush.msra.mxu1 %v2335_v48  ;;  %2519 = vmatpush.msrb.mxu2 %v2499_v53 }
 0x448   : > { %2389 = vmatpush.msra.mxu1 %v2334_v34  ;;  %2520 = vmatpush.msrb.mxu2 %v2498_v55  ;;  %v4538_v55 = vmov 512.0  }
 0x449   : > { %4292 = vrcp.f32 %v4538_v55  ;;  %v2842_v55 = vld [vmem:[#allocation8 + $0x40] sm:$0xff] }
 0x44a   : > { %2390 = vmatpush.msra.mxu1 %v2333_v37 }
 0x44c   : > { %2391 = vmatpush.msra.mxu1 %v2332_v42 }
 0x49d   : > { %v2629_v10 = vpop.permute.xlu2 %2628 }
 0x4a7   : > { %v2006_v7 = vpop.f32.mrf.mxu0  ;;  %v2026_v8 = vpop.f32.mrf.mxu1 }
 0x4a8   : > { %v2027_v59 = vadd.f32 %v2026_v8, %v2006_v7  ;;  %v2535_v7 = vld [vmem:[#allocation7 + $0x1b0] sm:$0xff]  ;;  %v2497_v8 = vld [vmem:[#allocation7 + $0x148] sm:$0xff] }
 0x4a9   : > { %2549 = vmatpush.msrb.mxu3 %v2535_v7  ;;  %2521 = vmatpush.msrb.mxu2 %v2497_v8  ;;  %v4293_v7 = vpop.eup %4292 }
 0x4aa   : > { %v2643_v8 = vmul.f32 512.0, %v4293_v7  ;;  %vm2647_vm10 = vweird.f32 %v4293_v7 }
 0x4ae   : > { %v2079_v56 = vpop.f32.mrf.mxu2  ;;  %v2099_v18 = vpop.f32.mrf.mxu3 }
 0x4af   : > { %v2153_v19 = vpop.f32.mrf.mxu0  ;;  %v2173_v57 = vpop.f32.mrf.mxu1  ;;  %v2100_v58 = vadd.f32 %v2099_v18, %v2079_v56  ;;  %v2534_v56 = vld [vmem:[#allocation7 + $0x1a8] sm:$0xff]  ;;  %v2470_v18 = vld [vmem:[#allocation7 + $0x138] sm:$0xff] }
 0x4b0   : > { %v2174_v60 = vadd.f32 %v2173_v57, %v2153_v19  ;;  %2550 = vmatpush.msrb.mxu3 %v2534_v56  ;;  %v2496_v19 = vld [vmem:[#allocation7 + $0x140] sm:$0xff]  ;;  %v2644_v56 = vsub.f32 1.0, %v2643_v8  ;;  %v2862_v8 = vld [vmem:[#allocation8 + $0xd8] sm:$0xff] }
 0x4b1   : > { %v2102_v25 = vmax.f32 %v2027_v59, %v2100_v58  ;;  %v2533_v57 = vld [vmem:[#allocation7 + $0x1a0] sm:$0xff]  ;;  %2522 = vmatpush.msrb.mxu2 %v2496_v19  ;;  %v2531_v59 = vld [vmem:[#allocation7 + $0x190] sm:$0xff] }
 0x4b2   : > { %2551 = vmatpush.msrb.mxu3 %v2533_v57 }
 0x4b6   : > { %v2226_v32 = vpop.f32.mrf.mxu2  ;;  %v2246_v33 = vpop.f32.mrf.mxu3 }
 0x4b7   : > { %v2247_v24 = vadd.f32 %v2246_v33, %v2226_v32  ;;  %v2469_v32 = vld [vmem:[#allocation7 + $0x130] sm:$0xff]  ;;  %v2532_v33 = vld [vmem:[#allocation7 + $0x198] sm:$0xff] }
 0x4b8   : > { %2552 = vmatpush.msrb.mxu3 %v2532_v33 }
 0x4b9   : > { %v2249_v61 = vmax.f32 %v2174_v60, %v2247_v24  ;;  %v2468_v60 = vld [vmem:[#allocation7 + $0x128] sm:$0xff] }
 0x4ba   : > { %v2530_v24 = vld [vmem:[#allocation7 + $0x188] sm:$0xff]  ;;  %2553 = vmatpush.msrb.mxu3 %v2531_v59 }
 0x4bb   : > { %v2250_v62 = vmax.f32 %v2102_v25, %v2249_v61  ;;  %v2467_v25 = vld [vmem:[#allocation7 + $0x120] sm:$0xff]  ;;  %v2466_v61 = vld [vmem:[#allocation7 + $0x118] sm:$0xff] }
 0x4bc   : > { %2554 = vmatpush.msrb.mxu3 %v2530_v24 }
 0x4bd   : > { %2303 = vmatpush.msrb.mxu0 %v2250_v62  ;;  %v2529_v62 = vld [vmem:[#allocation7 + $0x180] sm:$0xff] }
 0x4be   : > { %4087 = vmatmul.msk.f32.vlgmr.msrb.gmra.mxu0 %vm2260_vm8, %v2251_v63  ;;  %2555 = vmatpush.msrb.mxu3 %v2529_v62 }
 0x4c6   : > { %4088 = vmatmul.msk.f32.gmra.mxu0 %vm2260_vm8, %v2252_v15  ;;  %v2465_v15 = vld [vmem:[#allocation7 + $0x110] sm:$0xff] }
 0x4ce   : > { %4089 = vmatmul.msk.f32.gmra.mxu0 %vm2260_vm8, %v2253_v0  ;;  %v2602_v0 = vld [vmem:[#allocation7 + $0x238] sm:$0xff] }
 0x4d6   : > { %4090 = vmatmul.msk.f32.gmra.mxu0 %vm2260_vm8, %v2254_v43  ;;  %v2601_v43 = vld [vmem:[#allocation7 + $0x230] sm:$0xff] }
 0x4de   : > { %4091 = vmatmul.msk.f32.gmra.mxu0 %vm2260_vm8, %v2255_v1  ;;  %v2464_v1 = vld [vmem:[#allocation7 + $0x108] sm:$0xff] }
 0x4e6   : > { %4092 = vmatmul.msk.f32.gmra.mxu0 %vm2260_vm8, %v2256_v6 }
 0x4ee   : > { %4093 = vmatmul.msk.f32.gmra.mxu0 %vm2260_vm8, %v2257_v16  ;;  %v2567_v16 = vld [vmem:[#allocation7 + $0x1e8] sm:$0xff] }
 0x4f6   : > { %4094 = vmatmul.msk.f32.gmra.mxu0 %vm2260_vm8, %v2258_v17  ;;  %v2596_v17 = vld [vmem:[#allocation7 + $0x208] sm:$0xff] }
 0x4fe   : > { %4095 = vmatmul.msk.f32.gmra.mxu0 %vm2260_vm8, %v2259_v20  ;;  %v2566_v20 = vld [vmem:[#allocation7 + $0x1e0] sm:$0xff] }
 0x53b   : > { %v2305_v11 = vpop.f32.mrf.mxu0 }
 0x543   : > { %v2308_v58 = vpop.f32.mrf.mxu0 }
 0x544   : > { %4096 = vmatmul.msk.f32.vlgmr.msrb.gmra.mxu1 %vm2349_vm9, %v2308_v58  ;;  %v2645_v58 = vmul.f32 %v4293_v7, %v2644_v56  ;;  %v2840_v56 = vld [vmem:[#allocation8 + $0x30] sm:$0xff] }
 0x545   : > { %2482 = vmatpush.msrb.mxu1 %v2470_v18 }
 0x546   : > { %v2646_v59 = vadd.f32 %v4293_v7, %v2645_v58  ;;  %v2857_v58 = vld [vmem:[#allocation8 + $0xb0] sm:$0xff] }
 0x547   : > { %2483 = vmatpush.msrb.mxu1 %v2469_v32 }
 0x549   : > { %2484 = vmatpush.msrb.mxu1 %v2468_v60 }
 0x54b   : > { %v2311_v63 = vpop.f32.mrf.mxu0  ;;  %2485 = vmatpush.msrb.mxu1 %v2467_v25  ;;  %v2648_v25 = vsel %vm2647_vm10, %v4293_v7, %v2646_v59  ;;  %v2861_v7 = vld [vmem:[#allocation8 + $0xd0] sm:$0xff]  ;;  %v2716_v59 = vld [vmem:[%s5447_s6 + $0x58] sm:$0xff] }
 0x54c   : > { %4097 = vmatmul.msk.f32.vlgmr.msra.gmra.mxu1 %vm2349_vm9, %v2305_v11  ;;  %4098 = vmatmul.msk.f32.vlgmr.msra.gmra.mxu2 %vm2349_vm9, %v2311_v63 }
 0x54d   : > { %2486 = vmatpush.msrb.mxu1 %v2466_v61  ;;  %2614 = vmatpush.msra.mxu2 %v2602_v0  ;;  %v4539_v0 = vmov 5  }
 0x54e   : > { %4283 = vset.pattern.permute.xlu0 %v4539_v0  ;;  %v2967_v0 = vld [vmem:[#allocation8 + $0x168] sm:$0xff] }
 0x54f   : > { %2487 = vmatpush.msrb.mxu1 %v2465_v15  ;;  %2615 = vmatpush.msra.mxu2 %v2601_v43  ;;  %v4540_v43 = vmov 7  }
 0x550   : > { %4285 = vset.pattern.permute.xlu1 %v4540_v43  ;;  %2689 = vperm.xlu0 %4283, %v5287_v29   ;;  %v2851_v43 = vld [vmem:[#allocation8 + $0x80] sm:$0xff] }
 0x551   : > { %2488 = vmatpush.msrb.mxu1 %v2464_v1  ;;  %2616 = vmatpush.msra.mxu2 %v2600_v2  ;;  %v4541_v1 = vmov 6  }
 0x552   : > { %4284 = vset.pattern.permute.xlu2 %v4541_v1  ;;  %v2852_v1 = vld [vmem:[#allocation8 + $0x88] sm:$0xff] }
 0x553   : > { %v2314_v6 = vpop.f32.mrf.mxu0  ;;  %2489 = vmatpush.msrb.mxu1 %v2463_v3  ;;  %2617 = vmatpush.msra.mxu2 %v2599_v5 }
 0x554   : > { %4099 = vmatmul.msk.f32.vlgmr.msra.gmra.mxu3 %vm2349_vm9, %v2314_v6 }
 0x555   : > { %2581 = vmatpush.msra.mxu1 %v2569_v4  ;;  %2618 = vmatpush.msra.mxu2 %v2598_v12 }
 0x557   : > { %2582 = vmatpush.msra.mxu1 %v2568_v9  ;;  %2619 = vmatpush.msra.mxu2 %v2597_v13 }
 0x559   : > { %2583 = vmatpush.msra.mxu1 %v2567_v16  ;;  %2620 = vmatpush.msra.mxu2 %v2596_v17 }
 0x55b   : > { %2584 = vmatpush.msra.mxu1 %v2566_v20  ;;  %v2317_v23 = vpop.f32.mrf.mxu0  ;;  %2621 = vmatpush.msra.mxu2 %v2595_v22 }
 0x55c   : > { %4100 = vmatmul.msk.f32.vlgmr.msrb.gmra.mxu1 %vm2349_vm9, %v2317_v23 }
 0x55d   : > { %2585 = vmatpush.msra.mxu1 %v2565_v21 }
 0x55f   : > { %2586 = vmatpush.msra.mxu1 %v2564_v26 }
 0x561   : > { %2587 = vmatpush.msra.mxu1 %v2563_v28 }
 0x563   : > { %v2320_v38 = vpop.f32.mrf.mxu0  ;;  %2588 = vmatpush.msra.mxu1 %v2562_v30 }
 0x564   : > { %4101 = vmatmul.msk.f32.vlgmr.msrb.gmra.mxu2 %vm2349_vm9, %v2320_v38 }
 0x56b   : > { %v2323_v48 = vpop.f32.mrf.mxu0 }
 0x56c   : > { %4102 = vmatmul.msk.f32.vlgmr.msrb.gmra.mxu3 %vm2349_vm9, %v2323_v48 }
 0x573   : > { %v2326_v39 = vpop.f32.mrf.mxu0 }
 0x574   : > { %4103 = vmatmul.msk.f32.vlgmr.msra.gmra.mxu1 %vm2349_vm9, %v2326_v39 }
 0x57b   : > { %v2329_v31 = vpop.f32.mrf.mxu0 }
 0x57c   : > { %4104 = vmatmul.msk.f32.vlgmr.msra.gmra.mxu2 %vm2349_vm9, %v2329_v31 }
 0x5c1   : > { %v2370_v34 = vpop.f32.mrf.mxu1 }
 0x5c2   : > { %v2690_v28 = vpop.permute.xlu0 %2689 }
 0x5c9   : > { %v2393_v35 = vpop.f32.mrf.mxu1 }
 0x5ca   : > { %v2394_v37 = vadd.f32 %v2393_v35, %v2370_v34  ;;  %v2705_v34 = vld [vmem:[%s5447_s6] sm:$0xff] }
 0x5cf   : > { %v2425_v36 = vpop.f32.mrf.mxu2 }
 0x5d0   : > { %v2428_v41 = vadd.f32 %v2425_v36, %v2394_v37  ;;  %v2706_v36 = vld [vmem:[%s5447_s6 + $0x8] sm:$0xff]  ;;  %v2707_v37 = vld [vmem:[%s5447_s6 + $0x10] sm:$0xff] }
 0x5d7   : > { %v2458_v40 = vpop.f32.mrf.mxu3 }
 0x5d8   : > { %v2461_v42 = vadd.f32 %v2458_v40, %v2428_v41  ;;  %v2708_v40 = vld [vmem:[%s5447_s6 + $0x18] sm:$0xff]  ;;  %v2709_v41 = vld [vmem:[%s5447_s6 + $0x20] sm:$0xff] }
 0x5d9   : > { %v2491_v14 = vpop.f32.mrf.mxu1 }
 0x5da   : > { %v2494_v45 = vadd.f32 %v2491_v14, %v2461_v42  ;;  %v2710_v42 = vld [vmem:[%s5447_s6 + $0x28] sm:$0xff]  ;;  %v2711_v14 = vld [vmem:[%s5447_s6 + $0x30] sm:$0xff] }
 0x5e7   : > { %v2524_v44 = vpop.f32.mrf.mxu2 }
 0x5e8   : > { %v2527_v47 = vadd.f32 %v2524_v44, %v2494_v45  ;;  %v2712_v44 = vld [vmem:[%s5447_s6 + $0x38] sm:$0xff]  ;;  %v2713_v45 = vld [vmem:[%s5447_s6 + $0x40] sm:$0xff] }
 0x5ef   : > { %v2557_v46 = vpop.f32.mrf.mxu3 }
 0x5f0   : > { %v2560_v49 = vadd.f32 %v2557_v46, %v2527_v47  ;;  %v2714_v46 = vld [vmem:[%s5447_s6 + $0x48] sm:$0xff] }
 0x5f1   : > { %v2590_v50 = vpop.f32.mrf.mxu1  ;;  %v2848_v47 = vld [vmem:[#allocation8 + $0x70] sm:$0xff] }
 0x5f2   : > { %v2593_v51 = vadd.f32 %v2590_v50, %v2560_v49  ;;  %v2846_v49 = vld [vmem:[#allocation8 + $0x60] sm:$0xff]  ;;  %v3465_v50 = vld [vmem:[#allocation8 + $0x578] sm:$0xff]  ;;  %2921 = vmatpush.msrb.mxu2 %v2848_v47 }
 0x5f3   : > { %v3031_v47 = vld [vmem:[#allocation8 + $0x1f8] sm:$0xff] }
 0x5f4   : > { %2922 = vmatpush.msrb.mxu2 %v2846_v49 }
 0x5ff   : > { %v2623_v52 = vpop.f32.mrf.mxu2 }
 0x600   : > { %v2626_v11 = vadd.f32 %v2623_v52, %v2593_v51  ;;  %v2865_v51 = vld [vmem:[#allocation8 + $0xf0] sm:$0xff]  ;;  %v2866_v52 = vld [vmem:[#allocation8 + $0xf8] sm:$0xff] }
 0x601   : > { %2878 = vmatpush.msra.mxu0 %v2865_v51  ;;  %2898 = vmatpush.msrb.mxu1 %v2866_v52  ;;  %v3028_v51 = vld [vmem:[#allocation8 + $0x1e0] sm:$0xff]  ;;  %v3029_v52 = vld [vmem:[#allocation8 + $0x1e8] sm:$0xff] }
 0x602   : > { %v2631_v53 = vadd.f32 %v2629_v10, %v2626_v11  ;;  %v2844_v10 = vld [vmem:[#allocation8 + $0x50] sm:$0xff]  ;;  %v2715_v11 = vld [vmem:[%s5447_s6 + $0x50] sm:$0xff] }
 0x603   : > { %2923 = vmatpush.msrb.mxu2 %v2844_v10  ;;  %v3082_v10 = vld [vmem:[#allocation8 + $0x220] sm:$0xff] }
 0x604   : > { %v2632_v54 = vsel %vm2349_vm9, %v2631_v53, 0.0 }
 0x605   : > { %2633 = vadd.xlane.f32.xlu2 %v2632_v54  ;;  %v2864_v54 = vld [vmem:[#allocation8 + $0xe8] sm:$0xff]  ;;  %2924 = vmatpush.msrb.mxu2 %v2842_v55  ;;  %v3457_v55 = vld [vmem:[#allocation8 + $0x538] sm:$0xff] }
 0x606   : > { %2899 = vmatpush.msrb.mxu1 %v2864_v54  ;;  %v3080_v54 = vld [vmem:[#allocation8 + $0x210] sm:$0xff] }
 0x607   : > { %2925 = vmatpush.msrb.mxu2 %v2840_v56  ;;  %v3022_v56 = vld [vmem:[#allocation8 + $0x1b0] sm:$0xff] }
 0x608   : > { %2900 = vmatpush.msrb.mxu1 %v2862_v8  ;;  %v3025_v8 = vld [vmem:[#allocation8 + $0x1c8] sm:$0xff] }
 0x61d   : > { %2694 = vperm.xlu2 %4284, %v5287_v29  }
 0x678   : > { %v2634_v18 = vpop.xlane.xlu2 %2633 }
 0x679   : > { %v2635_v19 = vrot.slane %v2634_v18, 4 }
 0x67b   : > { %v2636_v57 = vadd.f32 %v2635_v19, %v2634_v18  ;;  %v2859_v18 = vld [vmem:[#allocation8 + $0xc0] sm:$0xff]  ;;  %v2860_v19 = vld [vmem:[#allocation8 + $0xc8] sm:$0xff] }
 0x67c   : > { %2901 = vmatpush.msrb.mxu1 %v2860_v19  ;;  %v3023_v19 = vld [vmem:[#allocation8 + $0x1b8] sm:$0xff] }
 0x67d   : > { %v2637_v32 = vrot.slane %v2636_v57, 2 }
 0x67f   : > { %v2638_v33 = vadd.f32 %v2637_v32, %v2636_v57  ;;  %v2838_v57 = vld [vmem:[#allocation8 + $0x20] sm:$0xff]  ;;  %v2858_v32 = vld [vmem:[#allocation8 + $0xb8] sm:$0xff] }
 0x680   : > { %v2695_v30 = vpop.permute.xlu2 %2694  ;;  %2926 = vmatpush.msrb.mxu2 %v2838_v57  ;;  %2902 = vmatpush.msrb.mxu1 %v2858_v32  ;;  %v3078_v57 = vld [vmem:[#allocation8 + $0x200] sm:$0xff]  ;;  %v3155_v32 = vld [vmem:[#allocation8 + $0x2f8] sm:$0xff] }
 0x681   : > { %v2639_v60 = vrot.slane %v2638_v33, 1 }
 0x683   : > { %v2640_v24 = vadd.f32 %v2639_v60, %v2638_v33  ;;  %v2836_v33 = vld [vmem:[#allocation8 + $0x10] sm:$0xff]  ;;  %v2855_v60 = vld [vmem:[#allocation8 + $0xa0] sm:$0xff] }
 0x684   : > { %2927 = vmatpush.msrb.mxu2 %v2836_v33  ;;  %v3021_v33 = vld [vmem:[#allocation8 + $0x1a8] sm:$0xff] }
 0x685   : > { %4168 = vpush %v2640_v24  ;;  %v2856_v24 = vld [vmem:[#allocation8 + $0xa8] sm:$0xff] }
 0x686   : > { %4170 = vpush %v2648_v25  ;;  %v2834_v25 = vld [vmem:[#allocation8] sm:$0xff]  ;;  %2903 = vmatpush.msrb.mxu1 %v2856_v24  ;;  %v3019_v24 = vld [vmem:[#allocation8 + $0x198] sm:$0xff] }
 0x687   : > { %2928 = vmatpush.msrb.mxu2 %v2834_v25  ;;  %v3016_v25 = vld [vmem:[#allocation8 + $0x180] sm:$0xff] }
 0x6b6   : > { %s4169_s7 = spop %4168 }
 0x6b7   : > { %s4171_s17 = spop %4170 }
 0x6b8   : > { %s2650_s8 = smul.f32 %s4171_s17, %s4169_s7  ;;  %s3843_s7 = sshll.u32 %s414_s5, 4  ;;  %s3844_s7 = int_to_ptr.vmem [resolvable:$true] %s3843_s7 }
 0x6ba   : > { %v2651_v61 = vstv %s2650_s8  ;;  %s4462_s8 = sshra.s32 %s3846_s16, 4  ;;  %s4463_s8 = int_to_ptr.hbm [resolvable:$true] %s4462_s8 }
 0x6bb   : > { %v2652_v62 = vsub.f32 %v2631_v53, %v2651_v61  ;;  %v2863_v53 = vld [vmem:[#allocation8 + $0xe0] sm:$0xff]  ;;  %v2969_v61 = vld [vmem:[#allocation8 + $0x178] sm:$0xff]  ;;  %p4469_p12 = scmp.lt.s32.totalorder %s4463_s8, %s5450_s9 }
 0x6bc   : > { %2879 = vmatpush.msra.mxu0 %v2863_v53  ;;  %3001 = vmatpush.msra.mxu2 %v2969_v61  ;;  %v3027_v53 = vld [vmem:[#allocation8 + $0x1d8] sm:$0xff] }
 0x6bd   : > { %v2653_v63 = vmul.f32 %v2652_v62, %v2652_v62  ;;  %v3151_v61 = vld [vmem:[#allocation8 + $0x2d8] sm:$0xff] }
 0x6be   : > { %2880 = vmatpush.msra.mxu0 %v2861_v7  ;;  %3002 = vmatpush.msra.mxu2 %v2967_v0  ;;  %v3024_v7 = vld [vmem:[#allocation8 + $0x1c0] sm:$0xff] }
 0x6bf   : > { %v2654_v15 = vsel %vm2349_vm9, %v2653_v63, 0.0  ;;  %v2854_v63 = vld [vmem:[#allocation8 + $0x98] sm:$0xff] }
 0x6c0   : > { %2655 = vadd.xlane.f32.xlu1 %v2654_v15  ;;  %2881 = vmatpush.msra.mxu0 %v2859_v18  ;;  %v3463_v15 = vld [vmem:[#allocation8 + $0x568] sm:$0xff] }
 0x6c1   : > { %2904 = vmatpush.msrb.mxu1 %v2854_v63  ;;  %v3093_v63 = vld [vmem:[#allocation8 + $0x278] sm:$0xff] }
 0x6c2   : > { %2882 = vmatpush.msra.mxu0 %v2857_v58  ;;  %v3020_v58 = vld [vmem:[#allocation8 + $0x1a0] sm:$0xff] }
 0x6c3   : > { %2905 = vmatpush.msrb.mxu1 %v2852_v1  ;;  %v3152_v1 = vld [vmem:[#allocation8 + $0x2e0] sm:$0xff] }
 0x6c4   : > { %2883 = vmatpush.msra.mxu0 %v2855_v60  ;;  %v3153_v60 = vld [vmem:[#allocation8 + $0x2e8] sm:$0xff] }
 0x6d9   : > { %2700 = vperm.xlu1 %4285, %v5287_v29  }
 0x733   : > { %v2656_v2 = vpop.xlane.xlu1 %2655 }
 0x734   : > { %v2657_v3 = vrot.slane %v2656_v2, 4 }
 0x736   : > { %v2658_v4 = vadd.f32 %v2657_v3, %v2656_v2  ;;  %v2849_v2 = vld [vmem:[#allocation8 + $0x78] sm:$0xff]  ;;  %v2968_v3 = vld [vmem:[#allocation8 + $0x170] sm:$0xff] }
 0x737   : > { %2981 = vmatpush.msra.mxu1 %v2968_v3  ;;  %v3089_v3 = vld [vmem:[#allocation8 + $0x258] sm:$0xff] }
 0x738   : > { %v2659_v5 = vrot.slane %v2658_v4, 2 }
 0x73a   : > { %v2660_v6 = vadd.f32 %v2659_v5, %v2658_v4  ;;  %v2965_v4 = vld [vmem:[#allocation8 + $0x158] sm:$0xff]  ;;  %v2847_v5 = vld [vmem:[#allocation8 + $0x68] sm:$0xff] }
 0x73b   : > { %3003 = vmatpush.msra.mxu2 %v2965_v4  ;;  %v3150_v4 = vld [vmem:[#allocation8 + $0x2d0] sm:$0xff] }
 0x73c   : > { %v2661_v9 = vrot.slane %v2660_v6, 1 }
 0x73e   : > { %v2662_v12 = vadd.f32 %v2661_v9, %v2660_v6  ;;  %v2717_v6 = vld [vmem:[%s5447_s6 + $0x60] sm:$0xff]  ;;  %v2966_v9 = vld [vmem:[#allocation8 + $0x160] sm:$0xff] }
 0x73f   : > { %2982 = vmatpush.msra.mxu1 %v2966_v9  ;;  %v3455_v9 = vld [vmem:[#allocation8 + $0x528] sm:$0xff] }
 0x740   : > { %4172 = vpush %v2662_v12  ;;  %v2963_v12 = vld [vmem:[#allocation8 + $0x148] sm:$0xff] }
 0x741   : > { %3004 = vmatpush.msra.mxu2 %v2963_v12  ;;  %v3148_v12 = vld [vmem:[#allocation8 + $0x2c0] sm:$0xff] }
 0x74b   : > { %v2701_v48 = vpop.permute.xlu1 %2700 }
 0x771   : > { %s4173_s23 = spop %4172 }
 0x772   : > { %s2672_s13 = smul.f32 %s4173_s23, %s4171_s17  ;;  %s3830_s17 = scalar_lea.sflag [#allocation4], %s4711_s18 }
 0x773   : > { %s4464_s23 = scalar_lea.hbm %s4463_s8, 16 }
 0x774   : > { %s2673_s27 = sadd.f32 1e-05, %s2672_s13  ;;  %p4465_p1 = scmp.ne.s32.totalorder %s4463_s8, %s4464_s23 }
 0x776   : > { %v2674_v13 = vstv %s2673_s27  ;;  %p4466_p3 = pnand %p4465_p1, %p4680_p4 }
 0x777   : > { %4294 = vrsqrt.f32 %v2674_v13  ;;  %vm2681_vm12 = vweird.f32 %v2674_v13 }
 0x778   : > { %p4467_p5 = pneg %p4466_p3 }
 0x77d   : > { %v4295_v16 = vpop.eup %4294 }
 0x77e   : > { %v2676_v17 = vmul.f32 %v4295_v16, %v2674_v13  ;;  %vm2682_vm11 = vweird.f32 %v4295_v16  ;;  %v2845_v13 = vld [vmem:[#allocation8 + $0x58] sm:$0xff] }
 0x77f   : > { %vm2683_vm13 = vmor %vm2681_vm12, %vm2682_vm11 }
 0x780   : > { %v2677_v20 = vmul.f32 %v4295_v16, %v2676_v17  ;;  %v2961_v17 = vld [vmem:[#allocation8 + $0x138] sm:$0xff] }
 0x781   : > { %3005 = vmatpush.msra.mxu2 %v2961_v17  ;;  %v3146_v17 = vld [vmem:[#allocation8 + $0x2b0] sm:$0xff] }
 0x782   : > { %v2678_v21 = vmul.f32 0.5, %v2677_v20  ;;  %v2843_v20 = vld [vmem:[#allocation8 + $0x48] sm:$0xff] }
 0x784   : > { %v2679_v22 = vsub.f32 1.5, %v2678_v21  ;;  %v2962_v21 = vld [vmem:[#allocation8 + $0x140] sm:$0xff] }
 0x786   : > { %v2680_v23 = vmul.f32 %v4295_v16, %v2679_v22  ;;  %v2959_v22 = vld [vmem:[#allocation8 + $0x128] sm:$0xff] }
 0x787   : > { %3006 = vmatpush.msra.mxu2 %v2959_v22  ;;  %v3083_v22 = vld [vmem:[#allocation8 + $0x228] sm:$0xff] }
 0x788   : > { %v2684_v26 = vsel %vm2683_vm13, %v4295_v16, %v2680_v23  ;;  %v2964_v16 = vld [vmem:[#allocation8 + $0x150] sm:$0xff]  ;;  %v2841_v23 = vld [vmem:[#allocation8 + $0x38] sm:$0xff] }
 0x789   : > { %4174 = vpush %v2684_v26  ;;  %2983 = vmatpush.msra.mxu1 %v2964_v16  ;;  %v2960_v26 = vld [vmem:[#allocation8 + $0x130] sm:$0xff]  ;;  %v3085_v16 = vld [vmem:[#allocation8 + $0x238] sm:$0xff] }
 0x78b   : > { %2984 = vmatpush.msra.mxu1 %v2962_v21 }
 0x78d   : > { %2985 = vmatpush.msra.mxu1 %v2960_v26  ;;  %v3141_v26 = vld [vmem:[#allocation8 + $0x288] sm:$0xff] }
 0x7ba   : > { %s4175_s15 = spop %4174 }
 0x7bb   : > { %v2686_v27 = vstv %s4175_s15  ;;  %s4468_s15 = scalar_lea.hbm %s5450_s9, 32 }
 0x7bc   : > { %v2687_v29 = vmul.f32 %v2686_v27, %v2652_v62  ;;  %v2853_v62 = vld [vmem:[#allocation8 + $0x90] sm:$0xff]  ;;  %v2957_v27 = vld [vmem:[#allocation8 + $0x118] sm:$0xff]  ;;  %p4470_p7 = scmp.lt.s32.totalorder %s4468_s15, %s4464_s23 }
 0x7bd   : > { %2884 = vmatpush.msra.mxu0 %v2853_v62  ;;  %3007 = vmatpush.msra.mxu2 %v2957_v27  ;;  %v3017_v62 = vld [vmem:[#allocation8 + $0x188] sm:$0xff]  ;;  %v3278_v27 = vld [vmem:[#allocation8 + $0x3f0] sm:$0xff] }
 0x7be   : > { %v2692_v38 = vmul.f32 %v2690_v28, %v2687_v29  ;;  %v2718_v28 = vld [vmem:[%s5447_s6 + $0x68] sm:$0xff]  ;;  %v2839_v29 = vld [vmem:[#allocation8 + $0x28] sm:$0xff]  ;;  %p4471_p8 = por %p4470_p7, %p4469_p12 }
 0x7bf   : > { %2885 = vmatpush.msra.mxu0 %v2851_v43  ;;  %v3091_v43 = vld [vmem:[#allocation8 + $0x268] sm:$0xff] }
 0x7c0   : > { %v2697_v39 = vadd.f32 %v2695_v30, %v2692_v38  ;;  %v2958_v30 = vld [vmem:[#allocation8 + $0x120] sm:$0xff]  ;;  %v2955_v38 = vld [vmem:[#allocation8 + $0x108] sm:$0xff]  ;;  %p4472_p9 = pnand %p4471_p8, %p4467_p5 }
 0x7c1   : > { %2941 = vmatpush.msrb.mxu0 %v2849_v2  ;;  %2986 = vmatpush.msra.mxu1 %v2958_v30  ;;  %v3149_v2 = vld [vmem:[#allocation8 + $0x2c8] sm:$0xff]  ;;  %v3276_v30 = vld [vmem:[#allocation8 + $0x3e0] sm:$0xff] }
 0x7c2   : > { %vm2698_vm14 = vcmp.gt.f32.partialorder %v2697_v39, 0.0  ;;  %v2703_v31 = vmul.f32 %v2701_v48, %v2697_v39  ;;  %v2837_v48 = vld [vmem:[#allocation8 + $0x18] sm:$0xff]  ;;  %3008 = vmatpush.msra.mxu2 %v2955_v38  ;;  %v3079_v38 = vld [vmem:[#allocation8 + $0x208] sm:$0xff] }
 0x7c3   : > { %2942 = vmatpush.msrb.mxu0 %v2847_v5  ;;  %v3147_v5 = vld [vmem:[#allocation8 + $0x2b8] sm:$0xff] }
 0x7c4   : > { %v2704_v35 = vsel %vm2698_vm14, %v2697_v39, %v2703_v31  ;;  %v2956_v39 = vld [vmem:[#allocation8 + $0x110] sm:$0xff]  ;;  %v2835_v31 = vld [vmem:[#allocation8 + $0x8] sm:$0xff] }
 0x7c5   : > { %2784 = vmatpush.msra.mxu3 %v2704_v35  ;;  %2943 = vmatpush.msrb.mxu0 %v2845_v13  ;;  %v2719_v35 = vld [vmem:[%s5447_s6 + $0x70] sm:$0xff]  ;;  %v3145_v13 = vld [vmem:[#allocation8 + $0x2a8] sm:$0xff] }
 0x7c6   : > { %4105 = vmatmul.msk.f32.vlgmr.msra.gmra.mxu3 %vm2260_vm8, %v2705_v34  ;;  %2987 = vmatpush.msra.mxu1 %v2956_v39  ;;  %v2954_v34 = vld [vmem:[#allocation8 + $0x100] sm:$0xff]  ;;  %v3216_v39 = vld [vmem:[#allocation8 + $0x370] sm:$0xff] }
 0x7c7   : > { %3497 = vmatpush.msrb.mxu3 %v3465_v50  ;;  %2944 = vmatpush.msrb.mxu0 %v2843_v20  ;;  %v3084_v50 = vld [vmem:[#allocation8 + $0x230] sm:$0xff]  ;;  %v3143_v20 = vld [vmem:[#allocation8 + $0x298] sm:$0xff] }
 0x7c8   : > { %2988 = vmatpush.msra.mxu1 %v2954_v34  ;;  %v3274_v34 = vld [vmem:[#allocation8 + $0x3d0] sm:$0xff] }
 0x7c9   : > { %3498 = vmatpush.msrb.mxu3 %v3463_v15  ;;  %2945 = vmatpush.msrb.mxu0 %v2841_v23  ;;  %v3154_v15 = vld [vmem:[#allocation8 + $0x2f0] sm:$0xff]  ;;  %v3144_v23 = vld [vmem:[#allocation8 + $0x2a0] sm:$0xff] }
 0x7cb   : > { %2946 = vmatpush.msrb.mxu0 %v2839_v29  ;;  %v3142_v29 = vld [vmem:[#allocation8 + $0x290] sm:$0xff] }
 0x7cd   : > { %2947 = vmatpush.msrb.mxu0 %v2837_v48  ;;  %v3140_v48 = vld [vmem:[#allocation8 + $0x280] sm:$0xff] }
 0x7ce   : > { %4106 = vmatmul.msk.f32.gmra.mxu3 %vm2260_vm8, %v2706_v36  ;;  %v3461_v36 = vld [vmem:[#allocation8 + $0x558] sm:$0xff] }
 0x7cf   : > { %2948 = vmatpush.msrb.mxu0 %v2835_v31  ;;  %3499 = vmatpush.msrb.mxu3 %v3461_v36  ;;  %v3217_v31 = vld [vmem:[#allocation8 + $0x378] sm:$0xff]  ;;  %v3214_v36 = vld [vmem:[#allocation8 + $0x360] sm:$0xff] }
 0x7d6   : > { %4107 = vmatmul.msk.f32.gmra.mxu3 %vm2260_vm8, %v2707_v37  ;;  %v2720_v37 = vld [vmem:[%s5447_s6 + $0x78] sm:$0xff] }
 0x7de   : > { %4108 = vmatmul.msk.f32.gmra.mxu3 %vm2260_vm8, %v2708_v40  ;;  %v3459_v40 = vld [vmem:[#allocation8 + $0x548] sm:$0xff] }
 0x7df   : > { %3500 = vmatpush.msrb.mxu3 %v3459_v40  ;;  %v3272_v40 = vld [vmem:[#allocation8 + $0x3c0] sm:$0xff] }
 0x7e1   : > { %3501 = vmatpush.msrb.mxu3 %v3457_v55  ;;  %v3204_v55 = vld [vmem:[#allocation8 + $0x310] sm:$0xff] }
 0x7e3   : > { %3502 = vmatpush.msrb.mxu3 %v3455_v9  ;;  %v3269_v9 = vld [vmem:[#allocation8 + $0x3a8] sm:$0xff] }
 0x7e6   : > { %4109 = vmatmul.msk.f32.gmra.mxu3 %vm2260_vm8, %v2709_v41  ;;  %v3092_v41 = vld [vmem:[#allocation8 + $0x270] sm:$0xff] }
 0x7ee   : > { %4110 = vmatmul.msk.f32.gmra.mxu3 %vm2260_vm8, %v2710_v42 }
 0x7f6   : > { %4111 = vmatmul.msk.f32.gmra.mxu3 %vm2260_vm8, %v2711_v14  ;;  %v3090_v14 = vld [vmem:[#allocation8 + $0x260] sm:$0xff] }
 0x7fe   : > { %4112 = vmatmul.msk.f32.gmra.mxu3 %vm2260_vm8, %v2712_v44  ;;  %v3088_v44 = vld [vmem:[#allocation8 + $0x250] sm:$0xff] }
 0x806   : > { %4113 = vmatmul.msk.f32.gmra.mxu3 %vm2260_vm8, %v2713_v45  ;;  %v3086_v45 = vld [vmem:[#allocation8 + $0x240] sm:$0xff] }
 0x80e   : > { %4114 = vmatmul.msk.f32.gmra.mxu3 %vm2260_vm8, %v2714_v46  ;;  %v3030_v46 = vld [vmem:[#allocation8 + $0x1f0] sm:$0xff] }
 0x816   : > { %4115 = vmatmul.msk.f32.gmra.mxu3 %vm2260_vm8, %v2715_v11  ;;  %v3026_v11 = vld [vmem:[#allocation8 + $0x1d0] sm:$0xff] }
 0x81e   : > { %4116 = vmatmul.msk.f32.gmra.mxu3 %vm2260_vm8, %v2716_v59  ;;  %v3018_v59 = vld [vmem:[#allocation8 + $0x190] sm:$0xff] }
 0x826   : > { %4117 = vmatmul.msk.f32.gmra.mxu3 %vm2260_vm8, %v2717_v6  ;;  %v3087_v6 = vld [vmem:[#allocation8 + $0x248] sm:$0xff] }
 0x82e   : > { %4118 = vmatmul.msk.f32.gmra.mxu3 %vm2260_vm8, %v2718_v28  ;;  %v3081_v28 = vld [vmem:[#allocation8 + $0x218] sm:$0xff] }
 0x836   : > { %4119 = vmatmul.msk.f32.gmra.mxu3 %vm2260_vm8, %v2719_v35 }
 0x83e   : > { %4120 = vmatmul.msk.f32.gmra.mxu3 %vm2260_vm8, %v2720_v37  ;;  %v3215_v37 = vld [vmem:[#allocation8 + $0x368] sm:$0xff] }
 0x849   : > { %v2786_v42 = vpop.f32.mrf.mxu3 }
 0x84a   : > { %4123 = vmatmul.msk.f32.vlgmr.msrb.gmra.mxu2 %vm2349_vm9, %v2786_v42 }
 0x84b   : > { %3105 = vmatpush.msrb.mxu2 %v3092_v41  ;;  %v3212_v41 = vld [vmem:[#allocation8 + $0x350] sm:$0xff] }
 0x84d   : > { %3106 = vmatpush.msrb.mxu2 %v3090_v14  ;;  %v3270_v14 = vld [vmem:[#allocation8 + $0x3b0] sm:$0xff] }
 0x84f   : > { %3107 = vmatpush.msrb.mxu2 %v3088_v44  ;;  %v3210_v44 = vld [vmem:[#allocation8 + $0x340] sm:$0xff] }
 0x851   : > { %v2789_v49 = vpop.f32.mrf.mxu3  ;;  %3108 = vmatpush.msrb.mxu2 %v3086_v45  ;;  %v3211_v45 = vld [vmem:[#allocation8 + $0x348] sm:$0xff] }
 0x852   : > { %4121 = vmatmul.msk.f32.vlgmr.msra.gmra.mxu0 %vm2349_vm9, %v2789_v49  ;;  %4122 = vmatmul.msk.f32.vlgmr.msrb.gmra.mxu1 %vm2349_vm9, %v2789_v49  ;;  %v3453_v49 = vld [vmem:[#allocation8 + $0x518] sm:$0xff] }
 0x853   : > { %3043 = vmatpush.msra.mxu0 %v3030_v46  ;;  %3063 = vmatpush.msrb.mxu1 %v3031_v47  ;;  %v3268_v46 = vld [vmem:[#allocation8 + $0x3a0] sm:$0xff]  ;;  %v3208_v47 = vld [vmem:[#allocation8 + $0x330] sm:$0xff] }
 0x854   : > { %3109 = vmatpush.msrb.mxu2 %v3084_v50  ;;  %v3209_v50 = vld [vmem:[#allocation8 + $0x338] sm:$0xff]  ;;  %3503 = vmatpush.msrb.mxu3 %v3453_v49 }
 0x855   : > { %3044 = vmatpush.msra.mxu0 %v3028_v51  ;;  %3064 = vmatpush.msrb.mxu1 %v3029_v52  ;;  %v3266_v51 = vld [vmem:[#allocation8 + $0x390] sm:$0xff] }
 0x856   : > { %3110 = vmatpush.msrb.mxu2 %v3082_v10  ;;  %v3206_v10 = vld [vmem:[#allocation8 + $0x320] sm:$0xff] }
 0x857   : > { %3045 = vmatpush.msra.mxu0 %v3026_v11  ;;  %3065 = vmatpush.msrb.mxu1 %v3027_v53  ;;  %v3207_v11 = vld [vmem:[#allocation8 + $0x328] sm:$0xff]  ;;  %v3264_v53 = vld [vmem:[#allocation8 + $0x380] sm:$0xff] }
 0x858   : > { %3111 = vmatpush.msrb.mxu2 %v3080_v54  ;;  %v3341_v54 = vld [vmem:[#allocation8 + $0x478] sm:$0xff] }
 0x859   : > { %3046 = vmatpush.msra.mxu0 %v3024_v7  ;;  %3066 = vmatpush.msrb.mxu1 %v3025_v8  ;;  %v2792_v18 = vpop.f32.mrf.mxu3  ;;  %v3205_v7 = vld [vmem:[#allocation8 + $0x318] sm:$0xff]  ;;  %v3339_v8 = vld [vmem:[#allocation8 + $0x468] sm:$0xff] }
 0x85a   : > { %4124 = vmatmul.msk.f32.vlgmr.msrb.gmra.mxu0 %vm2349_vm9, %v2786_v42  ;;  %4125 = vmatmul.msk.f32.vlgmr.msra.gmra.mxu1 %vm2349_vm9, %v2792_v18  ;;  %v3213_v42 = vld [vmem:[#allocation8 + $0x358] sm:$0xff] }
 0x85b   : > { %4126 = vmatmul.msk.f32.vlgmr.msra.gmra.mxu2 %vm2349_vm9, %v2792_v18  ;;  %3047 = vmatpush.msra.mxu0 %v3022_v56  ;;  %v3202_v56 = vld [vmem:[#allocation8 + $0x300] sm:$0xff]  ;;  %v3451_v18 = vld [vmem:[#allocation8 + $0x508] sm:$0xff] }
 0x85c   : > { %3067 = vmatpush.msrb.mxu1 %v3023_v19  ;;  %3112 = vmatpush.msrb.mxu2 %v3078_v57  ;;  %v3203_v19 = vld [vmem:[#allocation8 + $0x308] sm:$0xff]  ;;  %v3279_v57 = vld [vmem:[#allocation8 + $0x3f8] sm:$0xff] }
 0x85d   : > { %3048 = vmatpush.msra.mxu0 %v3020_v58  ;;  %3504 = vmatpush.msrb.mxu3 %v3451_v18  ;;  %v3340_v58 = vld [vmem:[#allocation8 + $0x470] sm:$0xff] }
 0x85e   : > { %3187 = vmatpush.msra.mxu2 %v3155_v32  ;;  %3068 = vmatpush.msrb.mxu1 %v3021_v33  ;;  %v3337_v32 = vld [vmem:[#allocation8 + $0x458] sm:$0xff]  ;;  %v3526_v18 = vld [vmem:[#allocation8 + $0x5f0] sm:$0xff] }
 0x85f   : > { %3049 = vmatpush.msra.mxu0 %v3018_v59  ;;  %v3277_v59 = vld [vmem:[#allocation8 + $0x3e8] sm:$0xff] }
 0x860   : > { %3188 = vmatpush.msra.mxu2 %v3153_v60  ;;  %3069 = vmatpush.msrb.mxu1 %v3019_v24  ;;  %v3338_v60 = vld [vmem:[#allocation8 + $0x460] sm:$0xff]  ;;  %v3335_v24 = vld [vmem:[#allocation8 + $0x448] sm:$0xff] }
 0x861   : > { %3050 = vmatpush.msra.mxu0 %v3016_v25  ;;  %v2795_v0 = vpop.f32.mrf.mxu3  ;;  %v3275_v25 = vld [vmem:[#allocation8 + $0x3d8] sm:$0xff] }
 0x862   : > { %3189 = vmatpush.msra.mxu2 %v3151_v61  ;;  %3070 = vmatpush.msrb.mxu1 %v3017_v62  ;;  %v3589_v61 = vld [vmem:[#allocation8 + $0x678] sm:$0xff]  ;;  %v3336_v62 = vld [vmem:[#allocation8 + $0x450] sm:$0xff] }
 0x863   : > { %3125 = vmatpush.msrb.mxu0 %v3093_v63  ;;  %4128 = vmatmul.msk.f32.vlgmr.msrb.gmra.mxu1 %vm2349_vm9, %v2795_v0  ;;  %v3333_v63 = vld [vmem:[#allocation8 + $0x438] sm:$0xff] }
 0x864   : > { %3167 = vmatpush.msra.mxu1 %v3154_v15  ;;  %4127 = vmatmul.msk.f32.vlgmr.msra.gmra.mxu0 %vm2349_vm9, %v2795_v0  ;;  %v3273_v15 = vld [vmem:[#allocation8 + $0x3c8] sm:$0xff] }
 0x865   : > { %3126 = vmatpush.msrb.mxu0 %v3091_v43  ;;  %3190 = vmatpush.msra.mxu2 %v3149_v2  ;;  %v3587_v0 = vld [vmem:[#allocation8 + $0x668] sm:$0xff]  ;;  %v3334_v43 = vld [vmem:[#allocation8 + $0x440] sm:$0xff]  ;;  %v3271_v2 = vld [vmem:[#allocation8 + $0x3b8] sm:$0xff] }
 0x866   : > { %3168 = vmatpush.msra.mxu1 %v3152_v1  ;;  %v3331_v1 = vld [vmem:[#allocation8 + $0x428] sm:$0xff]  ;;  %3621 = vmatpush.msra.mxu3 %v3589_v61  ;;  %v3523_v61 = vld [vmem:[#allocation8 + $0x5d8] sm:$0xff] }
 0x867   : > { %3127 = vmatpush.msrb.mxu0 %v3089_v3  ;;  %3191 = vmatpush.msra.mxu2 %v3147_v5  ;;  %v3585_v3 = vld [vmem:[#allocation8 + $0x658] sm:$0xff] }
 0x868   : > { %3169 = vmatpush.msra.mxu1 %v3150_v4  ;;  %v3332_v4 = vld [vmem:[#allocation8 + $0x430] sm:$0xff]  ;;  %v3329_v5 = vld [vmem:[#allocation8 + $0x418] sm:$0xff]  ;;  %3622 = vmatpush.msra.mxu3 %v3587_v0  ;;  %v3521_v0 = vld [vmem:[#allocation8 + $0x5c8] sm:$0xff] }
 0x869   : > { %3128 = vmatpush.msrb.mxu0 %v3087_v6  ;;  %3192 = vmatpush.msra.mxu2 %v3145_v13  ;;  %v2798_v21 = vpop.f32.mrf.mxu3  ;;  %v3330_v13 = vld [vmem:[#allocation8 + $0x420] sm:$0xff] }
 0x86a   : > { %3170 = vmatpush.msra.mxu1 %v3148_v12  ;;  %4129 = vmatmul.msk.f32.vlgmr.msrb.gmra.mxu2 %vm2349_vm9, %v2798_v21  ;;  %v3583_v12 = vld [vmem:[#allocation8 + $0x648] sm:$0xff] }
 0x86b   : > { %3129 = vmatpush.msrb.mxu0 %v3085_v16  ;;  %3193 = vmatpush.msra.mxu2 %v3143_v20  ;;  %v3327_v16 = vld [vmem:[#allocation8 + $0x408] sm:$0xff]  ;;  %v3328_v20 = vld [vmem:[#allocation8 + $0x410] sm:$0xff] }
 0x86c   : > { %3171 = vmatpush.msra.mxu1 %v3146_v17  ;;  %3623 = vmatpush.msra.mxu3 %v3585_v3  ;;  %v3267_v17 = vld [vmem:[#allocation8 + $0x398] sm:$0xff]  ;;  %v3578_v3 = vld [vmem:[#allocation8 + $0x620] sm:$0xff] }
 0x86d   : > { %3130 = vmatpush.msrb.mxu0 %v3083_v22  ;;  %3194 = vmatpush.msra.mxu2 %v3141_v26  ;;  %v3265_v22 = vld [vmem:[#allocation8 + $0x388] sm:$0xff]  ;;  %v3326_v26 = vld [vmem:[#allocation8 + $0x400] sm:$0xff] }
 0x86e   : > { %3172 = vmatpush.msra.mxu1 %v3144_v23  ;;  %3624 = vmatpush.msra.mxu3 %v3583_v12  ;;  %v3581_v23 = vld [vmem:[#allocation8 + $0x638] sm:$0xff]  ;;  %v3576_v12 = vld [vmem:[#allocation8 + $0x610] sm:$0xff] }
 0x86f   : > { %3291 = vmatpush.msrb.mxu2 %v3278_v27  ;;  %3131 = vmatpush.msrb.mxu0 %v3081_v28  ;;  %v3462_v27 = vld [vmem:[#allocation8 + $0x560] sm:$0xff]  ;;  %v3402_v28 = vld [vmem:[#allocation8 + $0x4f0] sm:$0xff] }
 0x870   : > { %3173 = vmatpush.msra.mxu1 %v3142_v29  ;;  %v3403_v29 = vld [vmem:[#allocation8 + $0x4f8] sm:$0xff]  ;;  %3625 = vmatpush.msra.mxu3 %v3581_v23  ;;  %v3712_v23 = vld [vmem:[#allocation8 + $0x770] sm:$0xff] }
 0x871   : > { %3292 = vmatpush.msrb.mxu2 %v3276_v30  ;;  %3132 = vmatpush.msrb.mxu0 %v3079_v38  ;;  %v2801_v35 = vpop.f32.mrf.mxu3  ;;  %v3460_v30 = vld [vmem:[#allocation8 + $0x550] sm:$0xff] }
 0x872   : > { %3174 = vmatpush.msra.mxu1 %v3140_v48  ;;  %4130 = vmatmul.msk.f32.vlgmr.msrb.gmra.mxu0 %vm2349_vm9, %v2798_v21  ;;  %v3464_v21 = vld [vmem:[#allocation8 + $0x570] sm:$0xff]  ;;  %v3579_v48 = vld [vmem:[#allocation8 + $0x628] sm:$0xff] }
 0x873   : > { %3229 = vmatpush.msra.mxu0 %v3216_v39  ;;  %3293 = vmatpush.msrb.mxu2 %v3274_v34  ;;  %v3400_v39 = vld [vmem:[#allocation8 + $0x4e0] sm:$0xff] }
 0x874   : > { %3249 = vmatpush.msrb.mxu1 %v3217_v31  ;;  %4132 = vmatmul.msk.f32.vlgmr.msra.gmra.mxu2 %vm2349_vm9, %v2801_v35  ;;  %v3401_v31 = vld [vmem:[#allocation8 + $0x4e8] sm:$0xff]  ;;  %v3458_v34 = vld [vmem:[#allocation8 + $0x540] sm:$0xff] }
 0x875   : > { %4131 = vmatmul.msk.f32.vlgmr.msra.gmra.mxu1 %vm2349_vm9, %v2801_v35  ;;  %3230 = vmatpush.msra.mxu0 %v3214_v36  ;;  %v3577_v35 = vld [vmem:[#allocation8 + $0x618] sm:$0xff]  ;;  %v3398_v36 = vld [vmem:[#allocation8 + $0x4d0] sm:$0xff] }
 0x876   : > { %3250 = vmatpush.msrb.mxu1 %v3215_v37  ;;  %3294 = vmatpush.msrb.mxu2 %v3272_v40  ;;  %v3399_v37 = vld [vmem:[#allocation8 + $0x4d8] sm:$0xff]  ;;  %v3456_v40 = vld [vmem:[#allocation8 + $0x530] sm:$0xff] }
 0x877   : > { %3231 = vmatpush.msra.mxu0 %v3212_v41  ;;  %3626 = vmatpush.msra.mxu3 %v3579_v48  ;;  %v3575_v41 = vld [vmem:[#allocation8 + $0x608] sm:$0xff]  ;;  %v3708_v48 = vld [vmem:[#allocation8 + $0x750] sm:$0xff] }
 0x878   : > { %3251 = vmatpush.msrb.mxu1 %v3213_v42  ;;  %3295 = vmatpush.msrb.mxu2 %v3270_v14  ;;  %v3396_v42 = vld [vmem:[#allocation8 + $0x4c0] sm:$0xff]  ;;  %v3397_v14 = vld [vmem:[#allocation8 + $0x4c8] sm:$0xff] }
 0x879   : > { %3232 = vmatpush.msra.mxu0 %v3210_v44  ;;  %v2804_v52 = vpop.f32.mrf.mxu3  ;;  %3627 = vmatpush.msra.mxu3 %v3577_v35  ;;  %v3454_v44 = vld [vmem:[#allocation8 + $0x520] sm:$0xff] }
 0x87a   : > { %3252 = vmatpush.msrb.mxu1 %v3211_v45  ;;  %3296 = vmatpush.msrb.mxu2 %v3268_v46  ;;  %v3394_v45 = vld [vmem:[#allocation8 + $0x4b0] sm:$0xff]  ;;  %v3395_v46 = vld [vmem:[#allocation8 + $0x4b8] sm:$0xff]  ;;  %v3644_v35 = vld [vmem:[#allocation8 + $0x6c0] sm:$0xff] }
 0x87b   : > { %3233 = vmatpush.msra.mxu0 %v3208_v47  ;;  %3628 = vmatpush.msra.mxu3 %v3575_v41  ;;  %v3452_v47 = vld [vmem:[#allocation8 + $0x510] sm:$0xff]  ;;  %v3643_v41 = vld [vmem:[#allocation8 + $0x6b8] sm:$0xff] }
 0x87c   : > { %3253 = vmatpush.msrb.mxu1 %v3209_v50  ;;  %3297 = vmatpush.msrb.mxu2 %v3266_v51  ;;  %v3713_v50 = vld [vmem:[#allocation8 + $0x778] sm:$0xff]  ;;  %v3392_v51 = vld [vmem:[#allocation8 + $0x4a0] sm:$0xff] }
 0x87d   : > { %3234 = vmatpush.msra.mxu0 %v3206_v10  ;;  %v3450_v10 = vld [vmem:[#allocation8 + $0x500] sm:$0xff] }
 0x87e   : > { %3254 = vmatpush.msrb.mxu1 %v3207_v11  ;;  %3298 = vmatpush.msrb.mxu2 %v3264_v53  ;;  %v3711_v11 = vld [vmem:[#allocation8 + $0x768] sm:$0xff]  ;;  %v3390_v53 = vld [vmem:[#allocation8 + $0x490] sm:$0xff] }
 0x87f   : > { %3235 = vmatpush.msra.mxu0 %v3204_v55  ;;  %v3709_v55 = vld [vmem:[#allocation8 + $0x758] sm:$0xff] }
 0x880   : > { %3373 = vmatpush.msra.mxu2 %v3341_v54  ;;  %3255 = vmatpush.msrb.mxu1 %v3205_v7  ;;  %v3391_v54 = vld [vmem:[#allocation8 + $0x498] sm:$0xff]  ;;  %v3588_v7 = vld [vmem:[#allocation8 + $0x670] sm:$0xff] }
 0x881   : > { %3236 = vmatpush.msra.mxu0 %v3202_v56  ;;  %v5376_v33 = vpop.f32.mrf.mxu3  ;;  %v3389_v56 = vld [vmem:[#allocation8 + $0x488] sm:$0xff] }
 0x882   : > { %3374 = vmatpush.msra.mxu2 %v3339_v8  ;;  %3256 = vmatpush.msrb.mxu1 %v3203_v19  ;;  %v3388_v8 = vld [vmem:[#allocation8 + $0x480] sm:$0xff]  ;;  %v3527_v19 = vld [vmem:[#allocation8 + $0x5f8] sm:$0xff] }
 0x883   : > { %4133 = vmatmul.msk.f32.vlgmr.msra.gmra.mxu0 %vm2349_vm9, %v2804_v52  ;;  %4134 = vmatmul.msk.f32.vlgmr.msrb.gmra.mxu1 %vm2349_vm9, %v2804_v52  ;;  %v3393_v52 = vld [vmem:[#allocation8 + $0x4a8] sm:$0xff] }
 0x884   : > { %3311 = vmatpush.msrb.mxu0 %v3279_v57  ;;  %3353 = vmatpush.msra.mxu1 %v3340_v58  ;;  %v3586_v57 = vld [vmem:[#allocation8 + $0x660] sm:$0xff] }
 0x885   : > { %3375 = vmatpush.msra.mxu2 %v3337_v32  ;;  %v3524_v32 = vld [vmem:[#allocation8 + $0x5e0] sm:$0xff] }
 0x886   : > { %3312 = vmatpush.msrb.mxu0 %v3277_v59  ;;  %4135 = vmatmul.msk.f32.vlgmr.msrb.gmra.mxu2 %vm2349_vm9, %v5376_v33  ;;  %v3525_v59 = vld [vmem:[#allocation8 + $0x5e8] sm:$0xff] }
 0x887   : > { %3354 = vmatpush.msra.mxu1 %v3338_v60  ;;  %3376 = vmatpush.msra.mxu2 %v3335_v24  ;;  %v3584_v60 = vld [vmem:[#allocation8 + $0x650] sm:$0xff] }
 0x888   : > { %3313 = vmatpush.msrb.mxu0 %v3275_v25  ;;  %v3522_v24 = vld [vmem:[#allocation8 + $0x5d0] sm:$0xff]  ;;  %v3705_v25 = vld [vmem:[#allocation8 + $0x738] sm:$0xff] }
 0x889   : > { %3355 = vmatpush.msra.mxu1 %v3336_v62  ;;  %3377 = vmatpush.msra.mxu2 %v3333_v63  ;;  %v2810_v6 = vpop.f32.mrf.mxu3  ;;  %v3582_v62 = vld [vmem:[#allocation8 + $0x640] sm:$0xff] }
 0x88a   : > { %3314 = vmatpush.msrb.mxu0 %v3273_v15  ;;  %v3520_v63 = vld [vmem:[#allocation8 + $0x5c0] sm:$0xff]  ;;  %v3703_v15 = vld [vmem:[#allocation8 + $0x728] sm:$0xff] }
 0x88b   : > { %3356 = vmatpush.msra.mxu1 %v3334_v43  ;;  %3378 = vmatpush.msra.mxu2 %v3331_v1  ;;  %v3580_v43 = vld [vmem:[#allocation8 + $0x630] sm:$0xff] }
 0x88c   : > { %3315 = vmatpush.msrb.mxu0 %v3271_v2  ;;  %v3518_v1 = vld [vmem:[#allocation8 + $0x5b0] sm:$0xff]  ;;  %v3519_v2 = vld [vmem:[#allocation8 + $0x5b8] sm:$0xff] }
 0x88d   : > { %3357 = vmatpush.msra.mxu1 %v3332_v4  ;;  %3379 = vmatpush.msra.mxu2 %v3329_v5  ;;  %v3516_v5 = vld [vmem:[#allocation8 + $0x5a0] sm:$0xff] }
 0x88e   : > { %3316 = vmatpush.msrb.mxu0 %v3269_v9  ;;  %v3517_v9 = vld [vmem:[#allocation8 + $0x5a8] sm:$0xff] }
 0x88f   : > { %3358 = vmatpush.msra.mxu1 %v3330_v13  ;;  %3380 = vmatpush.msra.mxu2 %v3327_v16  ;;  %v3514_v13 = vld [vmem:[#allocation8 + $0x590] sm:$0xff]  ;;  %v3699_v16 = vld [vmem:[#allocation8 + $0x708] sm:$0xff] }
 0x890   : > { %4138 = vmatmul.msk.f32.vlgmr.msra.gmra.mxu2 %vm2349_vm9, %v2810_v6  ;;  %3317 = vmatpush.msrb.mxu0 %v3267_v17  ;;  %v3515_v17 = vld [vmem:[#allocation8 + $0x598] sm:$0xff] }
 0x891   : > { %3359 = vmatpush.msra.mxu1 %v3328_v20  ;;  %3477 = vmatpush.msrb.mxu2 %v3464_v21  ;;  %v5382_v38 = vpop.f32.mrf.mxu3  ;;  %v3574_v20 = vld [vmem:[#allocation8 + $0x600] sm:$0xff] }
 0x892   : > { %3318 = vmatpush.msrb.mxu0 %v3265_v22  ;;  %v3512_v21 = vld [vmem:[#allocation8 + $0x580] sm:$0xff]  ;;  %v3513_v22 = vld [vmem:[#allocation8 + $0x588] sm:$0xff] }
 0x893   : > { %3360 = vmatpush.msra.mxu1 %v3326_v26  ;;  %3478 = vmatpush.msrb.mxu2 %v3462_v27  ;;  %v3650_v26 = vld [vmem:[#allocation8 + $0x6f0] sm:$0xff]  ;;  %v3651_v27 = vld [vmem:[#allocation8 + $0x6f8] sm:$0xff] }
 0x894   : > { %4136 = vmatmul.msk.f32.vlgmr.msrb.gmra.mxu0 %vm2349_vm9, %v5376_v33  ;;  %4137 = vmatmul.msk.f32.vlgmr.msra.gmra.mxu1 %vm2349_vm9, %v2810_v6  ;;  %v3707_v33 = vld [vmem:[#allocation8 + $0x748] sm:$0xff]  ;;  %v3701_v6 = vld [vmem:[#allocation8 + $0x718] sm:$0xff] }
 0x895   : > { %3415 = vmatpush.msra.mxu0 %v3402_v28  ;;  %3435 = vmatpush.msrb.mxu1 %v3403_v29  ;;  %v3710_v29 = vld [vmem:[#allocation8 + $0x760] sm:$0xff] }
 0x896   : > { %3479 = vmatpush.msrb.mxu2 %v3460_v30  ;;  %v3648_v30 = vld [vmem:[#allocation8 + $0x6e0] sm:$0xff] }
 0x897   : > { %3416 = vmatpush.msra.mxu0 %v3400_v39  ;;  %3436 = vmatpush.msrb.mxu1 %v3401_v31  ;;  %v3646_v39 = vld [vmem:[#allocation8 + $0x6d0] sm:$0xff]  ;;  %v3647_v31 = vld [vmem:[#allocation8 + $0x6d8] sm:$0xff] }
 0x898   : > { %3480 = vmatpush.msrb.mxu2 %v3458_v34  ;;  %v3706_v34 = vld [vmem:[#allocation8 + $0x740] sm:$0xff] }
 0x899   : > { %3417 = vmatpush.msra.mxu0 %v3398_v36  ;;  %3437 = vmatpush.msrb.mxu1 %v3399_v37  ;;  %v2816_v49 = vpop.f32.mrf.mxu3  ;;  %v3645_v36 = vld [vmem:[#allocation8 + $0x6c8] sm:$0xff]  ;;  %v3704_v37 = vld [vmem:[#allocation8 + $0x730] sm:$0xff] }
 0x89a   : > { %3481 = vmatpush.msrb.mxu2 %v3456_v40  ;;  %4142 = vmatmul.msk.f32.vlgmr.msrb.gmra.mxu3 %vm2349_vm9, %v2816_v49  ;;  %v3642_v40 = vld [vmem:[#allocation8 + $0x6b0] sm:$0xff] }
 0x89b   : > { %3418 = vmatpush.msra.mxu0 %v3396_v42  ;;  %3438 = vmatpush.msrb.mxu1 %v3397_v14  ;;  %v3702_v14 = vld [vmem:[#allocation8 + $0x720] sm:$0xff] }
 0x89c   : > { %3482 = vmatpush.msrb.mxu2 %v3454_v44  ;;  %3745 = vmatpush.msrb.mxu3 %v3713_v50  ;;  %v3640_v44 = vld [vmem:[#allocation8 + $0x6a0] sm:$0xff] }
 0x89d   : > { %3419 = vmatpush.msra.mxu0 %v3394_v45  ;;  %3439 = vmatpush.msrb.mxu1 %v3395_v46  ;;  %v3641_v45 = vld [vmem:[#allocation8 + $0x6a8] sm:$0xff]  ;;  %v3700_v46 = vld [vmem:[#allocation8 + $0x710] sm:$0xff]  ;;  %v3698_v50 = vld [vmem:[#allocation8 + $0x700] sm:$0xff] }
 0x89e   : > { %3483 = vmatpush.msrb.mxu2 %v3452_v47  ;;  %3746 = vmatpush.msrb.mxu3 %v3711_v11  ;;  %v3638_v47 = vld [vmem:[#allocation8 + $0x690] sm:$0xff]  ;;  %v3775_v11 = vld [vmem:[#allocation8 + $0x7f8] sm:$0xff] }
 0x89f   : > { %3420 = vmatpush.msra.mxu0 %v3392_v51  ;;  %3440 = vmatpush.msrb.mxu1 %v3393_v52  ;;  %v3636_v51 = vld [vmem:[#allocation8 + $0x680] sm:$0xff]  ;;  %v3637_v52 = vld [vmem:[#allocation8 + $0x688] sm:$0xff] }
 0x8a0   : > { %3484 = vmatpush.msrb.mxu2 %v3450_v10  ;;  %3747 = vmatpush.msrb.mxu3 %v3709_v55  ;;  %v3774_v10 = vld [vmem:[#allocation8 + $0x7f0] sm:$0xff] }
 0x8a1   : > { %3421 = vmatpush.msra.mxu0 %v3390_v53  ;;  %3441 = vmatpush.msrb.mxu1 %v3391_v54  ;;  %v5389_v58 = vpop.f32.mrf.mxu3  ;;  %v3772_v53 = vld [vmem:[#allocation8 + $0x7e0] sm:$0xff]  ;;  %v3773_v54 = vld [vmem:[#allocation8 + $0x7e8] sm:$0xff]  ;;  %v3770_v55 = vld [vmem:[#allocation8 + $0x7d0] sm:$0xff] }
 0x8a2   : > { %4141 = vmatmul.msk.f32.vlgmr.msrb.gmra.mxu2 %vm2349_vm9, %v2816_v49  ;;  %3748 = vmatpush.msrb.mxu3 %v3707_v33  ;;  %v3639_v49 = vld [vmem:[#allocation8 + $0x698] sm:$0xff] }
 0x8a3   : > { %3601 = vmatpush.msra.mxu2 %v3588_v7  ;;  %3422 = vmatpush.msra.mxu0 %v3388_v8  ;;  %v3771_v7 = vld [vmem:[#allocation8 + $0x7d8] sm:$0xff]  ;;  %v3768_v8 = vld [vmem:[#allocation8 + $0x7c0] sm:$0xff] }
 0x8a4   : > { %3442 = vmatpush.msrb.mxu1 %v3389_v56  ;;  %4139 = vmatmul.msk.f32.vlgmr.msra.gmra.mxu0 %vm2349_vm9, %v5382_v38  ;;  %v3769_v56 = vld [vmem:[#allocation8 + $0x7c8] sm:$0xff]  ;;  %v3763_v33 = vld [vmem:[#allocation8 + $0x798] sm:$0xff] }
 0x8a5   : > { %4140 = vmatmul.msk.f32.vlgmr.msrb.gmra.mxu1 %vm2349_vm9, %v5382_v38  ;;  %3539 = vmatpush.msrb.mxu0 %v3526_v18  ;;  %v3649_v38 = vld [vmem:[#allocation8 + $0x6e8] sm:$0xff]  ;;  %v3766_v18 = vld [vmem:[#allocation8 + $0x7b0] sm:$0xff] }
 0x8a6   : > { %3559 = vmatpush.msra.mxu1 %v3527_v19  ;;  %3602 = vmatpush.msra.mxu2 %v3586_v57  ;;  %v3767_v19 = vld [vmem:[#allocation8 + $0x7b8] sm:$0xff]  ;;  %v3764_v57 = vld [vmem:[#allocation8 + $0x7a0] sm:$0xff] }
 0x8a7   : > { %3540 = vmatpush.msrb.mxu0 %v3524_v32  ;;  %3749 = vmatpush.msrb.mxu3 %v3705_v25  ;;  %v3762_v32 = vld [vmem:[#allocation8 + $0x790] sm:$0xff]  ;;  %v4542_v25 = vmov 8  }
 0x8a8   : > { %3560 = vmatpush.msra.mxu1 %v3525_v59  ;;  %3603 = vmatpush.msra.mxu2 %v3584_v60  ;;  %v3760_v59 = vld [vmem:[#allocation8 + $0x780] sm:$0xff] }
 0x8a9   : > { %3541 = vmatpush.msrb.mxu0 %v3522_v24  ;;  %v2822_v4 = vpop.f32.mrf.mxu3  ;;  %3750 = vmatpush.msrb.mxu3 %v3703_v15  ;;  %v3761_v24 = vld [vmem:[#allocation8 + $0x788] sm:$0xff] }
 0x8aa   : > { %3561 = vmatpush.msra.mxu1 %v3523_v61  ;;  %3604 = vmatpush.msra.mxu2 %v3582_v62  ;;  %v4297_v61 = vld [vmem:[#allocation10] sm:$0xff] }
 0x8ab   : > { %3542 = vmatpush.msrb.mxu0 %v3520_v63  ;;  %4146 = vmatmul.msk.f32.vlgmr.msra.gmra.mxu3 %vm2349_vm9, %v2822_v4 }
 0x8ac   : > { %3562 = vmatpush.msra.mxu1 %v3521_v0  ;;  %3605 = vmatpush.msra.mxu2 %v3580_v43 }
 0x8ad   : > { %3543 = vmatpush.msrb.mxu0 %v3518_v1  ;;  %3751 = vmatpush.msrb.mxu3 %v3701_v6 }
 0x8ae   : > { %3563 = vmatpush.msra.mxu1 %v3519_v2  ;;  %3606 = vmatpush.msra.mxu2 %v3578_v3 }
 0x8af   : > { %3544 = vmatpush.msrb.mxu0 %v3516_v5  ;;  %3752 = vmatpush.msrb.mxu3 %v3699_v16 }
 0x8b0   : > { %3564 = vmatpush.msra.mxu1 %v3517_v9  ;;  %3607 = vmatpush.msra.mxu2 %v3576_v12 }
 0x8b1   : > { %3545 = vmatpush.msrb.mxu0 %v3514_v13  ;;  %v2825_v28 = vpop.f32.mrf.mxu3  ;;  %4286 = vset.pattern.permute.xlu2 %v4542_v25 }
 0x8b2   : > { %3565 = vmatpush.msra.mxu1 %v3515_v17  ;;  %3608 = vmatpush.msra.mxu2 %v3574_v20 }
 0x8b3   : > { %4145 = vmatmul.msk.f32.vlgmr.msra.gmra.mxu2 %vm2349_vm9, %v2822_v4  ;;  %3546 = vmatpush.msrb.mxu0 %v3512_v21 }
 0x8b4   : > { %3566 = vmatpush.msra.mxu1 %v3513_v22  ;;  %3725 = vmatpush.msrb.mxu2 %v3712_v23 }
 0x8b5   : > { %4143 = vmatmul.msk.f32.vlgmr.msrb.gmra.mxu0 %vm2349_vm9, %v5389_v58  ;;  %4144 = vmatmul.msk.f32.vlgmr.msra.gmra.mxu1 %vm2349_vm9, %v5389_v58  ;;  %v3765_v58 = vld [vmem:[#allocation8 + $0x7a8] sm:$0xff] }
 0x8b6   : > { %3663 = vmatpush.msra.mxu0 %v3650_v26  ;;  %3683 = vmatpush.msrb.mxu1 %v3651_v27 }
 0x8b7   : > { %3726 = vmatpush.msrb.mxu2 %v3710_v29  ;;  %3822 = vperm.xlu2 %4286, %v4297_v61  }
 0x8b8   : > { %3664 = vmatpush.msra.mxu0 %v3648_v30  ;;  %3684 = vmatpush.msrb.mxu1 %v3649_v38 }
 0x8b9   : > { %3727 = vmatpush.msrb.mxu2 %v3708_v48  ;;  %v2828_v42 = vpop.f32.mrf.mxu3  ;;  %4287 = vset.pattern.permute.xlu0 %v4542_v25 }
 0x8ba   : > { %3665 = vmatpush.msra.mxu0 %v3646_v39  ;;  %3685 = vmatpush.msrb.mxu1 %v3647_v31 }
 0x8bb   : > { %3728 = vmatpush.msrb.mxu2 %v3706_v34  ;;  %4150 = vmatmul.msk.f32.vlgmr.msrb.gmra.mxu3 %vm2349_vm9, %v2828_v42 }
 0x8bc   : > { %3666 = vmatpush.msra.mxu0 %v3644_v35  ;;  %3686 = vmatpush.msrb.mxu1 %v3645_v36 }
 0x8bd   : > { %3729 = vmatpush.msrb.mxu2 %v3704_v37 }
 0x8be   : > { %3667 = vmatpush.msra.mxu0 %v3642_v40  ;;  %3687 = vmatpush.msrb.mxu1 %v3643_v41 }
 0x8bf   : > { %3730 = vmatpush.msrb.mxu2 %v3702_v14 }
 0x8c0   : > { %3668 = vmatpush.msra.mxu0 %v3640_v44  ;;  %3688 = vmatpush.msrb.mxu1 %v3641_v45 }
 0x8c1   : > { %3731 = vmatpush.msrb.mxu2 %v3700_v46  ;;  %v2831_v60 = vpop.f32.mrf.mxu3 }
 0x8c2   : > { %3669 = vmatpush.msra.mxu0 %v3638_v47  ;;  %3689 = vmatpush.msrb.mxu1 %v3639_v49 }
 0x8c3   : > { %3732 = vmatpush.msrb.mxu2 %v3698_v50 }
 0x8c4   : > { %3670 = vmatpush.msra.mxu0 %v3636_v51  ;;  %3690 = vmatpush.msrb.mxu1 %v3637_v52 }
 0x8c5   : > { %4149 = vmatmul.msk.f32.vlgmr.msrb.gmra.mxu2 %vm2349_vm9, %v2828_v42  ;;  %4147 = vmatmul.msk.f32.vlgmr.msra.gmra.mxu0 %vm2349_vm9, %v2825_v28 }
 0x8c6   : > { %4148 = vmatmul.msk.f32.vlgmr.msrb.gmra.mxu1 %vm2349_vm9, %v2825_v28  ;;  %3787 = vmatpush.msrb.mxu0 %v3774_v10 }
 0x8c7   : > { %3807 = vmatpush.msra.mxu1 %v3775_v11 }
 0x8c8   : > { %3788 = vmatpush.msrb.mxu0 %v3772_v53 }
 0x8c9   : > { %3808 = vmatpush.msra.mxu1 %v3773_v54 }
 0x8ca   : > { %3789 = vmatpush.msrb.mxu0 %v3770_v55 }
 0x8cb   : > { %3809 = vmatpush.msra.mxu1 %v3771_v7 }
 0x8cc   : > { %3790 = vmatpush.msrb.mxu0 %v3768_v8 }
 0x8cd   : > { %3810 = vmatpush.msra.mxu1 %v3769_v56  ;;  %v2930_v15 = vpop.f32.mrf.mxu2 }
 0x8ce   : > { %3791 = vmatpush.msrb.mxu0 %v3766_v18 }
 0x8cf   : > { %3811 = vmatpush.msra.mxu1 %v3767_v19  ;;  %v2887_v62 = vpop.f32.mrf.mxu0  ;;  %v2907_v63 = vpop.f32.mrf.mxu1 }
 0x8d0   : > { %3792 = vmatpush.msrb.mxu0 %v3764_v57  ;;  %v2931_v21 = vadd.f32 %v2930_v15, %v2887_v62 }
 0x8d1   : > { %3812 = vmatpush.msra.mxu1 %v3765_v58 }
 0x8d2   : > { %3793 = vmatpush.msrb.mxu0 %v3762_v32 }
 0x8d3   : > { %3813 = vmatpush.msra.mxu1 %v3763_v33 }
 0x8d4   : > { %3794 = vmatpush.msrb.mxu0 %v3760_v59 }
 0x8d5   : > { %3814 = vmatpush.msra.mxu1 %v3761_v24  ;;  %4151 = vmatmul.msk.f32.vlgmr.msrb.gmra.mxu0 %vm2349_vm9, %v2831_v60 }
 0x8d6   : > { %4152 = vmatmul.msk.f32.vlgmr.msra.gmra.mxu1 %vm2349_vm9, %v2831_v60 }
 0x8d7   : > { %v2950_v0 = vpop.f32.mrf.mxu0  ;;  %v2990_v43 = vpop.f32.mrf.mxu1 }
 0x8d8   : > { %v2951_v17 = vadd.f32 %v2950_v0, %v2907_v63  ;;  %v3013_v26 = vadd.f32 %v2990_v43, %v2931_v21 }
 0x8de   : > { %v3010_v1 = vpop.f32.mrf.mxu2 }
 0x8df   : > { %v3014_v23 = vadd.f32 %v3010_v1, %v2951_v17 }
 0x8e0   : > { %v3072_v4 = vpop.f32.mrf.mxu1 }
 0x8e1   : > { %v3052_v2 = vpop.f32.mrf.mxu0  ;;  %v3076_v29 = vadd.f32 %v3072_v4, %v3014_v23 }
 0x8e2   : > { %v3075_v28 = vadd.f32 %v3052_v2, %v3013_v26 }
 0x8ed   : > { %v3114_v3 = vpop.f32.mrf.mxu2 }
 0x8ee   : > { %v3137_v30 = vadd.f32 %v3114_v3, %v3075_v28 }
 0x8ef   : > { %v3134_v5 = vpop.f32.mrf.mxu0 }
 0x8f0   : > { %v3138_v38 = vadd.f32 %v3134_v5, %v3076_v29 }
 0x8f2   : > { %v3176_v6 = vpop.f32.mrf.mxu1 }
 0x8f3   : > { %v3199_v34 = vadd.f32 %v3176_v6, %v3137_v30 }
 0x8f7   : > { %v3196_v9 = vpop.f32.mrf.mxu2 }
 0x8f8   : > { %v3200_v31 = vadd.f32 %v3196_v9, %v3138_v38 }
 0x900   : > { %v3238_v12 = vpop.f32.mrf.mxu0  ;;  %v3258_v13 = vpop.f32.mrf.mxu1 }
 0x901   : > { %v3262_v35 = vadd.f32 %v3258_v13, %v3200_v31  ;;  %v3261_v37 = vadd.f32 %v3238_v12, %v3199_v34 }
 0x909   : > { %v3300_v16 = vpop.f32.mrf.mxu2 }
 0x90a   : > { %v3323_v42 = vadd.f32 %v3300_v16, %v3261_v37 }
 0x911   : > { %v3320_v20 = vpop.f32.mrf.mxu0  ;;  %v3362_v22 = vpop.f32.mrf.mxu1 }
 0x912   : > { %v3324_v41 = vadd.f32 %v3320_v20, %v3262_v35  ;;  %v3385_v44 = vadd.f32 %v3362_v22, %v3323_v42  ;;  %v3823_v59 = vpop.permute.xlu2 %3822 }
 0x913   : > { %v3382_v27 = vpop.f32.mrf.mxu2 }
 0x914   : > { %v3386_v46 = vadd.f32 %v3382_v27, %v3324_v41 }
 0x91d   : > { %v3506_v40 = vpop.f32.mrf.mxu3 }
 0x921   : > { %v3424_v48 = vpop.f32.mrf.mxu0 }
 0x922   : > { %v3444_v39 = vpop.f32.mrf.mxu1  ;;  %v3447_v47 = vadd.f32 %v3424_v48, %v3385_v44 }
 0x923   : > { %v3448_v49 = vadd.f32 %v3444_v39, %v3386_v46 }
 0x925   : > { %v3486_v36 = vpop.f32.mrf.mxu2  ;;  %v3510_v10 = vadd.f32 %v3506_v40, %v3448_v49 }
 0x926   : > { %v3509_v52 = vadd.f32 %v3486_v36, %v3447_v47 }
 0x92e   : > { %v3630_v51 = vpop.f32.mrf.mxu3 }
 0x932   : > { %v3548_v14 = vpop.f32.mrf.mxu0  ;;  %v3568_v45 = vpop.f32.mrf.mxu1 }
 0x933   : > { %v3571_v53 = vadd.f32 %v3548_v14, %v3509_v52  ;;  %v3572_v55 = vadd.f32 %v3568_v45, %v3510_v10 }
 0x935   : > { %v3634_v8 = vadd.f32 %v3630_v51, %v3572_v55 }
 0x936   : > { %v3610_v50 = vpop.f32.mrf.mxu2 }
 0x937   : > { %v3633_v7 = vadd.f32 %v3610_v50, %v3571_v53 }
 0x93e   : > { %v3754_v19 = vpop.f32.mrf.mxu3 }
 0x942   : > { %v3672_v11 = vpop.f32.mrf.mxu0 }
 0x943   : > { %v3692_v54 = vpop.f32.mrf.mxu1  ;;  %v3695_v18 = vadd.f32 %v3672_v11, %v3633_v7 }
 0x944   : > { %v3696_v57 = vadd.f32 %v3692_v54, %v3634_v8 }
 0x946   : > { %v3758_v32 = vadd.f32 %v3754_v19, %v3696_v57 }
 0x948   : > { %v3734_v56 = vpop.f32.mrf.mxu2 }
 0x949   : > { %v3757_v58 = vadd.f32 %v3734_v56, %v3695_v18 }
 0x952   : > { %v3796_v33 = vpop.f32.mrf.mxu0 }
 0x953   : > { %v3819_v60 = vadd.f32 %v3796_v33, %v3757_v58  ;;  %v3816_v24 = vpop.f32.mrf.mxu1 }
 0x954   : > { %v3820_v25 = vadd.f32 %v3816_v24, %v3758_v32 }
 0x955   : > { %v3825_v61 = vadd.f32 %v3823_v59, %v3819_v60 }
 0x956   : > { %v3826_v62 = vadd.f32 %v3823_v59, %v3820_v25 }
 0x957   : > { %3827 = vst [vmem:[%s414_s5] sm:$0xff] %v3825_v61 }
 0x958   : > { %3828 = vst [vmem:[%s414_s5 + $0x8] sm:$0xff] %v3826_v62 }
 0x959   : > { %4475 = shalt.err (!%p4472_p9)
}
 0x95a   : > { %4194 = dma.vmem_to_hbm [thread:$0]  (%p4680_p4), %s3844_s7, 256, %s3846_s16, %s3830_s17  }
 0x95b PF: > { %s3857_s18 = sand.u32 1, %s4510_s30   ;;  %p5466_p10 = scmp.ge.s32.totalorder %s4522_s12, 2 }
 0x95c   : > { %s3858_s25 = scalar_lea.sflag [#allocation4], %s3857_s18 }
 0x95d   : > { %p4214_p13 = pnand %p5466_p10, %p4684_p6 }
 0x95f   : > { %p4215_p11 = pneg %p4214_p13 }
 0x961   : > { %4505 = dma.done.wait (%p4215_p11), %s3858_s25, 256  }
 0x962   : > { %4507 = vsyncadd (%p4215_p11), %s3858_s25, 4294967040  ;;  %p24_p0 = scmp.ge.s32.totalorder %s4654_s28, 4   ;;  %s5467_s30 = smov %s4514_s10 }
 0x963   : > { %s5468_s10 = smov %s4518_s11  ;;  %s5469_s11 = smov %s4665_s26 }
 0x964   : > { %s5470_s12 = smov %s4654_s28  ;;  %26 = sbr.rel (!%p24_p0) target bundleno = 12 (0xc), region = 151 }
 0x969   :  { %3864 = vsyncpa [#allocation3], 1 }
 0x96a   :  { %3866 = vsyncpa [#allocation3 + $0x1], 1 }
 0x96b   :  { %3867 = vsyncpa [#allocation6], 1 }
 0x96c   :  { %3868 = vsyncpa [#allocation9], 1 }
 0x96d   :  { %3869 = vsyncpa [#allocation4], 1 }
 0x96e   :  { %3871 = vsyncpa [#allocation4 + $0x1], 1 }

</bundles_post_ra>
